<compile_context>
chip_gen: v5e
topology: v5e:2x2
jax: 0.10.0
libtpu: 0.0.40
codegen_flags: <defaults>
</compile_context>

<pallas_src>
import functools

import jax
import jax.numpy as jnp
from jax.experimental import pallas as pl
from jax.experimental.pallas import tpu as pltpu

EPS = 1e-5
LANE = 128


def _round_up(x, m):
    return (x + m - 1) // m * m


def _vmem_budget():
    # ~half of physical VMEM, capped at 64 MiB:
    #   v5e/v6e (128 MiB phys) -> 64 MiB scoped, v7x (64 MiB phys) -> 32 MiB.
    try:
        cap = int(pltpu.get_tpu_info().vmem_capacity_bytes)
        return max(32 * 1024 * 1024, min(cap // 2, 64 * 1024 * 1024))
    except Exception:
        return 32 * 1024 * 1024


VMEM_LIMIT = _vmem_budget()
MATMUL_TM = 512 if VMEM_LIMIT >= 48 * 1024 * 1024 else 256
ELEM_TM = 1024 if VMEM_LIMIT >= 48 * 1024 * 1024 else 512


def _compiler_params(dim_sem):
    return pltpu.CompilerParams(dimension_semantics=dim_sem,
                                vmem_limit_bytes=VMEM_LIMIT)


def _pick_tile(m, target):
    """Largest multiple of 8 that divides m and is <= target (None if m % 8)."""
    if m <= 0 or m % 8 != 0:
        return None
    t = min(target, m)
    t -= t % 8
    while m % t != 0:
        t -= 8
    return t


def _bn_coeffs(sums, sqs, m_true, gamma, beta):
    """Per-tile partial sums -> per-channel (a, b) with BN(y) = y*a + b (f32)."""
    cp = sums.shape[-1]
    s = jnp.sum(sums, axis=(0, 1))
    q = jnp.sum(sqs, axis=(0, 1))
    mean = s / m_true
    # E[y^2]-E[y]^2 in f32: adequate at conv-activation scale (documented
    # correctness concern; clip tiny negative round-off).
    var = jnp.maximum(q / m_true - mean * mean, 0.0)
    g = jnp.pad(gamma.astype(jnp.float32), (0, cp - gamma.shape[0]))
    be = jnp.pad(beta.astype(jnp.float32), (0, cp - beta.shape[0]))
    a = g * jax.lax.rsqrt(var + EPS)
    b = be - mean * a
    return a.reshape(1, cp), b.reshape(1, cp)


# ---------------------------------------------------------------------------
# Kernel 1: 1x1 conv as matmul (full K per step, weight resident in VMEM)
#           + optional fused input BN+ReLU + per-tile BN statistics.
# ---------------------------------------------------------------------------
def _mm_bn_stats_kernel(*refs, fuse_input, m_true, mask_rows):
    if fuse_input:
        x_ref, w_ref, a_ref, b_ref, y_ref, s_ref, q_ref = refs
    else:
        x_ref, w_ref, y_ref, s_ref, q_ref = refs

    x = x_ref[...]
    if fuse_input:
        # Producer's BN + ReLU, applied on the fly (never materialized in HBM).
        x = jnp.maximum(x.astype(jnp.float32) * a_ref[...] + b_ref[...], 0.0)
    y = jnp.dot(x.astype(jnp.bfloat16), w_ref[...],
                preferred_element_type=jnp.float32)
    y_ref[...] = y.astype(y_ref.dtype)

    if mask_rows:
        row = (pl.program_id(0) * y.shape[0]
               + jax.lax.broadcasted_iota(jnp.int32, y.shape, 0))
        y = jnp.where(row < m_true, y, 0.0)
    s_ref[...] = jnp.sum(y, axis=0, keepdims=True)[None]
    q_ref[...] = jnp.sum(y * y, axis=0, keepdims=True)[None]


def conv1x1_bn_pallas(x2d, w, gamma, beta, a_in=None, b_in=None):
    """1x1-conv-as-matmul.  Returns (y_bf16, a, b) with BN(y) = y*a + b."""
    M, K = x2d.shape
    Cout = w.shape[1]
    Cp = _round_up(Cout, LANE)

    # Pad channels only when K isn't already lane-aligned.
    Kp = K if K % LANE == 0 else _round_up(K, LANE)
    if Kp != K:
        x2d = jnp.pad(x2d, ((0, 0), (0, Kp - K)))
        if a_in is not None:
            a_in = jnp.pad(a_in, ((0, 0), (0, Kp - a_in.shape[1])))
            b_in = jnp.pad(b_in, ((0, 0), (0, Kp - b_in.shape[1])))
    wp = jnp.pad(w, ((0, Kp - w.shape[0]), (0, Cp - Cout))).astype(jnp.bfloat16)

    # Row tiling: prefer a tile that divides M exactly (no pad, no masking).
    tm = _pick_tile(M, MATMUL_TM)
    if tm is None:
        Mp = _round_up(M, 8)
        x2d = jnp.pad(x2d, ((0, Mp - M), (0, 0)))
        tm = _pick_tile(Mp, MATMUL_TM)
        mask_rows = True
    else:
        Mp = M
        mask_rows = False
    grid = (Mp // tm,)

    fuse = a_in is not None
    kernel = functools.partial(_mm_bn_stats_kernel, fuse_input=fuse,
                               m_true=M, mask_rows=mask_rows)
    in_specs = [pl.BlockSpec((tm, Kp), lambda i: (i, 0)),
                pl.BlockSpec((Kp, Cp), lambda i: (0, 0))]   # resident weight
    args = [x2d, wp]
    if fuse:
        in_specs += [pl.BlockSpec((1, Kp), lambda i: (0, 0)),
                     pl.BlockSpec((1, Kp), lambda i: (0, 0))]
        args += [a_in, b_in]

    y, s, q = pl.pallas_call(
        kernel,
        grid=grid,
        in_specs=in_specs,
        out_specs=[pl.BlockSpec((tm, Cp), lambda i: (i, 0)),
                   pl.BlockSpec((1, 1, Cp), lambda i: (i, 0, 0)),
                   pl.BlockSpec((1, 1, Cp), lambda i: (i, 0, 0))],
        out_shape=[jax.ShapeDtypeStruct((Mp, Cp), jnp.bfloat16),
                   jax.ShapeDtypeStruct((grid[0], 1, Cp), jnp.float32),
                   jax.ShapeDtypeStruct((grid[0], 1, Cp), jnp.float32)],
        compiler_params=_compiler_params(("parallel",)),
    )(*args)
    a, b = _bn_coeffs(s, q, M, gamma, beta)
    return y, a, b


# ---------------------------------------------------------------------------
# Kernel 2a: fused [BN1+ReLU] -> 3x3 stride-1 conv (halo built in VMEM) -> stats
# ---------------------------------------------------------------------------
def _conv3x3_s1_kernel(x_ref, w_ref, a_ref, b_ref, y_ref, s_ref, q_ref,
                       xh_ref, acc_ref, *, hh, ww):
    cin = xh_ref.shape[-1]
    # Build the 1-pixel-halo bf16 activation slab in VMEM (no HBM pad pass):
    # memset the slab, then write relu(BN1(x)) into the interior once.
    xh_ref[...] = jnp.zeros_like(xh_ref)
    act = jnp.maximum(
        x_ref[0].astype(jnp.float32) * a_ref[...] + b_ref[...], 0.0)
    xh_ref[1:hh + 1, 1:ww + 1, :] = act.astype(jnp.bfloat16)

    # 9 unrolled taps accumulated into a VMEM f32 scratch.
    acc_ref[...] = jnp.zeros_like(acc_ref)
    for t in range(9):
        dh, dw = divmod(t, 3)
        xs = xh_ref[dh:dh + hh, dw:dw + ww, :].reshape(hh * ww, cin)
        acc_ref[...] += jnp.dot(xs, w_ref[t],
                                preferred_element_type=jnp.float32)
    # TODO(synk): pair dw-adjacent taps (2*cin contraction) to fill the
    # 256-deep MXU on v6e/v7x.
    y = acc_ref[...]
    y_ref[...] = y.astype(y_ref.dtype)
    s_ref[...] = jnp.sum(y, axis=0, keepdims=True)[None]
    q_ref[...] = jnp.sum(y * y, axis=0, keepdims=True)[None]


def conv3x3_s1_bn_pallas(y1, a1, b1, w2, gamma, beta, n, h, w):
    cp_in = y1.shape[1]
    cmid, cout = w2.shape[2], w2.shape[3]
    cp_out = _round_up(cout, LANE)
    m = n * h * w

    x4 = y1[:m].reshape(n, h, w, cp_in)
    w9 = jnp.pad(w2.reshape(9, cmid, cout),
                 ((0, 0), (0, cp_in - cmid), (0, cp_out - cout))
                 ).astype(jnp.bfloat16)

    kernel = functools.partial(_conv3x3_s1_kernel, hh=h, ww=w)
    y2, s, q = pl.pallas_call(
        kernel,
        grid=(n,),
        in_specs=[pl.BlockSpec((1, h, w, cp_in), lambda i: (i, 0, 0, 0)),
                  pl.BlockSpec((9, cp_in, cp_out), lambda i: (0, 0, 0)),
                  pl.BlockSpec((1, cp_in), lambda i: (0, 0)),
                  pl.BlockSpec((1, cp_in), lambda i: (0, 0))],
        out_specs=[pl.BlockSpec((h * w, cp_out), lambda i: (i, 0)),
                   pl.BlockSpec((1, 1, cp_out), lambda i: (i, 0, 0)),
                   pl.BlockSpec((1, 1, cp_out), lambda i: (i, 0, 0))],
        out_shape=[jax.ShapeDtypeStruct((m, cp_out), jnp.bfloat16),
                   jax.ShapeDtypeStruct((n, 1, cp_out), jnp.float32),
                   jax.ShapeDtypeStruct((n, 1, cp_out), jnp.float32)],
        scratch_shapes=[pltpu.VMEM((h + 2, w + 2, cp_in), jnp.bfloat16),
                        pltpu.VMEM((h * w, cp_out), jnp.float32)],
        compiler_params=_compiler_params(("parallel",)),
    )(x4, w9, a1, b1)
    a2, b2 = _bn_coeffs(s, q, m, gamma, beta)
    return y2, a2, b2


# ---------------------------------------------------------------------------
# Kernel 2b: 3x3 stride-2 conv via phase split (replaces the im2col fallback).
# ---------------------------------------------------------------------------
def _conv3x3_s2_kernel(p00_ref, p01_ref, p10_ref, p11_ref, w_ref,
                       y_ref, s_ref, q_ref, acc_ref, *, ho, wo):
    cin = p00_ref.shape[-1]
    pv = (p00_ref[0], p01_ref[0], p10_ref[0], p11_ref[0])
    acc_ref[...] = jnp.zeros_like(acc_ref)
    for t in range(9):
        dh, dw = divmod(t, 3)
        pr = pv[(dh % 2) * 2 + (dw % 2)]
        i0, j0 = dh // 2, dw // 2
        xs = pr[i0:i0 + ho, j0:j0 + wo, :].reshape(ho * wo, cin)
        acc_ref[...] += jnp.dot(xs, w_ref[t],
                                preferred_element_type=jnp.float32)
    y = acc_ref[...]
    y_ref[...] = y.astype(y_ref.dtype)
    s_ref[...] = jnp.sum(y, axis=0, keepdims=True)[None]
    q_ref[...] = jnp.sum(y * y, axis=0, keepdims=True)[None]


def conv3x3_s2_bn_pallas(y1, a1, b1, w2, gamma, beta, n, h, w):
    assert h % 2 == 0 and w % 2 == 0, "stride-2 path expects even H, W"
    cp_in = y1.shape[1]
    cmid, cout = w2.shape[2], w2.shape[3]
    cp_out = _round_up(cout, LANE)
    m0 = n * h * w
    ho, wo = h // 2, w // 2
    m1 = n * ho * wo

    # BN1+ReLU + phase (space-to-depth) split at the JAX level (one fused
    # elementwise + slice pass); every tap then reads a *contiguous* window of
    # one bf16 phase image inside the kernel -- no 9x im2col HBM expansion.
    x4 = y1[:m0].reshape(n, h, w, cp_in).astype(jnp.float32)
    act = jnp.maximum(x4 * a1 + b1, 0.0).astype(jnp.bfloat16)
    ap = jnp.pad(act, ((0, 0), (1, 1), (1, 1), (0, 0)))
    phases = [ap[:, a::2, b::2, :] for a in range(2) for b in range(2)]
    w9 = jnp.pad(w2.reshape(9, cmid, cout),
                 ((0, 0), (0, cp_in - cmid), (0, cp_out - cout))
                 ).astype(jnp.bfloat16)

    kernel = functools.partial(_conv3x3_s2_kernel, ho=ho, wo=wo)
    phase_spec = pl.BlockSpec((1, ho + 1, wo + 1, cp_in),
                              lambda i: (i, 0, 0, 0))
    y2, s, q = pl.pallas_call(
        kernel,
        grid=(n,),
        in_specs=[phase_spec, phase_spec, phase_spec, phase_spec,
                  pl.BlockSpec((9, cp_in, cp_out), lambda i: (0, 0, 0))],
        out_specs=[pl.BlockSpec((ho * wo, cp_out), lambda i: (i, 0)),
                   pl.BlockSpec((1, 1, cp_out), lambda i: (i, 0, 0)),
                   pl.BlockSpec((1, 1, cp_out), lambda i: (i, 0, 0))],
        out_shape=[jax.ShapeDtypeStruct((m1, cp_out), jnp.bfloat16),
                   jax.ShapeDtypeStruct((n, 1, cp_out), jnp.float32),
                   jax.ShapeDtypeStruct((n, 1, cp_out), jnp.float32)],
        scratch_shapes=[pltpu.VMEM((ho * wo, cp_out), jnp.float32)],
        compiler_params=_compiler_params(("parallel",)),
    )(*phases, w9)
    a2, b2 = _bn_coeffs(s, q, m1, gamma, beta)
    return y2, a2, b2


# ---------------------------------------------------------------------------
# Kernel 3: BN3 + (optional shortcut BN) + residual add + final ReLU, fused.
#           Writes the final *unpadded* (M, Cexp) f32 output.
# ---------------------------------------------------------------------------
def _bn_add_relu_kernel(*refs, shortcut_bn, cexp):
    if shortcut_bn:
        y_ref, sc_ref, a_ref, b_ref, asc_ref, bsc_ref, o_ref = refs
    else:
        y_ref, sc_ref, a_ref, b_ref, o_ref = refs
    v = y_ref[...].astype(jnp.float32) * a_ref[...] + b_ref[...]
    s = sc_ref[...].astype(jnp.float32)
    if shortcut_bn:
        s = s * asc_ref[...] + bsc_ref[...]
    o_ref[...] = jnp.maximum(v[:, :cexp] + s[:, :cexp], 0.0)


def bn_add_relu_pallas(y3, sc, a, b, cexp, asc=None, bsc=None):
    m, csc = sc.shape
    y3 = y3[:m]
    cp = y3.shape[1]
    tm = _pick_tile(m, ELEM_TM)
    if tm is None:
        mp = _round_up(m, 8)
        y3 = jnp.pad(y3, ((0, mp - m), (0, 0)))
        sc = jnp.pad(sc, ((0, mp - m), (0, 0)))
        tm = _pick_tile(mp, ELEM_TM)
    else:
        mp = m
    shortcut_bn = asc is not None
    kernel = functools.partial(_bn_add_relu_kernel,
                               shortcut_bn=shortcut_bn, cexp=cexp)
    in_specs = [pl.BlockSpec((tm, cp), lambda i: (i, 0)),
                pl.BlockSpec((tm, csc), lambda i: (i, 0)),
                pl.BlockSpec((1, cp), lambda i: (0, 0)),
                pl.BlockSpec((1, cp), lambda i: (0, 0))]
    args = [y3, sc, a, b]
    if shortcut_bn:
        in_specs += [pl.BlockSpec((1, csc), lambda i: (0, 0)),
                     pl.BlockSpec((1, csc), lambda i: (0, 0))]
        args += [asc, bsc]
    out = pl.pallas_call(
        kernel,
        grid=(mp // tm,),
        in_specs=in_specs,
        out_specs=pl.BlockSpec((tm, cexp), lambda i: (i, 0)),
        out_shape=jax.ShapeDtypeStruct((mp, cexp), jnp.float32),
        compiler_params=_compiler_params(("parallel",)),
    )(*args)
    return out[:m]


# ---------------------------------------------------------------------------
# Bottleneck forward (Pallas)
# ---------------------------------------------------------------------------
def bottleneck_forward(x_nchw, params, stride):
    """Matches PyTorch Bottleneck.forward with training-mode BatchNorm."""
    x = jnp.transpose(x_nchw, (0, 2, 3, 1)).astype(jnp.float32)  # NCHW -> NHWC
    n, h, w, cin = x.shape
    cexp = params["w3"].shape[1]
    m0 = n * h * w

    # conv1 (1x1) + BN1 stats; BN1+ReLU is applied inside the conv2 kernel.
    y1, a1, b1 = conv1x1_bn_pallas(x.reshape(m0, cin), params["w1"],
                                   params["g1"], params["b1"])

    # conv2 (3x3, pad 1) + BN2 stats, BN1+ReLU fused onto its input.
    if stride == 1:
        y2, a2, b2 = conv3x3_s1_bn_pallas(y1, a1, b1, params["w2"],
                                          params["g2"], params["b2"], n, h, w)
        ho, wo = h, w
    else:
        assert stride == 2
        y2, a2, b2 = conv3x3_s2_bn_pallas(y1, a1, b1, params["w2"],
                                          params["g2"], params["b2"], n, h, w)
        ho, wo = h // 2, w // 2
    m1 = n * ho * wo

    # conv3 (1x1) + BN3 stats, BN2+ReLU fused onto its input.
    y3, a3, b3 = conv1x1_bn_pallas(y2, params["w3"],
                                   params["g3"], params["b3"],
                                   a_in=a2, b_in=b2)

    # Shortcut branch.
    if stride != 1 or cin != cexp:
        xsc = x[:, ::stride, ::stride, :].reshape(m1, cin)
        ysc, asc, bsc = conv1x1_bn_pallas(xsc, params["ws"],
                                          params["gs"], params["bs"])
        out = bn_add_relu_pallas(y3, ysc[:m1], a3, b3, cexp,
                                 asc=asc, bsc=bsc)
    else:
        out = bn_add_relu_pallas(y3, x.reshape(m1, cin), a3, b3, cexp)

    return jnp.transpose(out.reshape(n, ho, wo, cexp), (0, 3, 1, 2))


# ---------------------------------------------------------------------------
# Pure-JAX reference (for correctness check)
# ---------------------------------------------------------------------------
def _bn_train_ref(y, gamma, beta):
    mean = y.mean(axis=(0, 1, 2), keepdims=True)
    var = ((y - mean) ** 2).mean(axis=(0, 1, 2), keepdims=True)
    return (y - mean) * jax.lax.rsqrt(var + EPS) * gamma + beta


def _conv_ref(x, w_hwio, stride):
    pad = ((1, 1), (1, 1)) if w_hwio.shape[0] == 3 else ((0, 0), (0, 0))
    return jax.lax.conv_general_dilated(
        x, w_hwio, window_strides=(stride, stride), padding=pad,
        dimension_numbers=("NHWC", "HWIO", "NHWC"))


def bottleneck_ref(x_nchw, params, stride):
    x = jnp.transpose(x_nchw, (0, 2, 3, 1)).astype(jnp.float32)
    cin = x.shape[-1]
    cmid = params["w1"].shape[1]
    cexp = params["w3"].shape[1]
    o = jax.nn.relu(_bn_train_ref(
        _conv_ref(x, params["w1"].reshape(1, 1, cin, cmid), 1),
        params["g1"], params["b1"]))
    o = jax.nn.relu(_bn_train_ref(
        _conv_ref(o, params["w2"], stride), params["g2"], params["b2"]))
    o = _bn_train_ref(_conv_ref(o, params["w3"].reshape(1, 1, cmid, cexp), 1),
                      params["g3"], params["b3"])
    if stride != 1 or cin != cexp:
        sc = _bn_train_ref(
            _conv_ref(x, params["ws"].reshape(1, 1, cin, cexp), stride),
            params["gs"], params["bs"])
    else:
        sc = x
    return jnp.transpose(jax.nn.relu(o + sc), (0, 3, 1, 2))


# ---------------------------------------------------------------------------
if __name__ == "__main__":
    def make_params(key, cin, cmid):
        cexp = cmid * 4
        k1, k2, k3, k4 = jax.random.split(key, 4)
        return {
            # conv weights in matmul-friendly layouts ((K, Cout) / HWIO)
            "w1": jax.random.normal(k1, (cin, cmid), jnp.float32) * 0.1,
            "w2": jax.random.normal(k2, (3, 3, cmid, cmid), jnp.float32) * 0.1,
            "w3": jax.random.normal(k3, (cmid, cexp), jnp.float32) * 0.1,
            "ws": jax.random.normal(k4, (cin, cexp), jnp.float32) * 0.1,
            # BN affine params: PyTorch defaults (gamma=1, beta=0)
            "g1": jnp.ones((cmid,), jnp.float32),
            "b1": jnp.zeros((cmid,), jnp.float32),
            "g2": jnp.ones((cmid,), jnp.float32),
            "b2": jnp.zeros((cmid,), jnp.float32),
            "g3": jnp.ones((cexp,), jnp.float32),
            "b3": jnp.zeros((cexp,), jnp.float32),
            "gs": jnp.ones((cexp,), jnp.float32),
            "bs": jnp.zeros((cexp,), jnp.float32),
        }

    key = jax.random.PRNGKey(0)
    kp, kx = jax.random.split(key)
    fwd = jax.jit(bottleneck_forward, static_argnums=(2,))
    # (N, Cin, H, W, Cmid, stride)
    configs = [
        (2, 16, 8, 8, 8, 1),   # projection shortcut, fused in-kernel 3x3 taps
        (2, 32, 8, 8, 8, 1),   # identity shortcut
        (2, 16, 8, 8, 8, 2),   # stride 2 -> phase-split 3x3 + strided shortcut
    ]
    for (N, Cin, H, W, Cmid, stride) in configs:
        params = make_params(kp, Cin, Cmid)
        x = jax.random.normal(kx, (N, Cin, H, W), jnp.float32)
        out = jax.block_until_ready(fwd(x, params, stride))
        ref = jax.block_until_ready(bottleneck_ref(x, params, stride))
        assert out.shape == ref.shape, (out.shape, ref.shape)
        err = float(jnp.max(jnp.abs(out - ref)))
        # Tolerance sized for bf16 MXU operands + bf16 HBM intermediates vs a
        # full-f32 reference across three chained conv+BN layers; a real bug
        # would produce O(1) errors.
        assert jnp.allclose(out, ref, atol=1e-1, rtol=1e-1), (
            f"mismatch (Cin={Cin}, stride={stride}): max|err|={err}")
    print("KERNEL_OK")
</pallas_src>

<mosaic_0001>
module attributes {stable_mosaic.version = 11 : i64} {
  func.func @_mm_bn_stats_kernel(%arg0: i32, %arg1: memref<128x128xf32, #tpu.memory_space<vmem>>, %arg2: memref<128x128xbf16, #tpu.memory_space<vmem>>, %arg3: memref<128x128xbf16, #tpu.memory_space<vmem>>, %arg4: memref<1x1x128xf32, #tpu.memory_space<vmem>>, %arg5: memref<1x1x128xf32, #tpu.memory_space<vmem>>) attributes {dimension_semantics = [#tpu.dimension_semantics<parallel>], iteration_bounds = array<i64: 1>, scalar_prefetch = 0 : i64, scratch_operands = 0 : i64, tpu.core_type = #tpu.core_type<tc>, window_params = [{transform_indices = @transform_0, window_bounds = array<i64: 128, 128>}, {pipeline_mode = #tpu.pipeline_mode<synchronous>, transform_indices = @transform_1, window_bounds = array<i64: 128, 128>}, {transform_indices = @transform_2, window_bounds = array<i64: 128, 128>}, {transform_indices = @transform_3, window_bounds = array<i64: 1, 1, 128>}, {transform_indices = @transform_4, window_bounds = array<i64: 1, 1, 128>}]} {
    %c0 = arith.constant 0 : index
    %c0_0 = arith.constant 0 : index
    %0 = vector.load %arg1[%c0, %c0_0] : memref<128x128xf32, #tpu.memory_space<vmem>>, vector<128x128xf32>
    %1 = arith.truncf %0 : vector<128x128xf32> to vector<128x128xbf16>
    %c0_1 = arith.constant 0 : index
    %c0_2 = arith.constant 0 : index
    %2 = vector.load %arg2[%c0_1, %c0_2] : memref<128x128xbf16, #tpu.memory_space<vmem>>, vector<128x128xbf16>
    %cst = arith.constant dense<0.000000e+00> : vector<128x128xf32>
    %3 = tpu.matmul %1, %2, %cst {dimension_numbers = #tpu.dot_dimension_numbers<[1], [0], [0], [1], [0, 0, 1, 1], [], []>} : vector<128x128xbf16>, vector<128x128xbf16>, vector<128x128xf32> -> vector<128x128xf32>
    %4 = arith.truncf %3 : vector<128x128xf32> to vector<128x128xbf16>
    %c0_3 = arith.constant 0 : index
    %c0_4 = arith.constant 0 : index
    %5 = vector.load %arg3[%c0_3, %c0_4] : memref<128x128xbf16, #tpu.memory_space<vmem>>, vector<128x128xbf16>
    tpu.vector_store %arg3[%c0_3, %c0_4], %4 {strides = array<i32>} : memref<128x128xbf16, #tpu.memory_space<vmem>>, vector<128x128xbf16>,
    %cst_5 = arith.constant dense<0.000000e+00> : vector<128xf32>
    %6 = vector.multi_reduction <add>, %3, %cst_5 [0] : vector<128x128xf32> to vector<128xf32>
    %7 = vector.shape_cast %6 : vector<128xf32> to vector<1x128xf32>
    %8 = vector.shape_cast %7 : vector<1x128xf32> to vector<1x1x128xf32>
    %c0_6 = arith.constant 0 : index
    %c0_7 = arith.constant 0 : index
    %c0_8 = arith.constant 0 : index
    %9 = vector.load %arg4[%c0_6, %c0_7, %c0_8] : memref<1x1x128xf32, #tpu.memory_space<vmem>>, vector<1x1x128xf32>
    tpu.vector_store %arg4[%c0_6, %c0_7, %c0_8], %8 {strides = array<i32>} : memref<1x1x128xf32, #tpu.memory_space<vmem>>, vector<1x1x128xf32>,
    %10 = arith.mulf %3, %3 : vector<128x128xf32>
    %cst_9 = arith.constant dense<0.000000e+00> : vector<128xf32>
    %11 = vector.multi_reduction <add>, %10, %cst_9 [0] : vector<128x128xf32> to vector<128xf32>
    %12 = vector.shape_cast %11 : vector<128xf32> to vector<1x128xf32>
    %13 = vector.shape_cast %12 : vector<1x128xf32> to vector<1x1x128xf32>
    %c0_10 = arith.constant 0 : index
    %c0_11 = arith.constant 0 : index
    %c0_12 = arith.constant 0 : index
    %14 = vector.load %arg5[%c0_10, %c0_11, %c0_12] : memref<1x1x128xf32, #tpu.memory_space<vmem>>, vector<1x1x128xf32>
    tpu.vector_store %arg5[%c0_10, %c0_11, %c0_12], %13 {strides = array<i32>} : memref<1x1x128xf32, #tpu.memory_space<vmem>>, vector<1x1x128xf32>,
    return
  }
  func.func @transform_0(%arg0: i32) -> (i32, i32) {
    %c0_i32 = arith.constant 0 : i32
    %c0_i32_0 = arith.constant 0 : i32
    return %arg0, %c0_i32 : i32, i32
  }
  func.func @transform_1(%arg0: i32) -> (i32, i32) {
    %c0_i32 = arith.constant 0 : i32
    %c0_i32_0 = arith.constant 0 : i32
    %c0_i32_1 = arith.constant 0 : i32
    return %c0_i32, %c0_i32_0 : i32, i32
  }
  func.func @transform_2(%arg0: i32) -> (i32, i32) {
    %c0_i32 = arith.constant 0 : i32
    %c0_i32_0 = arith.constant 0 : i32
    return %arg0, %c0_i32 : i32, i32
  }
  func.func @transform_3(%arg0: i32) -> (i32, i32, i32) {
    %c0_i32 = arith.constant 0 : i32
    %c0_i32_0 = arith.constant 0 : i32
    %c0_i32_1 = arith.constant 0 : i32
    return %arg0, %c0_i32, %c0_i32_0 : i32, i32, i32
  }
  func.func @transform_4(%arg0: i32) -> (i32, i32, i32) {
    %c0_i32 = arith.constant 0 : i32
    %c0_i32_0 = arith.constant 0 : i32
    %c0_i32_1 = arith.constant 0 : i32
    return %arg0, %c0_i32, %c0_i32_0 : i32, i32, i32
  }
}

module attributes {stable_mosaic.version = 11 : i64} {
  func.func @_conv3x3_s1_kernel(%arg0: i32, %arg1: memref<1x8x8x128xbf16, #tpu.memory_space<vmem>>, %arg2: memref<9x128x128xbf16, #tpu.memory_space<vmem>>, %arg3: memref<1x128xf32, #tpu.memory_space<vmem>>, %arg4: memref<1x128xf32, #tpu.memory_space<vmem>>, %arg5: memref<64x128xbf16, #tpu.memory_space<vmem>>, %arg6: memref<1x1x128xf32, #tpu.memory_space<vmem>>, %arg7: memref<1x1x128xf32, #tpu.memory_space<vmem>>, %arg8: memref<10x10x128xbf16, #tpu.memory_space<vmem>>, %arg9: memref<64x128xf32, #tpu.memory_space<vmem>>) attributes {dimension_semantics = [#tpu.dimension_semantics<parallel>], iteration_bounds = array<i64: 2>, scalar_prefetch = 0 : i64, scratch_operands = 2 : i64, tpu.core_type = #tpu.core_type<tc>, window_params = [{transform_indices = @transform_0, window_bounds = array<i64: 1, 8, 8, 128>}, {pipeline_mode = #tpu.pipeline_mode<synchronous>, transform_indices = @transform_1, window_bounds = array<i64: 9, 128, 128>}, {pipeline_mode = #tpu.pipeline_mode<synchronous>, transform_indices = @transform_2, window_bounds = array<i64: 1, 128>}, {pipeline_mode = #tpu.pipeline_mode<synchronous>, transform_indices = @transform_3, window_bounds = array<i64: 1, 128>}, {transform_indices = @transform_4, window_bounds = array<i64: 64, 128>}, {transform_indices = @transform_5, window_bounds = array<i64: 1, 1, 128>}, {transform_indices = @transform_6, window_bounds = array<i64: 1, 1, 128>}]} {
    %cst = arith.constant 0.000000e+00 : bf16
    %0 = vector.broadcast %cst : bf16 to vector<10x10x128xbf16>
    %c0 = arith.constant 0 : index
    %c0_0 = arith.constant 0 : index
    %c0_1 = arith.constant 0 : index
    %1 = vector.load %arg8[%c0, %c0_0, %c0_1] : memref<10x10x128xbf16, #tpu.memory_space<vmem>>, vector<10x10x128xbf16>
    tpu.vector_store %arg8[%c0, %c0_0, %c0_1], %0 {strides = array<i32>} : memref<10x10x128xbf16, #tpu.memory_space<vmem>>, vector<10x10x128xbf16>,
    %c0_2 = arith.constant 0 : index
    %c0_3 = arith.constant 0 : index
    %c0_4 = arith.constant 0 : index
    %c0_5 = arith.constant 0 : index
    %2 = vector.load %arg1[%c0_2, %c0_3, %c0_4, %c0_5] : memref<1x8x8x128xbf16, #tpu.memory_space<vmem>>, vector<1x8x8x128xbf16>
    %3 = vector.shape_cast %2 : vector<1x8x8x128xbf16> to vector<8x8x128xbf16>
    %4 = arith.extf %3 : vector<8x8x128xbf16> to vector<8x8x128xf32>
    %c0_6 = arith.constant 0 : index
    %c0_7 = arith.constant 0 : index
    %5 = vector.load %arg3[%c0_6, %c0_7] : memref<1x128xf32, #tpu.memory_space<vmem>>, vector<1x128xf32>
    %6 = vector.shape_cast %5 : vector<1x128xf32> to vector<1x1x128xf32>
    %7 = vector.broadcast %6 : vector<1x1x128xf32> to vector<8x8x128xf32>
    %8 = arith.mulf %4, %7 : vector<8x8x128xf32>
    %c0_8 = arith.constant 0 : index
    %c0_9 = arith.constant 0 : index
    %9 = vector.load %arg4[%c0_8, %c0_9] : memref<1x128xf32, #tpu.memory_space<vmem>>, vector<1x128xf32>
    %10 = vector.shape_cast %9 : vector<1x128xf32> to vector<1x1x128xf32>
    %11 = vector.broadcast %10 : vector<1x1x128xf32> to vector<8x8x128xf32>
    %12 = arith.addf %8, %11 : vector<8x8x128xf32>
    %cst_10 = arith.constant 0.000000e+00 : f32
    %13 = vector.broadcast %cst_10 : f32 to vector<8x8x128xf32>
    %14 = arith.maximumf %12, %13 : vector<8x8x128xf32>
    %15 = arith.truncf %14 : vector<8x8x128xf32> to vector<8x8x128xbf16>
    %c1 = arith.constant 1 : index
    %c1_11 = arith.constant 1 : index
    %c0_12 = arith.constant 0 : index
    %16 = vector.load %arg8[%c1, %c1_11, %c0_12] : memref<10x10x128xbf16, #tpu.memory_space<vmem>>, vector<8x8x128xbf16>
    tpu.vector_store %arg8[%c1, %c1_11, %c0_12], %15 {strides = array<i32>} : memref<10x10x128xbf16, #tpu.memory_space<vmem>>, vector<8x8x128xbf16>,
    %cst_13 = arith.constant 0.000000e+00 : f32
    %17 = vector.broadcast %cst_13 : f32 to vector<64x128xf32>
    %c0_14 = arith.constant 0 : index
    %c0_15 = arith.constant 0 : index
    %18 = vector.load %arg9[%c0_14, %c0_15] : memref<64x128xf32, #tpu.memory_space<vmem>>, vector<64x128xf32>
    tpu.vector_store %arg9[%c0_14, %c0_15], %17 {strides = array<i32>} : memref<64x128xf32, #tpu.memory_space<vmem>>, vector<64x128xf32>,
    %c0_16 = arith.constant 0 : index
    %c0_17 = arith.constant 0 : index
    %c0_18 = arith.constant 0 : index
    %19 = vector.load %arg8[%c0_16, %c0_17, %c0_18] : memref<10x10x128xbf16, #tpu.memory_space<vmem>>, vector<8x8x128xbf16>
    %20 = vector.shape_cast %19 : vector<8x8x128xbf16> to vector<64x128xbf16>
    %c0_19 = arith.constant 0 : index
    %c0_20 = arith.constant 0 : index
    %21 = vector.load %arg9[%c0_19, %c0_20] : memref<64x128xf32, #tpu.memory_space<vmem>>, vector<64x128xf32>
    %c0_21 = arith.constant 0 : index
    %c0_22 = arith.constant 0 : index
    %c0_23 = arith.constant 0 : index
    %22 = vector.load %arg2[%c0_21, %c0_22, %c0_23] : memref<9x128x128xbf16, #tpu.memory_space<vmem>>, vector<1x128x128xbf16>
    %23 = vector.shape_cast %22 : vector<1x128x128xbf16> to vector<128x128xbf16>
    %cst_24 = arith.constant dense<0.000000e+00> : vector<64x128xf32>
    %24 = tpu.matmul %20, %23, %cst_24 {dimension_numbers = #tpu.dot_dimension_numbers<[1], [0], [0], [1], [0, 0, 1, 1], [], []>} : vector<64x128xbf16>, vector<128x128xbf16>, vector<64x128xf32> -> vector<64x128xf32>
    %25 = arith.addf %21, %24 : vector<64x128xf32>
    %c0_25 = arith.constant 0 : index
    %c0_26 = arith.constant 0 : index
    %26 = vector.load %arg9[%c0_25, %c0_26] : memref<64x128xf32, #tpu.memory_space<vmem>>, vector<64x128xf32>
    tpu.vector_store %arg9[%c0_25, %c0_26], %25 {strides = array<i32>} : memref<64x128xf32, #tpu.memory_space<vmem>>, vector<64x128xf32>,
    %c0_27 = arith.constant 0 : index
    %c1_28 = arith.constant 1 : index
    %c0_29 = arith.constant 0 : index
    %27 = vector.load %arg8[%c0_27, %c1_28, %c0_29] : memref<10x10x128xbf16, #tpu.memory_space<vmem>>, vector<8x8x128xbf16>
    %28 = vector.shape_cast %27 : vector<8x8x128xbf16> to vector<64x128xbf16>
    %c0_30 = arith.constant 0 : index
    %c0_31 = arith.constant 0 : index
    %29 = vector.load %arg9[%c0_30, %c0_31] : memref<64x128xf32, #tpu.memory_space<vmem>>, vector<64x128xf32>
    %c1_32 = arith.constant 1 : index
    %c0_33 = arith.constant 0 : index
    %c0_34 = arith.constant 0 : index
    %30 = vector.load %arg2[%c1_32, %c0_33, %c0_34] : memref<9x128x128xbf16, #tpu.memory_space<vmem>>, vector<1x128x128xbf16>
    %31 = vector.shape_cast %30 : vector<1x128x128xbf16> to vector<128x128xbf16>
    %cst_35 = arith.constant dense<0.000000e+00> : vector<64x128xf32>
    %32 = tpu.matmul %28, %31, %cst_35 {dimension_numbers = #tpu.dot_dimension_numbers<[1], [0], [0], [1], [0, 0, 1, 1], [], []>} : vector<64x128xbf16>, vector<128x128xbf16>, vector<64x128xf32> -> vector<64x128xf32>
    %33 = arith.addf %29, %32 : vector<64x128xf32>
    %c0_36 = arith.constant 0 : index
    %c0_37 = arith.constant 0 : index
    %34 = vector.load %arg9[%c0_36, %c0_37] : memref<64x128xf32, #tpu.memory_space<vmem>>, vector<64x128xf32>
    tpu.vector_store %arg9[%c0_36, %c0_37], %33 {strides = array<i32>} : memref<64x128xf32, #tpu.memory_space<vmem>>, vector<64x128xf32>,
    %c0_38 = arith.constant 0 : index
    %c2 = arith.constant 2 : index
    %c0_39 = arith.constant 0 : index
    %35 = vector.load %arg8[%c0_38, %c2, %c0_39] : memref<10x10x128xbf16, #tpu.memory_space<vmem>>, vector<8x8x128xbf16>
    %36 = vector.shape_cast %35 : vector<8x8x128xbf16> to vector<64x128xbf16>
    %c0_40 = arith.constant 0 : index
    %c0_41 = arith.constant 0 : index
    %37 = vector.load %arg9[%c0_40, %c0_41] : memref<64x128xf32, #tpu.memory_space<vmem>>, vector<64x128xf32>
    %c2_42 = arith.constant 2 : index
    %c0_43 = arith.constant 0 : index
    %c0_44 = arith.constant 0 : index
    %38 = vector.load %arg2[%c2_42, %c0_43, %c0_44] : memref<9x128x128xbf16, #tpu.memory_space<vmem>>, vector<1x128x128xbf16>
    %39 = vector.shape_cast %38 : vector<1x128x128xbf16> to vector<128x128xbf16>
    %cst_45 = arith.constant dense<0.000000e+00> : vector<64x128xf32>
    %40 = tpu.matmul %36, %39, %cst_45 {dimension_numbers = #tpu.dot_dimension_numbers<[1], [0], [0], [1], [0, 0, 1, 1], [], []>} : vector<64x128xbf16>, vector<128x128xbf16>, vector<64x128xf32> -> vector<64x128xf32>
    %41 = arith.addf %37, %40 : vector<64x128xf32>
    %c0_46 = arith.constant 0 : index
    %c0_47 = arith.constant 0 : index
    %42 = vector.load %arg9[%c0_46, %c0_47] : memref<64x128xf32, #tpu.memory_space<vmem>>, vector<64x128xf32>
    tpu.vector_store %arg9[%c0_46, %c0_47], %41 {strides = array<i32>} : memref<64x128xf32, #tpu.memory_space<vmem>>, vector<64x128xf32>,
    %c1_48 = arith.constant 1 : index
    %c0_49 = arith.constant 0 : index
    %c0_50 = arith.constant 0 : index
    %43 = vector.load %arg8[%c1_48, %c0_49, %c0_50] : memref<10x10x128xbf16, #tpu.memory_space<vmem>>, vector<8x8x128xbf16>
    %44 = vector.shape_cast %43 : vector<8x8x128xbf16> to vector<64x128xbf16>
    %c0_51 = arith.constant 0 : index
    %c0_52 = arith.constant 0 : index
    %45 = vector.load %arg9[%c0_51, %c0_52] : memref<64x128xf32, #tpu.memory_space<vmem>>, vector<64x128xf32>
    %c3 = arith.constant 3 : index
    %c0_53 = arith.constant 0 : index
    %c0_54 = arith.constant 0 : index
    %46 = vector.load %arg2[%c3, %c0_53, %c0_54] : memref<9x128x128xbf16, #tpu.memory_space<vmem>>, vector<1x128x128xbf16>
    %47 = vector.shape_cast %46 : vector<1x128x128xbf16> to vector<128x128xbf16>
    %cst_55 = arith.constant dense<0.000000e+00> : vector<64x128xf32>
    %48 = tpu.matmul %44, %47, %cst_55 {dimension_numbers = #tpu.dot_dimension_numbers<[1], [0], [0], [1], [0, 0, 1, 1], [], []>} : vector<64x128xbf16>, vector<128x128xbf16>, vector<64x128xf32> -> vector<64x128xf32>
    %49 = arith.addf %45, %48 : vector<64x128xf32>
    %c0_56 = arith.constant 0 : index
    %c0_57 = arith.constant 0 : index
    %50 = vector.load %arg9[%c0_56, %c0_57] : memref<64x128xf32, #tpu.memory_space<vmem>>, vector<64x128xf32>
    tpu.vector_store %arg9[%c0_56, %c0_57], %49 {strides = array<i32>} : memref<64x128xf32, #tpu.memory_space<vmem>>, vector<64x128xf32>,
    %c1_58 = arith.constant 1 : index
    %c1_59 = arith.constant 1 : index
    %c0_60 = arith.constant 0 : index
    %51 = vector.load %arg8[%c1_58, %c1_59, %c0_60] : memref<10x10x128xbf16, #tpu.memory_space<vmem>>, vector<8x8x128xbf16>
    %52 = vector.shape_cast %51 : vector<8x8x128xbf16> to vector<64x128xbf16>
    %c0_61 = arith.constant 0 : index
    %c0_62 = arith.constant 0 : index
    %53 = vector.load %arg9[%c0_61, %c0_62] : memref<64x128xf32, #tpu.memory_space<vmem>>, vector<64x128xf32>
    %c4 = arith.constant 4 : index
    %c0_63 = arith.constant 0 : index
    %c0_64 = arith.constant 0 : index
    %54 = vector.load %arg2[%c4, %c0_63, %c0_64] : memref<9x128x128xbf16, #tpu.memory_space<vmem>>, vector<1x128x128xbf16>
    %55 = vector.shape_cast %54 : vector<1x128x128xbf16> to vector<128x128xbf16>
    %cst_65 = arith.constant dense<0.000000e+00> : vector<64x128xf32>
    %56 = tpu.matmul %52, %55, %cst_65 {dimension_numbers = #tpu.dot_dimension_numbers<[1], [0], [0], [1], [0, 0, 1, 1], [], []>} : vector<64x128xbf16>, vector<128x128xbf16>, vector<64x128xf32> -> vector<64x128xf32>
    %57 = arith.addf %53, %56 : vector<64x128xf32>
    %c0_66 = arith.constant 0 : index
    %c0_67 = arith.constant 0 : index
    %58 = vector.load %arg9[%c0_66, %c0_67] : memref<64x128xf32, #tpu.memory_space<vmem>>, vector<64x128xf32>
    tpu.vector_store %arg9[%c0_66, %c0_67], %57 {strides = array<i32>} : memref<64x128xf32, #tpu.memory_space<vmem>>, vector<64x128xf32>,
    %c1_68 = arith.constant 1 : index
    %c2_69 = arith.constant 2 : index
    %c0_70 = arith.constant 0 : index
    %59 = vector.load %arg8[%c1_68, %c2_69, %c0_70] : memref<10x10x128xbf16, #tpu.memory_space<vmem>>, vector<8x8x128xbf16>
    %60 = vector.shape_cast %59 : vector<8x8x128xbf16> to vector<64x128xbf16>
    %c0_71 = arith.constant 0 : index
    %c0_72 = arith.constant 0 : index
    %61 = vector.load %arg9[%c0_71, %c0_72] : memref<64x128xf32, #tpu.memory_space<vmem>>, vector<64x128xf32>
    %c5 = arith.constant 5 : index
    %c0_73 = arith.constant 0 : index
    %c0_74 = arith.constant 0 : index
    %62 = vector.load %arg2[%c5, %c0_73, %c0_74] : memref<9x128x128xbf16, #tpu.memory_space<vmem>>, vector<1x128x128xbf16>
    %63 = vector.shape_cast %62 : vector<1x128x128xbf16> to vector<128x128xbf16>
    %cst_75 = arith.constant dense<0.000000e+00> : vector<64x128xf32>
    %64 = tpu.matmul %60, %63, %cst_75 {dimension_numbers = #tpu.dot_dimension_numbers<[1], [0], [0], [1], [0, 0, 1, 1], [], []>} : vector<64x128xbf16>, vector<128x128xbf16>, vector<64x128xf32> -> vector<64x128xf32>
    %65 = arith.addf %61, %64 : vector<64x128xf32>
    %c0_76 = arith.constant 0 : index
    %c0_77 = arith.constant 0 : index
    %66 = vector.load %arg9[%c0_76, %c0_77] : memref<64x128xf32, #tpu.memory_space<vmem>>, vector<64x128xf32>
    tpu.vector_store %arg9[%c0_76, %c0_77], %65 {strides = array<i32>} : memref<64x128xf32, #tpu.memory_space<vmem>>, vector<64x128xf32>,
    %c2_78 = arith.constant 2 : index
    %c0_79 = arith.constant 0 : index
    %c0_80 = arith.constant 0 : index
    %67 = vector.load %arg8[%c2_78, %c0_79, %c0_80] : memref<10x10x128xbf16, #tpu.memory_space<vmem>>, vector<8x8x128xbf16>
    %68 = vector.shape_cast %67 : vector<8x8x128xbf16> to vector<64x128xbf16>
    %c0_81 = arith.constant 0 : index
    %c0_82 = arith.constant 0 : index
    %69 = vector.load %arg9[%c0_81, %c0_82] : memref<64x128xf32, #tpu.memory_space<vmem>>, vector<64x128xf32>
    %c6 = arith.constant 6 : index
    %c0_83 = arith.constant 0 : index
    %c0_84 = arith.constant 0 : index
    %70 = vector.load %arg2[%c6, %c0_83, %c0_84] : memref<9x128x128xbf16, #tpu.memory_space<vmem>>, vector<1x128x128xbf16>
    %71 = vector.shape_cast %70 : vector<1x128x128xbf16> to vector<128x128xbf16>
    %cst_85 = arith.constant dense<0.000000e+00> : vector<64x128xf32>
    %72 = tpu.matmul %68, %71, %cst_85 {dimension_numbers = #tpu.dot_dimension_numbers<[1], [0], [0], [1], [0, 0, 1, 1], [], []>} : vector<64x128xbf16>, vector<128x128xbf16>, vector<64x128xf32> -> vector<64x128xf32>
    %73 = arith.addf %69, %72 : vector<64x128xf32>
    %c0_86 = arith.constant 0 : index
    %c0_87 = arith.constant 0 : index
    %74 = vector.load %arg9[%c0_86, %c0_87] : memref<64x128xf32, #tpu.memory_space<vmem>>, vector<64x128xf32>
    tpu.vector_store %arg9[%c0_86, %c0_87], %73 {strides = array<i32>} : memref<64x128xf32, #tpu.memory_space<vmem>>, vector<64x128xf32>,
    %c2_88 = arith.constant 2 : index
    %c1_89 = arith.constant 1 : index
    %c0_90 = arith.constant 0 : index
    %75 = vector.load %arg8[%c2_88, %c1_89, %c0_90] : memref<10x10x128xbf16, #tpu.memory_space<vmem>>, vector<8x8x128xbf16>
    %76 = vector.shape_cast %75 : vector<8x8x128xbf16> to vector<64x128xbf16>
    %c0_91 = arith.constant 0 : index
    %c0_92 = arith.constant 0 : index
    %77 = vector.load %arg9[%c0_91, %c0_92] : memref<64x128xf32, #tpu.memory_space<vmem>>, vector<64x128xf32>
    %c7 = arith.constant 7 : index
    %c0_93 = arith.constant 0 : index
    %c0_94 = arith.constant 0 : index
    %78 = vector.load %arg2[%c7, %c0_93, %c0_94] : memref<9x128x128xbf16, #tpu.memory_space<vmem>>, vector<1x128x128xbf16>
    %79 = vector.shape_cast %78 : vector<1x128x128xbf16> to vector<128x128xbf16>
    %cst_95 = arith.constant dense<0.000000e+00> : vector<64x128xf32>
    %80 = tpu.matmul %76, %79, %cst_95 {dimension_numbers = #tpu.dot_dimension_numbers<[1], [0], [0], [1], [0, 0, 1, 1], [], []>} : vector<64x128xbf16>, vector<128x128xbf16>, vector<64x128xf32> -> vector<64x128xf32>
    %81 = arith.addf %77, %80 : vector<64x128xf32>
    %c0_96 = arith.constant 0 : index
    %c0_97 = arith.constant 0 : index
    %82 = vector.load %arg9[%c0_96, %c0_97] : memref<64x128xf32, #tpu.memory_space<vmem>>, vector<64x128xf32>
    tpu.vector_store %arg9[%c0_96, %c0_97], %81 {strides = array<i32>} : memref<64x128xf32, #tpu.memory_space<vmem>>, vector<64x128xf32>,
    %c2_98 = arith.constant 2 : index
    %c2_99 = arith.constant 2 : index
    %c0_100 = arith.constant 0 : index
    %83 = vector.load %arg8[%c2_98, %c2_99, %c0_100] : memref<10x10x128xbf16, #tpu.memory_space<vmem>>, vector<8x8x128xbf16>
    %84 = vector.shape_cast %83 : vector<8x8x128xbf16> to vector<64x128xbf16>
    %c0_101 = arith.constant 0 : index
    %c0_102 = arith.constant 0 : index
    %85 = vector.load %arg9[%c0_101, %c0_102] : memref<64x128xf32, #tpu.memory_space<vmem>>, vector<64x128xf32>
    %c8 = arith.constant 8 : index
    %c0_103 = arith.constant 0 : index
    %c0_104 = arith.constant 0 : index
    %86 = vector.load %arg2[%c8, %c0_103, %c0_104] : memref<9x128x128xbf16, #tpu.memory_space<vmem>>, vector<1x128x128xbf16>
    %87 = vector.shape_cast %86 : vector<1x128x128xbf16> to vector<128x128xbf16>
    %cst_105 = arith.constant dense<0.000000e+00> : vector<64x128xf32>
    %88 = tpu.matmul %84, %87, %cst_105 {dimension_numbers = #tpu.dot_dimension_numbers<[1], [0], [0], [1], [0, 0, 1, 1], [], []>} : vector<64x128xbf16>, vector<128x128xbf16>, vector<64x128xf32> -> vector<64x128xf32>
    %89 = arith.addf %85, %88 : vector<64x128xf32>
    %c0_106 = arith.constant 0 : index
    %c0_107 = arith.constant 0 : index
    %90 = vector.load %arg9[%c0_106, %c0_107] : memref<64x128xf32, #tpu.memory_space<vmem>>, vector<64x128xf32>
    tpu.vector_store %arg9[%c0_106, %c0_107], %89 {strides = array<i32>} : memref<64x128xf32, #tpu.memory_space<vmem>>, vector<64x128xf32>,
    %c0_108 = arith.constant 0 : index
    %c0_109 = arith.constant 0 : index
    %91 = vector.load %arg9[%c0_108, %c0_109] : memref<64x128xf32, #tpu.memory_space<vmem>>, vector<64x128xf32>
    %92 = arith.truncf %91 : vector<64x128xf32> to vector<64x128xbf16>
    %c0_110 = arith.constant 0 : index
    %c0_111 = arith.constant 0 : index
    %93 = vector.load %arg5[%c0_110, %c0_111] : memref<64x128xbf16, #tpu.memory_space<vmem>>, vector<64x128xbf16>
    tpu.vector_store %arg5[%c0_110, %c0_111], %92 {strides = array<i32>} : memref<64x128xbf16, #tpu.memory_space<vmem>>, vector<64x128xbf16>,
    %cst_112 = arith.constant dense<0.000000e+00> : vector<128xf32>
    %94 = vector.multi_reduction <add>, %91, %cst_112 [0] : vector<64x128xf32> to vector<128xf32>
    %95 = vector.shape_cast %94 : vector<128xf32> to vector<1x128xf32>
    %96 = vector.shape_cast %95 : vector<1x128xf32> to vector<1x1x128xf32>
    %c0_113 = arith.constant 0 : index
    %c0_114 = arith.constant 0 : index
    %c0_115 = arith.constant 0 : index
    %97 = vector.load %arg6[%c0_113, %c0_114, %c0_115] : memref<1x1x128xf32, #tpu.memory_space<vmem>>, vector<1x1x128xf32>
    tpu.vector_store %arg6[%c0_113, %c0_114, %c0_115], %96 {strides = array<i32>} : memref<1x1x128xf32, #tpu.memory_space<vmem>>, vector<1x1x128xf32>,
    %98 = arith.mulf %91, %91 : vector<64x128xf32>
    %cst_116 = arith.constant dense<0.000000e+00> : vector<128xf32>
    %99 = vector.multi_reduction <add>, %98, %cst_116 [0] : vector<64x128xf32> to vector<128xf32>
    %100 = vector.shape_cast %99 : vector<128xf32> to vector<1x128xf32>
    %101 = vector.shape_cast %100 : vector<1x128xf32> to vector<1x1x128xf32>
    %c0_117 = arith.constant 0 : index
    %c0_118 = arith.constant 0 : index
    %c0_119 = arith.constant 0 : index
    %102 = vector.load %arg7[%c0_117, %c0_118, %c0_119] : memref<1x1x128xf32, #tpu.memory_space<vmem>>, vector<1x1x128xf32>
    tpu.vector_store %arg7[%c0_117, %c0_118, %c0_119], %101 {strides = array<i32>} : memref<1x1x128xf32, #tpu.memory_space<vmem>>, vector<1x1x128xf32>,
    return
  }
  func.func @transform_0(%arg0: i32) -> (i32, i32, i32, i32) {
    %c0_i32 = arith.constant 0 : i32
    %c0_i32_0 = arith.constant 0 : i32
    %c0_i32_1 = arith.constant 0 : i32
    %c0_i32_2 = arith.constant 0 : i32
    return %arg0, %c0_i32, %c0_i32_0, %c0_i32_1 : i32, i32, i32, i32
  }
  func.func @transform_1(%arg0: i32) -> (i32, i32, i32) {
    %c0_i32 = arith.constant 0 : i32
    %c0_i32_0 = arith.constant 0 : i32
    %c0_i32_1 = arith.constant 0 : i32
    %c0_i32_2 = arith.constant 0 : i32
    return %c0_i32, %c0_i32_0, %c0_i32_1 : i32, i32, i32
  }
  func.func @transform_2(%arg0: i32) -> (i32, i32) {
    %c0_i32 = arith.constant 0 : i32
    %c0_i32_0 = arith.constant 0 : i32
    %c0_i32_1 = arith.constant 0 : i32
    return %c0_i32, %c0_i32_0 : i32, i32
  }
  func.func @transform_3(%arg0: i32) -> (i32, i32) {
    %c0_i32 = arith.constant 0 : i32
    %c0_i32_0 = arith.constant 0 : i32
    %c0_i32_1 = arith.constant 0 : i32
    return %c0_i32, %c0_i32_0 : i32, i32
  }
  func.func @transform_4(%arg0: i32) -> (i32, i32) {
    %c0_i32 = arith.constant 0 : i32
    %c0_i32_0 = arith.constant 0 : i32
    return %arg0, %c0_i32 : i32, i32
  }
  func.func @transform_5(%arg0: i32) -> (i32, i32, i32) {
    %c0_i32 = arith.constant 0 : i32
    %c0_i32_0 = arith.constant 0 : i32
    %c0_i32_1 = arith.constant 0 : i32
    return %arg0, %c0_i32, %c0_i32_0 : i32, i32, i32
  }
  func.func @transform_6(%arg0: i32) -> (i32, i32, i32) {
    %c0_i32 = arith.constant 0 : i32
    %c0_i32_0 = arith.constant 0 : i32
    %c0_i32_1 = arith.constant 0 : i32
    return %arg0, %c0_i32, %c0_i32_0 : i32, i32, i32
  }
}

module attributes {stable_mosaic.version = 11 : i64} {
  func.func @_mm_bn_stats_kernel(%arg0: i32, %arg1: memref<128x128xbf16, #tpu.memory_space<vmem>>, %arg2: memref<128x128xbf16, #tpu.memory_space<vmem>>, %arg3: memref<1x128xf32, #tpu.memory_space<vmem>>, %arg4: memref<1x128xf32, #tpu.memory_space<vmem>>, %arg5: memref<128x128xbf16, #tpu.memory_space<vmem>>, %arg6: memref<1x1x128xf32, #tpu.memory_space<vmem>>, %arg7: memref<1x1x128xf32, #tpu.memory_space<vmem>>) attributes {dimension_semantics = [#tpu.dimension_semantics<parallel>], iteration_bounds = array<i64: 1>, scalar_prefetch = 0 : i64, scratch_operands = 0 : i64, tpu.core_type = #tpu.core_type<tc>, window_params = [{transform_indices = @transform_0, window_bounds = array<i64: 128, 128>}, {pipeline_mode = #tpu.pipeline_mode<synchronous>, transform_indices = @transform_1, window_bounds = array<i64: 128, 128>}, {pipeline_mode = #tpu.pipeline_mode<synchronous>, transform_indices = @transform_2, window_bounds = array<i64: 1, 128>}, {pipeline_mode = #tpu.pipeline_mode<synchronous>, transform_indices = @transform_3, window_bounds = array<i64: 1, 128>}, {transform_indices = @transform_4, window_bounds = array<i64: 128, 128>}, {transform_indices = @transform_5, window_bounds = array<i64: 1, 1, 128>}, {transform_indices = @transform_6, window_bounds = array<i64: 1, 1, 128>}]} {
    %c0 = arith.constant 0 : index
    %c0_0 = arith.constant 0 : index
    %0 = vector.load %arg1[%c0, %c0_0] : memref<128x128xbf16, #tpu.memory_space<vmem>>, vector<128x128xbf16>
    %1 = arith.extf %0 : vector<128x128xbf16> to vector<128x128xf32>
    %c0_1 = arith.constant 0 : index
    %c0_2 = arith.constant 0 : index
    %2 = vector.load %arg3[%c0_1, %c0_2] : memref<1x128xf32, #tpu.memory_space<vmem>>, vector<1x128xf32>
    %3 = vector.broadcast %2 : vector<1x128xf32> to vector<128x128xf32>
    %4 = arith.mulf %1, %3 : vector<128x128xf32>
    %c0_3 = arith.constant 0 : index
    %c0_4 = arith.constant 0 : index
    %5 = vector.load %arg4[%c0_3, %c0_4] : memref<1x128xf32, #tpu.memory_space<vmem>>, vector<1x128xf32>
    %6 = vector.broadcast %5 : vector<1x128xf32> to vector<128x128xf32>
    %7 = arith.addf %4, %6 : vector<128x128xf32>
    %cst = arith.constant 0.000000e+00 : f32
    %8 = vector.broadcast %cst : f32 to vector<128x128xf32>
    %9 = arith.maximumf %7, %8 : vector<128x128xf32>
    %10 = arith.truncf %9 : vector<128x128xf32> to vector<128x128xbf16>
    %c0_5 = arith.constant 0 : index
    %c0_6 = arith.constant 0 : index
    %11 = vector.load %arg2[%c0_5, %c0_6] : memref<128x128xbf16, #tpu.memory_space<vmem>>, vector<128x128xbf16>
    %cst_7 = arith.constant dense<0.000000e+00> : vector<128x128xf32>
    %12 = tpu.matmul %10, %11, %cst_7 {dimension_numbers = #tpu.dot_dimension_numbers<[1], [0], [0], [1], [0, 0, 1, 1], [], []>} : vector<128x128xbf16>, vector<128x128xbf16>, vector<128x128xf32> -> vector<128x128xf32>
    %13 = arith.truncf %12 : vector<128x128xf32> to vector<128x128xbf16>
    %c0_8 = arith.constant 0 : index
    %c0_9 = arith.constant 0 : index
    %14 = vector.load %arg5[%c0_8, %c0_9] : memref<128x128xbf16, #tpu.memory_space<vmem>>, vector<128x128xbf16>
    tpu.vector_store %arg5[%c0_8, %c0_9], %13 {strides = array<i32>} : memref<128x128xbf16, #tpu.memory_space<vmem>>, vector<128x128xbf16>,
    %cst_10 = arith.constant dense<0.000000e+00> : vector<128xf32>
    %15 = vector.multi_reduction <add>, %12, %cst_10 [0] : vector<128x128xf32> to vector<128xf32>
    %16 = vector.shape_cast %15 : vector<128xf32> to vector<1x128xf32>
    %17 = vector.shape_cast %16 : vector<1x128xf32> to vector<1x1x128xf32>
    %c0_11 = arith.constant 0 : index
    %c0_12 = arith.constant 0 : index
    %c0_13 = arith.constant 0 : index
    %18 = vector.load %arg6[%c0_11, %c0_12, %c0_13] : memref<1x1x128xf32, #tpu.memory_space<vmem>>, vector<1x1x128xf32>
    tpu.vector_store %arg6[%c0_11, %c0_12, %c0_13], %17 {strides = array<i32>} : memref<1x1x128xf32, #tpu.memory_space<vmem>>, vector<1x1x128xf32>,
    %19 = arith.mulf %12, %12 : vector<128x128xf32>
    %cst_14 = arith.constant dense<0.000000e+00> : vector<128xf32>
    %20 = vector.multi_reduction <add>, %19, %cst_14 [0] : vector<128x128xf32> to vector<128xf32>
    %21 = vector.shape_cast %20 : vector<128xf32> to vector<1x128xf32>
    %22 = vector.shape_cast %21 : vector<1x128xf32> to vector<1x1x128xf32>
    %c0_15 = arith.constant 0 : index
    %c0_16 = arith.constant 0 : index
    %c0_17 = arith.constant 0 : index
    %23 = vector.load %arg7[%c0_15, %c0_16, %c0_17] : memref<1x1x128xf32, #tpu.memory_space<vmem>>, vector<1x1x128xf32>
    tpu.vector_store %arg7[%c0_15, %c0_16, %c0_17], %22 {strides = array<i32>} : memref<1x1x128xf32, #tpu.memory_space<vmem>>, vector<1x1x128xf32>,
    return
  }
  func.func @transform_0(%arg0: i32) -> (i32, i32) {
    %c0_i32 = arith.constant 0 : i32
    %c0_i32_0 = arith.constant 0 : i32
    return %arg0, %c0_i32 : i32, i32
  }
  func.func @transform_1(%arg0: i32) -> (i32, i32) {
    %c0_i32 = arith.constant 0 : i32
    %c0_i32_0 = arith.constant 0 : i32
    %c0_i32_1 = arith.constant 0 : i32
    return %c0_i32, %c0_i32_0 : i32, i32
  }
  func.func @transform_2(%arg0: i32) -> (i32, i32) {
    %c0_i32 = arith.constant 0 : i32
    %c0_i32_0 = arith.constant 0 : i32
    %c0_i32_1 = arith.constant 0 : i32
    return %c0_i32, %c0_i32_0 : i32, i32
  }
  func.func @transform_3(%arg0: i32) -> (i32, i32) {
    %c0_i32 = arith.constant 0 : i32
    %c0_i32_0 = arith.constant 0 : i32
    %c0_i32_1 = arith.constant 0 : i32
    return %c0_i32, %c0_i32_0 : i32, i32
  }
  func.func @transform_4(%arg0: i32) -> (i32, i32) {
    %c0_i32 = arith.constant 0 : i32
    %c0_i32_0 = arith.constant 0 : i32
    return %arg0, %c0_i32 : i32, i32
  }
  func.func @transform_5(%arg0: i32) -> (i32, i32, i32) {
    %c0_i32 = arith.constant 0 : i32
    %c0_i32_0 = arith.constant 0 : i32
    %c0_i32_1 = arith.constant 0 : i32
    return %arg0, %c0_i32, %c0_i32_0 : i32, i32, i32
  }
  func.func @transform_6(%arg0: i32) -> (i32, i32, i32) {
    %c0_i32 = arith.constant 0 : i32
    %c0_i32_0 = arith.constant 0 : i32
    %c0_i32_1 = arith.constant 0 : i32
    return %arg0, %c0_i32, %c0_i32_0 : i32, i32, i32
  }
}

module attributes {stable_mosaic.version = 11 : i64} {
  func.func @_bn_add_relu_kernel(%arg0: i32, %arg1: memref<128x128xbf16, #tpu.memory_space<vmem>>, %arg2: memref<128x128xbf16, #tpu.memory_space<vmem>>, %arg3: memref<1x128xf32, #tpu.memory_space<vmem>>, %arg4: memref<1x128xf32, #tpu.memory_space<vmem>>, %arg5: memref<1x128xf32, #tpu.memory_space<vmem>>, %arg6: memref<1x128xf32, #tpu.memory_space<vmem>>, %arg7: memref<128x32xf32, #tpu.memory_space<vmem>>) attributes {dimension_semantics = [#tpu.dimension_semantics<parallel>], iteration_bounds = array<i64: 1>, scalar_prefetch = 0 : i64, scratch_operands = 0 : i64, tpu.core_type = #tpu.core_type<tc>, window_params = [{transform_indices = @transform_0, window_bounds = array<i64: 128, 128>}, {transform_indices = @transform_1, window_bounds = array<i64: 128, 128>}, {pipeline_mode = #tpu.pipeline_mode<synchronous>, transform_indices = @transform_2, window_bounds = array<i64: 1, 128>}, {pipeline_mode = #tpu.pipeline_mode<synchronous>, transform_indices = @transform_3, window_bounds = array<i64: 1, 128>}, {pipeline_mode = #tpu.pipeline_mode<synchronous>, transform_indices = @transform_4, window_bounds = array<i64: 1, 128>}, {pipeline_mode = #tpu.pipeline_mode<synchronous>, transform_indices = @transform_5, window_bounds = array<i64: 1, 128>}, {transform_indices = @transform_6, window_bounds = array<i64: 128, 32>}]} {
    %c0 = arith.constant 0 : index
    %c0_0 = arith.constant 0 : index
    %0 = vector.load %arg1[%c0, %c0_0] : memref<128x128xbf16, #tpu.memory_space<vmem>>, vector<128x128xbf16>
    %1 = arith.extf %0 : vector<128x128xbf16> to vector<128x128xf32>
    %c0_1 = arith.constant 0 : index
    %c0_2 = arith.constant 0 : index
    %2 = vector.load %arg3[%c0_1, %c0_2] : memref<1x128xf32, #tpu.memory_space<vmem>>, vector<1x128xf32>
    %3 = vector.broadcast %2 : vector<1x128xf32> to vector<128x128xf32>
    %4 = arith.mulf %1, %3 : vector<128x128xf32>
    %c0_3 = arith.constant 0 : index
    %c0_4 = arith.constant 0 : index
    %5 = vector.load %arg4[%c0_3, %c0_4] : memref<1x128xf32, #tpu.memory_space<vmem>>, vector<1x128xf32>
    %6 = vector.broadcast %5 : vector<1x128xf32> to vector<128x128xf32>
    %7 = arith.addf %4, %6 : vector<128x128xf32>
    %c0_5 = arith.constant 0 : index
    %c0_6 = arith.constant 0 : index
    %8 = vector.load %arg2[%c0_5, %c0_6] : memref<128x128xbf16, #tpu.memory_space<vmem>>, vector<128x128xbf16>
    %9 = arith.extf %8 : vector<128x128xbf16> to vector<128x128xf32>
    %c0_7 = arith.constant 0 : index
    %c0_8 = arith.constant 0 : index
    %10 = vector.load %arg5[%c0_7, %c0_8] : memref<1x128xf32, #tpu.memory_space<vmem>>, vector<1x128xf32>
    %11 = vector.broadcast %10 : vector<1x128xf32> to vector<128x128xf32>
    %12 = arith.mulf %9, %11 : vector<128x128xf32>
    %c0_9 = arith.constant 0 : index
    %c0_10 = arith.constant 0 : index
    %13 = vector.load %arg6[%c0_9, %c0_10] : memref<1x128xf32, #tpu.memory_space<vmem>>, vector<1x128xf32>
    %14 = vector.broadcast %13 : vector<1x128xf32> to vector<128x128xf32>
    %15 = arith.addf %12, %14 : vector<128x128xf32>
    %16 = vector.extract_strided_slice %7 {offsets = [0, 0], sizes = [128, 32], strides = [1, 1]} : vector<128x128xf32> to vector<128x32xf32>
    %17 = vector.extract_strided_slice %15 {offsets = [0, 0], sizes = [128, 32], strides = [1, 1]} : vector<128x128xf32> to vector<128x32xf32>
    %18 = arith.addf %16, %17 : vector<128x32xf32>
    %cst = arith.constant 0.000000e+00 : f32
    %19 = vector.broadcast %cst : f32 to vector<128x32xf32>
    %20 = arith.maximumf %18, %19 : vector<128x32xf32>
    %c0_11 = arith.constant 0 : index
    %c0_12 = arith.constant 0 : index
    %21 = vector.load %arg7[%c0_11, %c0_12] : memref<128x32xf32, #tpu.memory_space<vmem>>, vector<128x32xf32>
    tpu.vector_store %arg7[%c0_11, %c0_12], %20 {strides = array<i32>} : memref<128x32xf32, #tpu.memory_space<vmem>>, vector<128x32xf32>,
    return
  }
  func.func @transform_0(%arg0: i32) -> (i32, i32) {
    %c0_i32 = arith.constant 0 : i32
    %c0_i32_0 = arith.constant 0 : i32
    return %arg0, %c0_i32 : i32, i32
  }
  func.func @transform_1(%arg0: i32) -> (i32, i32) {
    %c0_i32 = arith.constant 0 : i32
    %c0_i32_0 = arith.constant 0 : i32
    return %arg0, %c0_i32 : i32, i32
  }
  func.func @transform_2(%arg0: i32) -> (i32, i32) {
    %c0_i32 = arith.constant 0 : i32
    %c0_i32_0 = arith.constant 0 : i32
    %c0_i32_1 = arith.constant 0 : i32
    return %c0_i32, %c0_i32_0 : i32, i32
  }
  func.func @transform_3(%arg0: i32) -> (i32, i32) {
    %c0_i32 = arith.constant 0 : i32
    %c0_i32_0 = arith.constant 0 : i32
    %c0_i32_1 = arith.constant 0 : i32
    return %c0_i32, %c0_i32_0 : i32, i32
  }
  func.func @transform_4(%arg0: i32) -> (i32, i32) {
    %c0_i32 = arith.constant 0 : i32
    %c0_i32_0 = arith.constant 0 : i32
    %c0_i32_1 = arith.constant 0 : i32
    return %c0_i32, %c0_i32_0 : i32, i32
  }
  func.func @transform_5(%arg0: i32) -> (i32, i32) {
    %c0_i32 = arith.constant 0 : i32
    %c0_i32_0 = arith.constant 0 : i32
    %c0_i32_1 = arith.constant 0 : i32
    return %c0_i32, %c0_i32_0 : i32, i32
  }
  func.func @transform_6(%arg0: i32) -> (i32, i32) {
    %c0_i32 = arith.constant 0 : i32
    %c0_i32_0 = arith.constant 0 : i32
    return %arg0, %c0_i32 : i32, i32
  }
}

</mosaic_0001>

<bundles_post_ra>
// kernel: bottleneck_forward.5
= control target key start
LH: loop header
LB: loop body
LE: loop exit
PB: predicated region body
PF: predicated region fallthrough
CT: control target
= control target key end

     0   :  { %s499_s1 = inlined_call_operand.vmem [shape: bf16[128,128], index: 1, kind: input, shape index: {}]   ;;  %s500_s0 = inlined_call_operand.vmem [shape: f32[128,128], index: 0, kind: input, shape index: {}]   ;;  %s501_s2 = inlined_call_operand.vmem [shape: bf16[128,128], index: 2, kind: output, shape index: {0}]   ;;  %s502_s3 = inlined_call_operand.vmem [shape: f32[1,1,128], index: 3, kind: output, shape index: {1}]   ;;  %s503_s4 = inlined_call_operand.vmem [shape: f32[1,1,128], index: 4, kind: output, shape index: {2}]  }
   0x1   :  { %v294_v0 = vld [vmem:[%s499_s1 + $0x38] sm:$0xff]  ;;  %v293_v1 = vld [vmem:[%s499_s1 + $0x30] sm:$0xff]  ;;  %v292_v2 = vld [vmem:[%s499_s1 + $0x28] sm:$0xff] }
   0x2   :  { %102 = vmatpush.bf16.msra.mxu0 %v294_v0  ;;  %342 = vmatpush.bf16.msra.mxu1 %v294_v0  ;;  %v291_v3 = vld [vmem:[%s499_s1 + $0x20] sm:$0xff]  ;;  %v290_v4 = vld [vmem:[%s499_s1 + $0x18] sm:$0xff]  ;;  %v289_v5 = vld [vmem:[%s499_s1 + $0x10] sm:$0xff] }
   0x3   :  { %343 = vmatpush.bf16.msra.mxu2 %v294_v0  ;;  %344 = vmatpush.bf16.msra.mxu3 %v294_v0  ;;  %v288_v6 = vld [vmem:[%s499_s1 + $0x8] sm:$0xff]  ;;  %v287_v7 = vld [vmem:[%s499_s1] sm:$0xff]  ;;  %v16_v20 = vld [vmem:[%s500_s0 + $0x10] sm:$0xff] }
   0x4   :  { %v14_v8 = vld [vmem:[%s500_s0] sm:$0xff]  ;;  %v15_v9 = vld [vmem:[%s500_s0 + $0x8] sm:$0xff]  ;;  %v17_v21 = vld [vmem:[%s500_s0 + $0x18] sm:$0xff] }
   0x5   :  { %v18_v10 = vld [vmem:[%s500_s0 + $0x20] sm:$0xff]  ;;  %v19_v11 = vld [vmem:[%s500_s0 + $0x28] sm:$0xff]  ;;  %v30_v16 = vpack.c.bf16 %v15_v9, %v14_v8  ;;  %v20_v22 = vld [vmem:[%s500_s0 + $0x30] sm:$0xff]  ;;  %v31_v28 = vpack.c.bf16 %v17_v21, %v16_v20 }
   0x6   :  { %103 = vmatpush.bf16.msra.mxu0 %v293_v1  ;;  %345 = vmatpush.bf16.msra.mxu1 %v293_v1  ;;  %v22_v12 = vld [vmem:[%s500_s0 + $0x40] sm:$0xff]  ;;  %v23_v13 = vld [vmem:[%s500_s0 + $0x48] sm:$0xff]  ;;  %v32_v17 = vpack.c.bf16 %v19_v11, %v18_v10  ;;  %v21_v23 = vld [vmem:[%s500_s0 + $0x38] sm:$0xff] }
   0x7   :  { %346 = vmatpush.bf16.msra.mxu2 %v293_v1  ;;  %347 = vmatpush.bf16.msra.mxu3 %v293_v1  ;;  %v26_v14 = vld [vmem:[%s500_s0 + $0x60] sm:$0xff]  ;;  %v27_v15 = vld [vmem:[%s500_s0 + $0x68] sm:$0xff]  ;;  %v34_v18 = vpack.c.bf16 %v23_v13, %v22_v12  ;;  %v24_v24 = vld [vmem:[%s500_s0 + $0x50] sm:$0xff]  ;;  %v33_v29 = vpack.c.bf16 %v21_v23, %v20_v22 }
   0x8   :  { %v36_v19 = vpack.c.bf16 %v27_v15, %v26_v14  ;;  %v25_v25 = vld [vmem:[%s500_s0 + $0x58] sm:$0xff]  ;;  %v28_v26 = vld [vmem:[%s500_s0 + $0x70] sm:$0xff] }
   0x9   :  { %v29_v27 = vld [vmem:[%s500_s0 + $0x78] sm:$0xff]  ;;  %v35_v30 = vpack.c.bf16 %v25_v25, %v24_v24 }
   0xa   :  { %104 = vmatpush.bf16.msra.mxu0 %v292_v2  ;;  %348 = vmatpush.bf16.msra.mxu1 %v292_v2  ;;  %v37_v31 = vpack.c.bf16 %v29_v27, %v28_v26 }
   0xb   :  { %349 = vmatpush.bf16.msra.mxu2 %v292_v2  ;;  %350 = vmatpush.bf16.msra.mxu3 %v292_v2 }
   0xe   :  { %105 = vmatpush.bf16.msra.mxu0 %v291_v3  ;;  %351 = vmatpush.bf16.msra.mxu1 %v291_v3 }
   0xf   :  { %352 = vmatpush.bf16.msra.mxu2 %v291_v3  ;;  %353 = vmatpush.bf16.msra.mxu3 %v291_v3 }
  0x12   :  { %106 = vmatpush.bf16.msra.mxu0 %v290_v4  ;;  %354 = vmatpush.bf16.msra.mxu1 %v290_v4 }
  0x13   :  { %355 = vmatpush.bf16.msra.mxu2 %v290_v4  ;;  %356 = vmatpush.bf16.msra.mxu3 %v290_v4 }
  0x16   :  { %107 = vmatpush.bf16.msra.mxu0 %v289_v5  ;;  %357 = vmatpush.bf16.msra.mxu1 %v289_v5 }
  0x17   :  { %358 = vmatpush.bf16.msra.mxu2 %v289_v5  ;;  %359 = vmatpush.bf16.msra.mxu3 %v289_v5 }
  0x1a   :  { %108 = vmatpush.bf16.msra.mxu0 %v288_v6  ;;  %360 = vmatpush.bf16.msra.mxu1 %v288_v6 }
  0x1b   :  { %361 = vmatpush.bf16.msra.mxu2 %v288_v6  ;;  %362 = vmatpush.bf16.msra.mxu3 %v288_v6 }
  0x1e   :  { %109 = vmatpush.bf16.msra.mxu0 %v287_v7  ;;  %363 = vmatpush.bf16.msra.mxu1 %v287_v7 }
  0x1f   :  { %364 = vmatpush.bf16.msra.mxu2 %v287_v7  ;;  %365 = vmatpush.bf16.msra.mxu3 %v287_v7 }
  0x21   :  { %110 = vmatmul.bf16.vlgmr.msra.gmra.mxu0 %v30_v16  ;;  %120 = vmatmul.bf16.vlgmr.msra.gmra.mxu1 %v32_v17 }
  0x22   :  { %130 = vmatmul.bf16.vlgmr.msra.gmra.mxu2 %v34_v18  ;;  %140 = vmatmul.bf16.vlgmr.msra.gmra.mxu3 %v36_v19 }
  0x31   :  { %115 = vmatmul.bf16.gmra.mxu0 %v31_v28  ;;  %125 = vmatmul.bf16.gmra.mxu1 %v33_v29 }
  0x32   :  { %135 = vmatmul.bf16.gmra.mxu2 %v35_v30  ;;  %145 = vmatmul.bf16.gmra.mxu3 %v37_v31 }
  0x9e   :  { %v111_v32 = vpop.f32.mrf.mxu0  ;;  %v121_v33 = vpop.f32.mrf.mxu1 }
  0x9f   :  { %v205_v47 = vmul.f32 %v111_v32, %v111_v32  ;;  %v209_v61 = vmul.f32 %v121_v33, %v121_v33 }
  0xa5   :  { %v131_v34 = vpop.f32.mrf.mxu2  ;;  %v463_v35 = vpop.f32.mrf.mxu3 }
  0xa6   :  { %v113_v36 = vpop.f32.mrf.mxu0  ;;  %v123_v37 = vpop.f32.mrf.mxu1  ;;  %v213_v13 = vmul.f32 %v131_v34, %v131_v34  ;;  %v217_v25 = vmul.f32 %v463_v35, %v463_v35 }
  0xa7   :  { %v298_v38 = vpack.c.bf16 %v113_v36, %v111_v32  ;;  %v308_v39 = vpack.c.bf16 %v123_v37, %v121_v33  ;;  %v206_v46 = vmul.f32 %v113_v36, %v113_v36  ;;  %v183_v49 = vadd.f32 %v113_v36, %v111_v32 }
  0xa8   :  { %v210_v0 = vmul.f32 %v123_v37, %v123_v37 }
  0xa9   :  { %299 = vst [vmem:[%s501_s2] sm:$0xff] %v298_v38   ;;  %v221_v50 = vadd.f32 %v206_v46, %v205_v47 }
  0xaa   :  { %336 = vst [vmem:[%s501_s2 + $0x10] sm:$0xff] %v308_v39  }
  0xad   :  { %v133_v40 = vpop.f32.mrf.mxu2  ;;  %v143_v41 = vpop.f32.mrf.mxu3 }
  0xae   :  { %v116_v42 = vpop.f32.mrf.mxu0  ;;  %v126_v43 = vpop.f32.mrf.mxu1  ;;  %v318_v44 = vpack.c.bf16 %v133_v40, %v131_v34  ;;  %v328_v45 = vpack.c.bf16 %v143_v41, %v463_v35  ;;  %v214_v16 = vmul.f32 %v133_v40, %v133_v40  ;;  %v218_v28 = vmul.f32 %v143_v41, %v143_v41 }
  0xaf   :  { %v207_v48 = vmul.f32 %v116_v42, %v116_v42  ;;  %v184_v51 = vadd.f32 %v183_v49, %v116_v42  ;;  %v211_v3 = vmul.f32 %v126_v43, %v126_v43 }
  0xb0   :  { %338 = vst [vmem:[%s501_s2 + $0x20] sm:$0xff] %v318_v44  }
  0xb1   :  { %340 = vst [vmem:[%s501_s2 + $0x30] sm:$0xff] %v328_v45   ;;  %v222_v54 = vadd.f32 %v221_v50, %v207_v48 }
  0xb5   :  { %v136_v52 = vpop.f32.mrf.mxu2  ;;  %v146_v53 = vpop.f32.mrf.mxu3 }
  0xb6   :  { %v118_v55 = vpop.f32.mrf.mxu0  ;;  %v128_v56 = vpop.f32.mrf.mxu1  ;;  %v215_v20 = vmul.f32 %v136_v52, %v136_v52  ;;  %v219_v32 = vmul.f32 %v146_v53, %v146_v53 }
  0xb7   :  { %v303_v57 = vpack.c.bf16 %v118_v55, %v116_v42  ;;  %v185_v58 = vadd.f32 %v184_v51, %v118_v55  ;;  %v208_v59 = vmul.f32 %v118_v55, %v118_v55  ;;  %v313_v60 = vpack.c.bf16 %v128_v56, %v126_v43 }
  0xb8   :  { %v212_v11 = vmul.f32 %v128_v56, %v128_v56 }
  0xb9   :  { %335 = vst [vmem:[%s501_s2 + $0x8] sm:$0xff] %v303_v57   ;;  %v186_v62 = vadd.f32 %v185_v58, %v121_v33  ;;  %v223_v63 = vadd.f32 %v222_v54, %v208_v59 }
  0xba   :  { %337 = vst [vmem:[%s501_s2 + $0x18] sm:$0xff] %v313_v60  }
  0xbb   :  { %v224_v1 = vadd.f32 %v223_v63, %v209_v61  ;;  %v187_v2 = vadd.f32 %v186_v62, %v123_v37 }
  0xbd   :  { %v188_v4 = vadd.f32 %v187_v2, %v126_v43  ;;  %v225_v5 = vadd.f32 %v224_v1, %v210_v0  ;;  %v138_v6 = vpop.f32.mrf.mxu2  ;;  %v148_v7 = vpop.f32.mrf.mxu3 }
  0xbe   :  { %v323_v8 = vpack.c.bf16 %v138_v6, %v136_v52  ;;  %v333_v9 = vpack.c.bf16 %v148_v7, %v146_v53  ;;  %v216_v24 = vmul.f32 %v138_v6, %v138_v6  ;;  %v220_v37 = vmul.f32 %v148_v7, %v148_v7 }
  0xbf   :  { %v189_v10 = vadd.f32 %v188_v4, %v128_v56  ;;  %v226_v12 = vadd.f32 %v225_v5, %v211_v3 }
  0xc0   :  { %339 = vst [vmem:[%s501_s2 + $0x28] sm:$0xff] %v323_v8  }
  0xc1   :  { %v190_v14 = vadd.f32 %v189_v10, %v131_v34  ;;  %v227_v15 = vadd.f32 %v226_v12, %v212_v11  ;;  %341 = vst [vmem:[%s501_s2 + $0x38] sm:$0xff] %v333_v9  }
  0xc3   :  { %v228_v17 = vadd.f32 %v227_v15, %v213_v13  ;;  %v191_v18 = vadd.f32 %v190_v14, %v133_v40 }
  0xc5   :  { %v192_v19 = vadd.f32 %v191_v18, %v136_v52  ;;  %v229_v21 = vadd.f32 %v228_v17, %v214_v16 }
  0xc7   :  { %v230_v22 = vadd.f32 %v229_v21, %v215_v20  ;;  %v193_v23 = vadd.f32 %v192_v19, %v138_v6 }
  0xc9   :  { %v194_v26 = vadd.f32 %v193_v23, %v463_v35  ;;  %v231_v27 = vadd.f32 %v230_v22, %v216_v24 }
  0xcb   :  { %v232_v29 = vadd.f32 %v231_v27, %v217_v25  ;;  %v195_v30 = vadd.f32 %v194_v26, %v143_v41 }
  0xcd   :  { %v196_v31 = vadd.f32 %v195_v30, %v146_v53  ;;  %v233_v33 = vadd.f32 %v232_v29, %v218_v28 }
  0xcf   :  { %v234_v34 = vadd.f32 %v233_v33, %v219_v32  ;;  %v197_v36 = vadd.f32 %v196_v31, %v148_v7 }
  0xd1   :  { %v198_v38 = vrot.slane %v197_v36, 4  ;;  %v235_v39 = vadd.f32 %v234_v34, %v220_v37 }
  0xd3   :  { %v199_v40 = vadd.f32 %v198_v38, %v197_v36  ;;  %v236_v42 = vrot.slane %v235_v39, 4 }
  0xd5   :  { %v200_v43 = vrot.slane %v199_v40, 2  ;;  %v237_v44 = vadd.f32 %v236_v42, %v235_v39 }
  0xd7   :  { %v201_v45 = vadd.f32 %v200_v43, %v199_v40  ;;  %v238_v46 = vrot.slane %v237_v44, 2 }
  0xd9   :  { %v202_v47 = vrot.slane %v201_v45, 1  ;;  %v239_v35 = vadd.f32 %v238_v46, %v237_v44 }
  0xdb   :  { %v203_v48 = vadd.f32 %v202_v47, %v201_v45  ;;  %v240_v49 = vrot.slane %v239_v35, 1 }
  0xdd   :  { %204 = vst [vmem:[%s502_s3] sm:$0x1] %v203_v48  ;;  %v241_v41 = vadd.f32 %v240_v49, %v239_v35 }
  0xdf   :  { %242 = vst [vmem:[%s503_s4] sm:$0x1] %v241_v41 }

// kernel: bottleneck_forward.7
= control target key start
LH: loop header
LB: loop body
LE: loop exit
PB: predicated region body
PF: predicated region fallthrough
CT: control target
= control target key end

     0   :  { %s646_s1 = inlined_call_operand.vmem [shape: bf16[128,128], index: 1, kind: input, shape index: {}]   ;;  %s647_s2 = inlined_call_operand.vmem [shape: f32[1,128], index: 2, kind: input, shape index: {}]   ;;  %s648_s3 = inlined_call_operand.vmem [shape: f32[1,128], index: 3, kind: input, shape index: {}]   ;;  %s649_s0 = inlined_call_operand.vmem [shape: bf16[128,128], index: 0, kind: input, shape index: {}]   ;;  %s650_s4 = inlined_call_operand.vmem [shape: bf16[128,128], index: 4, kind: output, shape index: {0}]   ;;  %s651_s5 = inlined_call_operand.vmem [shape: f32[1,1,128], index: 5, kind: output, shape index: {1}]   ;;  %s652_s6 = inlined_call_operand.vmem [shape: f32[1,1,128], index: 6, kind: output, shape index: {2}]  }
   0x1   :  { %v372_v0 = vld [vmem:[%s646_s1 + $0x38] sm:$0xff]  ;;  %v371_v1 = vld [vmem:[%s646_s1 + $0x30] sm:$0xff]  ;;  %v370_v2 = vld [vmem:[%s646_s1 + $0x28] sm:$0xff] }
   0x2   :  { %180 = vmatpush.bf16.msra.mxu0 %v372_v0  ;;  %459 = vmatpush.bf16.msra.mxu1 %v372_v0  ;;  %v374_v3 = vld [vmem:[%s649_s0] sm:$0xff]   ;;  %v446_v5 = vld [vmem:[%s649_s0 + $0x10] sm:$0xff]   ;;  %v368_v15 = vld [vmem:[%s646_s1 + $0x18] sm:$0xff] }
   0x3   :  { %460 = vmatpush.bf16.msra.mxu2 %v372_v0  ;;  %461 = vmatpush.bf16.msra.mxu3 %v372_v0  ;;  %v369_v4 = vld [vmem:[%s646_s1 + $0x20] sm:$0xff]  ;;  %v450_v7 = vld [vmem:[%s649_s0 + $0x30] sm:$0xff]   ;;  %v375_v8 = vunpack.c.l.bf16 %v374_v3  ;;  %v376_v9 = vunpack.c.h.bf16 %v374_v3  ;;  %v383_v11 = vunpack.c.l.bf16 %v446_v5  ;;  %v384_v12 = vunpack.c.h.bf16 %v446_v5  ;;  %v366_v34 = vld [vmem:[%s646_s1 + $0x8] sm:$0xff] }
   0x4   :  { %v448_v6 = vld [vmem:[%s649_s0 + $0x20] sm:$0xff]   ;;  %v399_v16 = vunpack.c.l.bf16 %v450_v7  ;;  %v400_v17 = vunpack.c.h.bf16 %v450_v7  ;;  %v367_v25 = vld [vmem:[%s646_s1 + $0x10] sm:$0xff]  ;;  %v445_v43 = vld [vmem:[%s649_s0 + $0x8] sm:$0xff]  }
   0x5   :  { %v547_v10 = vld [vmem:[%s647_s2] ss:$0 sm:$0xff]  ;;  %v391_v13 = vunpack.c.l.bf16 %v448_v6  ;;  %v392_v14 = vunpack.c.h.bf16 %v448_v6  ;;  %v447_v44 = vld [vmem:[%s649_s0 + $0x18] sm:$0xff]   ;;  %v449_v48 = vld [vmem:[%s649_s0 + $0x28] sm:$0xff]   ;;  %v379_v51 = vunpack.c.l.bf16 %v445_v43  ;;  %v380_v52 = vunpack.c.h.bf16 %v445_v43 }
   0x6   :  { %181 = vmatpush.bf16.msra.mxu0 %v371_v1  ;;  %462 = vmatpush.bf16.msra.mxu1 %v371_v1  ;;  %v56_v18 = vmul.f32 %v547_v10, %v375_v8  ;;  %v57_v19 = vmul.f32 %v547_v10, %v376_v9  ;;  %v557_v20 = vld [vmem:[%s648_s3] ss:$0 sm:$0xff]  ;;  %v60_v21 = vmul.f32 %v547_v10, %v383_v11  ;;  %v451_v49 = vld [vmem:[%s649_s0 + $0x38] sm:$0xff]   ;;  %v387_v53 = vunpack.c.l.bf16 %v447_v44 }
   0x7   :  { %463 = vmatpush.bf16.msra.mxu2 %v371_v1  ;;  %464 = vmatpush.bf16.msra.mxu3 %v371_v1  ;;  %v61_v22 = vmul.f32 %v547_v10, %v384_v12  ;;  %v64_v23 = vmul.f32 %v547_v10, %v391_v13  ;;  %v65_v24 = vmul.f32 %v547_v10, %v392_v14  ;;  %v365_v45 = vld [vmem:[%s646_s1] sm:$0xff]  ;;  %v388_v56 = vunpack.c.h.bf16 %v447_v44 }
   0x8   :  { %v68_v26 = vmul.f32 %v547_v10, %v399_v16  ;;  %v69_v27 = vmul.f32 %v547_v10, %v400_v17  ;;  %v76_v28 = vadd.f32 %v557_v20, %v56_v18  ;;  %v77_v29 = vadd.f32 %v557_v20, %v57_v19 }
   0x9   :  { %v80_v30 = vadd.f32 %v557_v20, %v60_v21  ;;  %v81_v31 = vadd.f32 %v557_v20, %v61_v22  ;;  %v84_v32 = vadd.f32 %v557_v20, %v64_v23  ;;  %v85_v33 = vadd.f32 %v557_v20, %v65_v24 }
   0xa   :  { %182 = vmatpush.bf16.msra.mxu0 %v370_v2  ;;  %465 = vmatpush.bf16.msra.mxu1 %v370_v2  ;;  %v88_v35 = vadd.f32 %v557_v20, %v68_v26  ;;  %v89_v36 = vadd.f32 %v557_v20, %v69_v27  ;;  %v92_v37 = vmax.f32 %v76_v28, 0.0  ;;  %v93_v38 = vmax.f32 %v77_v29, 0.0 }
   0xb   :  { %466 = vmatpush.bf16.msra.mxu2 %v370_v2  ;;  %467 = vmatpush.bf16.msra.mxu3 %v370_v2  ;;  %v96_v39 = vmax.f32 %v80_v30, 0.0  ;;  %v97_v40 = vmax.f32 %v81_v31, 0.0  ;;  %v100_v41 = vmax.f32 %v84_v32, 0.0  ;;  %v101_v42 = vmax.f32 %v85_v33, 0.0 }
   0xc   :  { %v104_v46 = vmax.f32 %v88_v35, 0.0  ;;  %v105_v47 = vmax.f32 %v89_v36, 0.0  ;;  %v108_v50 = vpack.c.bf16 %v93_v38, %v92_v37  ;;  %v395_v57 = vunpack.c.l.bf16 %v449_v48 }
   0xd   :  { %v110_v54 = vpack.c.bf16 %v97_v40, %v96_v39  ;;  %v112_v55 = vpack.c.bf16 %v101_v42, %v100_v41  ;;  %v396_v59 = vunpack.c.h.bf16 %v449_v48  ;;  %v403_v60 = vunpack.c.l.bf16 %v451_v49 }
   0xe   :  { %183 = vmatpush.bf16.msra.mxu0 %v369_v4  ;;  %468 = vmatpush.bf16.msra.mxu1 %v369_v4  ;;  %v114_v58 = vpack.c.bf16 %v105_v47, %v104_v46  ;;  %v404_v61 = vunpack.c.h.bf16 %v451_v49  ;;  %v58_v62 = vmul.f32 %v547_v10, %v379_v51  ;;  %v59_v63 = vmul.f32 %v547_v10, %v380_v52 }
   0xf   :  { %469 = vmatpush.bf16.msra.mxu2 %v369_v4  ;;  %470 = vmatpush.bf16.msra.mxu3 %v369_v4  ;;  %v62_v0 = vmul.f32 %v547_v10, %v387_v53  ;;  %v63_v1 = vmul.f32 %v547_v10, %v388_v56  ;;  %v66_v2 = vmul.f32 %v547_v10, %v395_v57 }
  0x10   :  { %v67_v3 = vmul.f32 %v547_v10, %v396_v59  ;;  %v70_v4 = vmul.f32 %v547_v10, %v403_v60  ;;  %v71_v5 = vmul.f32 %v547_v10, %v404_v61  ;;  %v78_v6 = vadd.f32 %v557_v20, %v58_v62 }
  0x11   :  { %v79_v7 = vadd.f32 %v557_v20, %v59_v63  ;;  %v82_v8 = vadd.f32 %v557_v20, %v62_v0  ;;  %v83_v9 = vadd.f32 %v557_v20, %v63_v1  ;;  %v86_v11 = vadd.f32 %v557_v20, %v66_v2 }
  0x12   :  { %184 = vmatpush.bf16.msra.mxu0 %v368_v15  ;;  %471 = vmatpush.bf16.msra.mxu1 %v368_v15  ;;  %v87_v12 = vadd.f32 %v557_v20, %v67_v3  ;;  %v90_v13 = vadd.f32 %v557_v20, %v70_v4  ;;  %v91_v14 = vadd.f32 %v557_v20, %v71_v5 }
  0x13   :  { %472 = vmatpush.bf16.msra.mxu2 %v368_v15  ;;  %473 = vmatpush.bf16.msra.mxu3 %v368_v15  ;;  %v94_v15 = vmax.f32 %v78_v6, 0.0  ;;  %v95_v16 = vmax.f32 %v79_v7, 0.0  ;;  %v98_v17 = vmax.f32 %v82_v8, 0.0  ;;  %v99_v10 = vmax.f32 %v83_v9, 0.0 }
  0x14   :  { %v102_v18 = vmax.f32 %v86_v11, 0.0  ;;  %v103_v19 = vmax.f32 %v87_v12, 0.0  ;;  %v106_v21 = vmax.f32 %v90_v13, 0.0  ;;  %v107_v22 = vmax.f32 %v91_v14, 0.0 }
  0x15   :  { %v109_v23 = vpack.c.bf16 %v95_v16, %v94_v15  ;;  %v111_v24 = vpack.c.bf16 %v99_v10, %v98_v17 }
  0x16   :  { %185 = vmatpush.bf16.msra.mxu0 %v367_v25  ;;  %474 = vmatpush.bf16.msra.mxu1 %v367_v25  ;;  %v115_v26 = vpack.c.bf16 %v107_v22, %v106_v21 }
  0x17   :  { %475 = vmatpush.bf16.msra.mxu2 %v367_v25  ;;  %476 = vmatpush.bf16.msra.mxu3 %v367_v25  ;;  %v113_v25 = vpack.c.bf16 %v103_v19, %v102_v18 }
  0x1a   :  { %186 = vmatpush.bf16.msra.mxu0 %v366_v34  ;;  %477 = vmatpush.bf16.msra.mxu1 %v366_v34 }
  0x1b   :  { %478 = vmatpush.bf16.msra.mxu2 %v366_v34  ;;  %479 = vmatpush.bf16.msra.mxu3 %v366_v34 }
  0x1e   :  { %187 = vmatpush.bf16.msra.mxu0 %v365_v45  ;;  %480 = vmatpush.bf16.msra.mxu1 %v365_v45 }
  0x1f   :  { %481 = vmatpush.bf16.msra.mxu2 %v365_v45  ;;  %482 = vmatpush.bf16.msra.mxu3 %v365_v45 }
  0x21   :  { %188 = vmatmul.bf16.vlgmr.msra.gmra.mxu0 %v108_v50  ;;  %198 = vmatmul.bf16.vlgmr.msra.gmra.mxu1 %v110_v54 }
  0x22   :  { %208 = vmatmul.bf16.vlgmr.msra.gmra.mxu2 %v112_v55  ;;  %218 = vmatmul.bf16.vlgmr.msra.gmra.mxu3 %v114_v58 }
  0x31   :  { %193 = vmatmul.bf16.gmra.mxu0 %v109_v23  ;;  %203 = vmatmul.bf16.gmra.mxu1 %v111_v24 }
  0x32   :  { %213 = vmatmul.bf16.gmra.mxu2 %v113_v25  ;;  %223 = vmatmul.bf16.gmra.mxu3 %v115_v26 }
  0x9e   :  { %v189_v27 = vpop.f32.mrf.mxu0  ;;  %v199_v28 = vpop.f32.mrf.mxu1 }
  0x9f   :  { %v283_v41 = vmul.f32 %v189_v27, %v189_v27  ;;  %v287_v55 = vmul.f32 %v199_v28, %v199_v28 }
  0xa5   :  { %v209_v29 = vpop.f32.mrf.mxu2  ;;  %v610_v20 = vpop.f32.mrf.mxu3 }
  0xa6   :  { %v191_v30 = vpop.f32.mrf.mxu0  ;;  %v201_v31 = vpop.f32.mrf.mxu1  ;;  %v291_v7 = vmul.f32 %v209_v29, %v209_v29  ;;  %v295_v19 = vmul.f32 %v610_v20, %v610_v20 }
  0xa7   :  { %v408_v32 = vpack.c.bf16 %v191_v30, %v189_v27  ;;  %v418_v33 = vpack.c.bf16 %v201_v31, %v199_v28  ;;  %v284_v40 = vmul.f32 %v191_v30, %v191_v30  ;;  %v261_v43 = vadd.f32 %v191_v30, %v189_v27 }
  0xa8   :  { %v288_v58 = vmul.f32 %v201_v31, %v201_v31 }
  0xa9   :  { %409 = vst [vmem:[%s650_s4] sm:$0xff] %v408_v32   ;;  %v299_v44 = vadd.f32 %v284_v40, %v283_v41 }
  0xaa   :  { %453 = vst [vmem:[%s650_s4 + $0x10] sm:$0xff] %v418_v33  }
  0xad   :  { %v211_v34 = vpop.f32.mrf.mxu2  ;;  %v221_v35 = vpop.f32.mrf.mxu3 }
  0xae   :  { %v194_v36 = vpop.f32.mrf.mxu0  ;;  %v204_v37 = vpop.f32.mrf.mxu1  ;;  %v428_v38 = vpack.c.bf16 %v211_v34, %v209_v29  ;;  %v438_v39 = vpack.c.bf16 %v221_v35, %v610_v20  ;;  %v292_v11 = vmul.f32 %v211_v34, %v211_v34  ;;  %v296_v23 = vmul.f32 %v221_v35, %v221_v35 }
  0xaf   :  { %v285_v42 = vmul.f32 %v194_v36, %v194_v36  ;;  %v262_v45 = vadd.f32 %v261_v43, %v194_v36  ;;  %v289_v61 = vmul.f32 %v204_v37, %v204_v37 }
  0xb0   :  { %455 = vst [vmem:[%s650_s4 + $0x20] sm:$0xff] %v428_v38  }
  0xb1   :  { %457 = vst [vmem:[%s650_s4 + $0x30] sm:$0xff] %v438_v39   ;;  %v300_v48 = vadd.f32 %v299_v44, %v285_v42 }
  0xb5   :  { %v214_v46 = vpop.f32.mrf.mxu2  ;;  %v224_v47 = vpop.f32.mrf.mxu3 }
  0xb6   :  { %v196_v49 = vpop.f32.mrf.mxu0  ;;  %v206_v50 = vpop.f32.mrf.mxu1  ;;  %v293_v15 = vmul.f32 %v214_v46, %v214_v46  ;;  %v297_v27 = vmul.f32 %v224_v47, %v224_v47 }
  0xb7   :  { %v413_v51 = vpack.c.bf16 %v196_v49, %v194_v36  ;;  %v263_v52 = vadd.f32 %v262_v45, %v196_v49  ;;  %v286_v53 = vmul.f32 %v196_v49, %v196_v49  ;;  %v423_v54 = vpack.c.bf16 %v206_v50, %v204_v37 }
  0xb8   :  { %v290_v5 = vmul.f32 %v206_v50, %v206_v50 }
  0xb9   :  { %452 = vst [vmem:[%s650_s4 + $0x8] sm:$0xff] %v413_v51   ;;  %v264_v56 = vadd.f32 %v263_v52, %v199_v28  ;;  %v301_v57 = vadd.f32 %v300_v48, %v286_v53 }
  0xba   :  { %454 = vst [vmem:[%s650_s4 + $0x18] sm:$0xff] %v423_v54  }
  0xbb   :  { %v302_v59 = vadd.f32 %v301_v57, %v287_v55  ;;  %v265_v60 = vadd.f32 %v264_v56, %v201_v31 }
  0xbd   :  { %v266_v62 = vadd.f32 %v265_v60, %v204_v37  ;;  %v303_v63 = vadd.f32 %v302_v59, %v288_v58  ;;  %v216_v0 = vpop.f32.mrf.mxu2  ;;  %v226_v1 = vpop.f32.mrf.mxu3 }
  0xbe   :  { %v433_v2 = vpack.c.bf16 %v216_v0, %v214_v46  ;;  %v443_v3 = vpack.c.bf16 %v226_v1, %v224_v47  ;;  %v294_v18 = vmul.f32 %v216_v0, %v216_v0  ;;  %v298_v31 = vmul.f32 %v226_v1, %v226_v1 }
  0xbf   :  { %v267_v4 = vadd.f32 %v266_v62, %v206_v50  ;;  %v304_v6 = vadd.f32 %v303_v63, %v289_v61 }
  0xc0   :  { %456 = vst [vmem:[%s650_s4 + $0x28] sm:$0xff] %v433_v2  }
  0xc1   :  { %v268_v8 = vadd.f32 %v267_v4, %v209_v29  ;;  %v305_v9 = vadd.f32 %v304_v6, %v290_v5  ;;  %458 = vst [vmem:[%s650_s4 + $0x38] sm:$0xff] %v443_v3  }
  0xc3   :  { %v306_v12 = vadd.f32 %v305_v9, %v291_v7  ;;  %v269_v13 = vadd.f32 %v268_v8, %v211_v34 }
  0xc5   :  { %v270_v14 = vadd.f32 %v269_v13, %v214_v46  ;;  %v307_v16 = vadd.f32 %v306_v12, %v292_v11 }
  0xc7   :  { %v308_v17 = vadd.f32 %v307_v16, %v293_v15  ;;  %v271_v10 = vadd.f32 %v270_v14, %v216_v0 }
  0xc9   :  { %v272_v21 = vadd.f32 %v271_v10, %v610_v20  ;;  %v309_v22 = vadd.f32 %v308_v17, %v294_v18 }
  0xcb   :  { %v310_v24 = vadd.f32 %v309_v22, %v295_v19  ;;  %v273_v25 = vadd.f32 %v272_v21, %v221_v35 }
  0xcd   :  { %v274_v26 = vadd.f32 %v273_v25, %v224_v47  ;;  %v311_v28 = vadd.f32 %v310_v24, %v296_v23 }
  0xcf   :  { %v312_v29 = vadd.f32 %v311_v28, %v297_v27  ;;  %v275_v30 = vadd.f32 %v274_v26, %v226_v1 }
  0xd1   :  { %v276_v32 = vrot.slane %v275_v30, 4  ;;  %v313_v33 = vadd.f32 %v312_v29, %v298_v31 }
  0xd3   :  { %v277_v34 = vadd.f32 %v276_v32, %v275_v30  ;;  %v314_v36 = vrot.slane %v313_v33, 4 }
  0xd5   :  { %v278_v37 = vrot.slane %v277_v34, 2  ;;  %v315_v38 = vadd.f32 %v314_v36, %v313_v33 }
  0xd7   :  { %v279_v39 = vadd.f32 %v278_v37, %v277_v34  ;;  %v316_v40 = vrot.slane %v315_v38, 2 }
  0xd9   :  { %v280_v41 = vrot.slane %v279_v39, 1  ;;  %v317_v20 = vadd.f32 %v316_v40, %v315_v38 }
  0xdb   :  { %v281_v42 = vadd.f32 %v280_v41, %v279_v39  ;;  %v318_v43 = vrot.slane %v317_v20, 1 }
  0xdd   :  { %282 = vst [vmem:[%s651_s5] sm:$0x1] %v281_v42  ;;  %v319_v35 = vadd.f32 %v318_v43, %v317_v20 }
  0xdf   :  { %320 = vst [vmem:[%s652_s6] sm:$0x1] %v319_v35 }

// kernel: bottleneck_forward.9
= control target key start
LH: loop header
LB: loop body
LE: loop exit
PB: predicated region body
PF: predicated region fallthrough
CT: control target
= control target key end

     0   :  { %vm200_vm0 = vcmask 261120   ;;  %s535_s0 = inlined_call_operand.vmem [shape: bf16[128,128], index: 0, kind: input, shape index: {}]   ;;  %s536_s1 = inlined_call_operand.vmem [shape: bf16[128,128], index: 1, kind: input, shape index: {}]   ;;  %s537_s2 = inlined_call_operand.vmem [shape: f32[1,128], index: 2, kind: input, shape index: {}]   ;;  %s538_s3 = inlined_call_operand.vmem [shape: f32[1,128], index: 3, kind: input, shape index: {}]   ;;  %s539_s4 = inlined_call_operand.vmem [shape: f32[1,128], index: 4, kind: input, shape index: {}]   ;;  %s540_s5 = inlined_call_operand.vmem [shape: f32[1,128], index: 5, kind: input, shape index: {}]   ;;  %s541_s6 = inlined_call_operand.hbm [shape: f32[128,32], index: 6, kind: output, shape index: {}]  }
   0x1   :  { %v236_v0 = vld [vmem:[%s535_s0] sm:$0xff]   ;;  %v299_v12 = vld [vmem:[%s535_s0 + $0x8] sm:$0xff]   ;;  %v300_v18 = vld [vmem:[%s535_s0 + $0x10] sm:$0xff]  }
   0x2   :  { %v390_v1 = vld [vmem:[%s537_s2] ss:$0 sm:$0xff]  ;;  %v237_v2 = vunpack.c.l.bf16 %v236_v0  ;;  %v238_v5 = vunpack.c.h.bf16 %v236_v0  ;;  %v306_v13 = vld [vmem:[%s536_s1 + $0x8] sm:$0xff]   ;;  %v241_v16 = vunpack.c.l.bf16 %v299_v12  ;;  %v307_v19 = vld [vmem:[%s536_s1 + $0x10] sm:$0xff]   ;;  %v242_v22 = vunpack.c.h.bf16 %v299_v12 }
   0x3   :  { %v395_v3 = vld [vmem:[%s538_s3] ss:$0 sm:$0xff]  ;;  %v273_v17 = vunpack.c.l.bf16 %v306_v13  ;;  %v274_v23 = vunpack.c.h.bf16 %v306_v13  ;;  %v245_v30 = vunpack.c.l.bf16 %v300_v18  ;;  %v277_v31 = vunpack.c.l.bf16 %v307_v19 }
   0x4   :  { %v268_v4 = vld [vmem:[%s536_s1] sm:$0xff]   ;;  %v60_v9 = vmul.f32 %v390_v1, %v237_v2  ;;  %v61_v11 = vmul.f32 %v390_v1, %v238_v5  ;;  %v62_v26 = vmul.f32 %v390_v1, %v241_v16  ;;  %v63_v28 = vmul.f32 %v390_v1, %v242_v22 }
   0x5   :  { %v269_v6 = vunpack.c.l.bf16 %v268_v4  ;;  %v403_v7 = vld [vmem:[%s539_s4] ss:$0 sm:$0xff]  ;;  %v270_v8 = vunpack.c.h.bf16 %v268_v4 }
   0x6   :  { %v409_v10 = vld [vmem:[%s540_s5] ss:$0 sm:$0xff]  ;;  %v80_v20 = vadd.f32 %v395_v3, %v60_v9  ;;  %v81_v21 = vadd.f32 %v395_v3, %v61_v11  ;;  %v134_v27 = vmul.f32 %v403_v7, %v273_v17  ;;  %v135_v29 = vmul.f32 %v403_v7, %v274_v23 }
   0x7   :  { %v132_v14 = vmul.f32 %v403_v7, %v269_v6  ;;  %v133_v15 = vmul.f32 %v403_v7, %v270_v8  ;;  %v82_v34 = vadd.f32 %v395_v3, %v62_v26 }
   0x8   :  { %v154_v35 = vadd.f32 %v409_v10, %v134_v27 }
   0x9   :  { %v152_v24 = vadd.f32 %v409_v10, %v132_v14  ;;  %v153_v25 = vadd.f32 %v409_v10, %v133_v15 }
   0xb   :  { %v168_v32 = vadd.f32 %v152_v24, %v80_v20  ;;  %v169_v33 = vadd.f32 %v153_v25, %v81_v21 }
   0xc   :  { %11 = vsyncpa [#allocation3], 0  ;;  %v83_v36 = vadd.f32 %v395_v3, %v63_v28  ;;  %v155_v37 = vadd.f32 %v409_v10, %v135_v29  ;;  %v64_v38 = vmul.f32 %v390_v1, %v245_v30  ;;  %v136_v39 = vmul.f32 %v403_v7, %v277_v31  ;;  %v301_v40 = vld [vmem:[%s535_s0 + $0x18] sm:$0xff]   ;;  %v302_v54 = vld [vmem:[%s535_s0 + $0x20] sm:$0xff]   ;;  %s223_s9 = sshll.u32 %s541_s6, 4  ;;  %s347_s10 = smov 128   ;;  %s224_s9 = int_to_ptr.hbm [resolvable:$true] %s223_s9 }
   0xd   :  { %v308_v41 = vld [vmem:[%s536_s1 + $0x18] sm:$0xff]   ;;  %v184_v42 = vmax.f32 %v168_v32, 0.0  ;;  %v185_v43 = vmax.f32 %v169_v33, 0.0  ;;  %v170_v44 = vadd.f32 %v154_v35, %v82_v34  ;;  %v246_v45 = vunpack.c.h.bf16 %v300_v18  ;;  %v309_v59 = vld [vmem:[%s536_s1 + $0x20] sm:$0xff]   ;;  %v303_v12 = vld [vmem:[%s535_s0 + $0x28] sm:$0xff]   ;;  %s348_s4 = smov 8  }
   0xe   :  { %v171_v46 = vadd.f32 %v155_v37, %v83_v36  ;;  %v84_v47 = vadd.f32 %v395_v3, %v64_v38  ;;  %v156_v48 = vadd.f32 %v409_v10, %v136_v39  ;;  %v278_v49 = vunpack.c.h.bf16 %v307_v19  ;;  %v310_v21 = vld [vmem:[%s536_s1 + $0x28] sm:$0xff]   ;;  %v304_v30 = vld [vmem:[%s535_s0 + $0x30] sm:$0xff]  }
   0xf   :  { %201 = vst.msk [vmem:[#allocation2] sm:$0xff] %vm200_vm0, %v184_v42  ;;  %v186_v50 = vmax.f32 %v170_v44, 0.0  ;;  %v65_v51 = vmul.f32 %v390_v1, %v246_v45  ;;  %v249_v52 = vunpack.c.l.bf16 %v301_v40  ;;  %v281_v53 = vunpack.c.l.bf16 %v308_v41  ;;  %v311_v35 = vld [vmem:[%s536_s1 + $0x30] sm:$0xff]  }
  0x10   :  { %202 = vst.msk [vmem:[#allocation2 + $0x8] sm:$0xff] %vm200_vm0, %v185_v43  ;;  %v187_v55 = vmax.f32 %v171_v46, 0.0  ;;  %v172_v56 = vadd.f32 %v156_v48, %v84_v47  ;;  %v137_v57 = vmul.f32 %v403_v7, %v278_v49  ;;  %v250_v58 = vunpack.c.h.bf16 %v301_v40  ;;  %v305_v48 = vld [vmem:[%s535_s0 + $0x38] sm:$0xff]   ;;  %s346_s0 = smov [#allocation2]  }
  0x11   :  { %203 = vst.msk [vmem:[#allocation2 + $0x10] sm:$0xff] %vm200_vm0, %v186_v50  ;;  %v85_v60 = vadd.f32 %v395_v3, %v65_v51  ;;  %v66_v61 = vmul.f32 %v390_v1, %v249_v52  ;;  %v138_v62 = vmul.f32 %v403_v7, %v281_v53  ;;  %v282_v63 = vunpack.c.h.bf16 %v308_v41  ;;  %v312_v53 = vld [vmem:[%s536_s1 + $0x38] sm:$0xff]   ;;  %s221_s1 = sshll.u32 %s346_s0, 4  ;;  %s222_s1 = int_to_ptr.vmem [resolvable:$true] %s221_s1 }
  0x12   :  { %204 = vst.msk [vmem:[#allocation2 + $0x18] sm:$0xff] %vm200_vm0, %v187_v55  ;;  %v188_v0 = vmax.f32 %v172_v56, 0.0  ;;  %v157_v2 = vadd.f32 %v409_v10, %v137_v57  ;;  %v67_v4 = vmul.f32 %v390_v1, %v250_v58  ;;  %v253_v5 = vunpack.c.l.bf16 %v302_v54 }
  0x13   :  { %v86_v6 = vadd.f32 %v395_v3, %v66_v61  ;;  %v158_v8 = vadd.f32 %v409_v10, %v138_v62  ;;  %v139_v9 = vmul.f32 %v403_v7, %v282_v63  ;;  %v285_v11 = vunpack.c.l.bf16 %v309_v59 }
  0x14   :  { %205 = vst.msk [vmem:[#allocation2 + $0x20] sm:$0xff] %vm200_vm0, %v188_v0  ;;  %v173_v13 = vadd.f32 %v157_v2, %v85_v60  ;;  %v87_v14 = vadd.f32 %v395_v3, %v67_v4  ;;  %v68_v15 = vmul.f32 %v390_v1, %v253_v5  ;;  %v254_v16 = vunpack.c.h.bf16 %v302_v54 }
  0x15   :  { %v174_v17 = vadd.f32 %v158_v8, %v86_v6  ;;  %v159_v18 = vadd.f32 %v409_v10, %v139_v9  ;;  %v140_v19 = vmul.f32 %v403_v7, %v285_v11  ;;  %v286_v20 = vunpack.c.h.bf16 %v309_v59 }
  0x16   :  { %v189_v22 = vmax.f32 %v173_v13, 0.0  ;;  %v88_v23 = vadd.f32 %v395_v3, %v68_v15  ;;  %v69_v24 = vmul.f32 %v390_v1, %v254_v16  ;;  %v257_v25 = vunpack.c.l.bf16 %v303_v12 }
  0x17   :  { %v190_v26 = vmax.f32 %v174_v17, 0.0  ;;  %v175_v27 = vadd.f32 %v159_v18, %v87_v14  ;;  %v160_v28 = vadd.f32 %v409_v10, %v140_v19  ;;  %v141_v29 = vmul.f32 %v403_v7, %v286_v20 }
  0x18   :  { %206 = vst.msk [vmem:[#allocation2 + $0x28] sm:$0xff] %vm200_vm0, %v189_v22  ;;  %v89_v31 = vadd.f32 %v395_v3, %v69_v24  ;;  %v70_v32 = vmul.f32 %v390_v1, %v257_v25  ;;  %v289_v33 = vunpack.c.l.bf16 %v310_v21  ;;  %v258_v34 = vunpack.c.h.bf16 %v303_v12 }
  0x19   :  { %207 = vst.msk [vmem:[#allocation2 + $0x30] sm:$0xff] %vm200_vm0, %v190_v26  ;;  %v191_v36 = vmax.f32 %v175_v27, 0.0  ;;  %v176_v37 = vadd.f32 %v160_v28, %v88_v23  ;;  %v161_v38 = vadd.f32 %v409_v10, %v141_v29  ;;  %v290_v39 = vunpack.c.h.bf16 %v310_v21 }
  0x1a   :  { %v90_v40 = vadd.f32 %v395_v3, %v70_v32  ;;  %v142_v41 = vmul.f32 %v403_v7, %v289_v33  ;;  %v71_v42 = vmul.f32 %v390_v1, %v258_v34  ;;  %v261_v43 = vunpack.c.l.bf16 %v304_v30 }
  0x1b   :  { %208 = vst.msk [vmem:[#allocation2 + $0x38] sm:$0xff] %vm200_vm0, %v191_v36  ;;  %v192_v44 = vmax.f32 %v176_v37, 0.0  ;;  %v177_v45 = vadd.f32 %v161_v38, %v89_v31  ;;  %v143_v46 = vmul.f32 %v403_v7, %v290_v39  ;;  %v293_v47 = vunpack.c.l.bf16 %v311_v35 }
  0x1c   :  { %v162_v49 = vadd.f32 %v409_v10, %v142_v41  ;;  %v91_v50 = vadd.f32 %v395_v3, %v71_v42  ;;  %v72_v51 = vmul.f32 %v390_v1, %v261_v43  ;;  %v262_v52 = vunpack.c.h.bf16 %v304_v30 }
  0x1d   :  { %209 = vst.msk [vmem:[#allocation2 + $0x40] sm:$0xff] %vm200_vm0, %v192_v44  ;;  %v193_v54 = vmax.f32 %v177_v45, 0.0  ;;  %v163_v55 = vadd.f32 %v409_v10, %v143_v46  ;;  %v144_v56 = vmul.f32 %v403_v7, %v293_v47  ;;  %v294_v57 = vunpack.c.h.bf16 %v311_v35 }
  0x1e   :  { %v178_v58 = vadd.f32 %v162_v49, %v90_v40  ;;  %v92_v59 = vadd.f32 %v395_v3, %v72_v51  ;;  %v73_v60 = vmul.f32 %v390_v1, %v262_v52  ;;  %v265_v61 = vunpack.c.l.bf16 %v305_v48 }
  0x1f   :  { %210 = vst.msk [vmem:[#allocation2 + $0x48] sm:$0xff] %vm200_vm0, %v193_v54  ;;  %v179_v62 = vadd.f32 %v163_v55, %v91_v50  ;;  %v164_v63 = vadd.f32 %v409_v10, %v144_v56  ;;  %v145_v0 = vmul.f32 %v403_v7, %v294_v57  ;;  %v297_v2 = vunpack.c.l.bf16 %v312_v53 }
  0x20   :  { %v194_v4 = vmax.f32 %v178_v58, 0.0  ;;  %v93_v5 = vadd.f32 %v395_v3, %v73_v60  ;;  %v74_v6 = vmul.f32 %v390_v1, %v265_v61  ;;  %v266_v8 = vunpack.c.h.bf16 %v305_v48 }
  0x21   :  { %v195_v9 = vmax.f32 %v179_v62, 0.0  ;;  %v180_v11 = vadd.f32 %v164_v63, %v92_v59  ;;  %v165_v12 = vadd.f32 %v409_v10, %v145_v0  ;;  %v146_v13 = vmul.f32 %v403_v7, %v297_v2 }
  0x22   :  { %211 = vst.msk [vmem:[#allocation2 + $0x50] sm:$0xff] %vm200_vm0, %v194_v4  ;;  %v94_v14 = vadd.f32 %v395_v3, %v74_v6  ;;  %v75_v15 = vmul.f32 %v390_v1, %v266_v8  ;;  %v298_v16 = vunpack.c.h.bf16 %v312_v53 }
  0x23   :  { %212 = vst.msk [vmem:[#allocation2 + $0x58] sm:$0xff] %vm200_vm0, %v195_v9  ;;  %v196_v17 = vmax.f32 %v180_v11, 0.0  ;;  %v181_v18 = vadd.f32 %v165_v12, %v93_v5  ;;  %v166_v19 = vadd.f32 %v409_v10, %v146_v13 }
  0x24   :  { %v95_v20 = vadd.f32 %v395_v3, %v75_v15  ;;  %v147_v21 = vmul.f32 %v403_v7, %v298_v16 }
  0x25   :  { %213 = vst.msk [vmem:[#allocation2 + $0x60] sm:$0xff] %vm200_vm0, %v196_v17  ;;  %v197_v22 = vmax.f32 %v181_v18, 0.0  ;;  %v182_v23 = vadd.f32 %v166_v19, %v94_v14 }
  0x26   :  { %v167_v24 = vadd.f32 %v409_v10, %v147_v21 }
  0x27   :  { %214 = vst.msk [vmem:[#allocation2 + $0x68] sm:$0xff] %vm200_vm0, %v197_v22  ;;  %v198_v1 = vmax.f32 %v182_v23, 0.0 }
  0x28   :  { %v183_v25 = vadd.f32 %v167_v24, %v95_v20 }
  0x29   :  { %215 = vst.msk [vmem:[#allocation2 + $0x70] sm:$0xff] %vm200_vm0, %v198_v1 }
  0x2a   :  { %v199_v3 = vmax.f32 %v183_v25, 0.0 }
  0x2c   :  { %216 = vst.msk [vmem:[#allocation2 + $0x78] sm:$0xff] %vm200_vm0, %v199_v3 }
  0x2d   :  { %229 = dma.vmem_to_hbm [thread:$0]  %s222_s1, 2048, %s224_s9, [#allocation3], %s347_s10, %s347_s10, %s348_s4  }
  0x2e   :  { %344 = dma.done.wait [#allocation3], 2048  }
  0x2f   :  { %345 = vsyncadd [#allocation3], 4294965248 }
  0x30   :  { %234 = vsyncpa [#allocation3], 1 }

// kernel: bottleneck_forward.6
= control target key start
LH: loop header
LB: loop body
LE: loop exit
PB: predicated region body
PF: predicated region fallthrough
CT: control target
= control target key end

     0   :  { %s3189_s21 = smov 0   ;;  %s3801_s0 = inlined_call_operand.vmem [shape: bf16[2,8,8,128], index: 0, kind: input, shape index: {}]   ;;  %s3802_s1 = inlined_call_operand.vmem [shape: bf16[9,128,128], index: 1, kind: input, shape index: {}]   ;;  %s3803_s2 = inlined_call_operand.vmem [shape: f32[1,128], index: 2, kind: input, shape index: {}]   ;;  %s3804_s3 = inlined_call_operand.vmem [shape: f32[1,128], index: 3, kind: input, shape index: {}]   ;;  %s3805_s4 = inlined_call_operand.vmem [shape: bf16[128,128], index: 4, kind: output, shape index: {0}]   ;;  %s3806_s5 = inlined_call_operand.vmem [shape: f32[2,1,128], index: 5, kind: output, shape index: {1}]   ;;  %s3807_s6 = inlined_call_operand.vmem [shape: f32[2,1,128], index: 6, kind: output, shape index: {2}]  }
   0x1 LB: > { %s3195_s22 = sadd.s32 4294967295, %s3151_s21   ;;  %p2496_p0 = scmp.ge.s32.totalorder %s3151_s21, 1  ;;  %s3151_s21 = sphi %s3189_s21, %s17_s21  }
   0x2   : > { %p217_p1 = scmp.lt.s32.totalorder %s3151_s21, 3 }
   0x4   : > { %p218_p2 = pnand %p2496_p0, %p217_p1 }
   0x5   : > { %p253_p3 = scmp.lt.s32.totalorder (!%p218_p2), %s3195_s22, 1  ;;  %s2499_s28 = sshll.u32 (!%p218_p2), %s3195_s22, 3 }
   0x6   : > { %221 = sbr.rel (%p218_p2) target bundleno = 348 (0x15c), region = 36  ;;  %p259_p4 = scmp.lt.s32.totalorder (!%p218_p2), %s2499_s28, 15 }
   0xb   : > { %v3003_v0 = vld [vmem:[%s3802_s1 + $0x38] sm:$0xff]  ;;  %v3153_v2 = vmov 0   ;;  %v3002_v3 = vld [vmem:[%s3802_s1 + $0x30] sm:$0xff]  ;;  %s3211_s29 = scalar_select %p253_p3, %s3195_s22, 1  ;;  %v3001_v6 = vld [vmem:[%s3802_s1 + $0x28] sm:$0xff]  ;;  %vm428_vm0 = vcmask 1043456  }
   0xc   : > { %v3019_v1 = vld [vmem:[%s3802_s1 + $0xb8] sm:$0xff]  ;;  %279 = vst [vmem:[#allocation2 + $0x20] sm:$0xf] %v3153_v2  ;;  %3118 = vmatpush.bf16.msra.mxu1 %v3003_v0  ;;  %594 = vmatpush.bf16.msra.mxu0 %v3003_v0  ;;  %v3018_v4 = vld [vmem:[%s3802_s1 + $0xb0] sm:$0xff]  ;;  %v3017_v7 = vld [vmem:[%s3802_s1 + $0xa8] sm:$0xff]  ;;  %vm434_vm1 = vcmask 1040384  }
   0xd   : > { %281 = vst [vmem:[#allocation2 + $0x28] sm:$0xf] %v3153_v2  ;;  %1060 = vmatpush.bf16.msra.mxu2 %v3019_v1  ;;  %v3031_v5 = vld [vmem:[%s3802_s1 + $0xf8] sm:$0xff]  ;;  %s2991_s12 = sshll.u32 %s3211_s29, 5  ;;  %v3030_v8 = vld [vmem:[%s3802_s1 + $0xf0] sm:$0xff]  ;;  %v3029_v17 = vld [vmem:[%s3802_s1 + $0xe8] sm:$0xff]  ;;  %s266_s11 = scalar_lea.vmem %s3806_s5, %s3211_s29 }
   0xe   : > { %271 = vst [vmem:[#allocation2] sm:$0xf] %v3153_v2  ;;  %1210 = vmatpush.bf16.msra.mxu3 %v3031_v5  ;;  %s3234_s19 = scalar_lea.vmem %s3801_s0, %s2991_s12  ;;  %v3242_v11 = vld [vmem:[%s3803_s2] ss:$0 sm:$0xff]  ;;  %v2999_v33 = vld [vmem:[%s3802_s1 + $0x18] sm:$0xff]  ;;  %v2998_v40 = vld [vmem:[%s3802_s1 + $0x10] sm:$0xff]  ;;  %s269_s14 = scalar_lea.vmem %s3807_s6, %s3211_s29 }
   0xf   : > { %272 = vst [vmem:[#allocation2 + $0x4] sm:$0x1] %v3153_v2  ;;  %v3112_v9 = vld [vmem:[%s3234_s19 + $0x8] sm:$0xff]   ;;  %v3113_v10 = vld [vmem:[%s3234_s19 + $0x10] sm:$0xff]   ;;  %v3248_v14 = vld [vmem:[%s3804_s3] ss:$0 sm:$0xff] }
  0x10   : > { %3119 = vmatpush.bf16.msra.mxu1 %v3002_v3  ;;  %595 = vmatpush.bf16.msra.mxu0 %v3002_v3  ;;  %273 = vst [vmem:[#allocation2 + $0x8] sm:$0xf] %v3153_v2  ;;  %v3083_v12 = vunpack.c.h.bf16 %v3112_v9  ;;  %v3086_v13 = vunpack.c.l.bf16 %v3113_v10  ;;  %v3087_v15 = vunpack.c.h.bf16 %v3113_v10  ;;  %v3082_v16 = vunpack.c.l.bf16 %v3112_v9  ;;  %v3000_v20 = vld [vmem:[%s3802_s1 + $0x20] sm:$0xff]  ;;  %v3015_v36 = vld [vmem:[%s3802_s1 + $0x98] sm:$0xff]  ;;  %v3014_v45 = vld [vmem:[%s3802_s1 + $0x90] sm:$0xff]  ;;  %s3817_s28 = smov (!%p259_p4, %s2499_s28), 15 }
  0x11   : > { %1061 = vmatpush.bf16.msra.mxu2 %v3018_v4  ;;  %274 = vst [vmem:[#allocation2 + $0xc] sm:$0x1] %v3153_v2  ;;  %v3077_v21 = vld [vmem:[%s3234_s19] sm:$0xff]   ;;  %vm429_vm2 = vsmask.f32 7938  ;;  %v3027_v41 = vld [vmem:[%s3802_s1 + $0xd8] sm:$0xff] }
  0x12   : > { %275 = vst [vmem:[#allocation2 + $0x10] sm:$0xf] %v3153_v2  ;;  %1211 = vmatpush.bf16.msra.mxu3 %v3030_v8  ;;  %v314_v18 = vmul.f32 %v3242_v11, %v3083_v12  ;;  %v315_v19 = vmul.f32 %v3242_v11, %v3086_v13  ;;  %v316_v22 = vmul.f32 %v3242_v11, %v3087_v15  ;;  %v3016_v23 = vld [vmem:[%s3802_s1 + $0xa0] sm:$0xff]  ;;  %v3078_v26 = vunpack.c.l.bf16 %v3077_v21  ;;  %v3305_v51 = vld [vmem:[%s3234_s19 + $0x18] sm:$0xff]   ;;  %vm3315_vm3 = vmand %vm428_vm0, %vm429_vm2  ;;  %s2500_s30 = sshll.u32 %s3817_s28, 2 }
  0x13   : > { %276 = vst [vmem:[#allocation2 + $0x14] sm:$0x1] %v3153_v2  ;;  %v3079_v27 = vunpack.c.h.bf16 %v3077_v21  ;;  %v313_v28 = vmul.f32 %v3242_v11, %v3082_v16  ;;  %v3028_v31 = vld [vmem:[%s3802_s1 + $0xe0] sm:$0xff]  ;;  %v3090_v57 = vunpack.c.l.bf16 %v3305_v51  ;;  %vm435_vm4 = vsmask.f32 256  ;;  %v3026_v4 = vld [vmem:[%s3802_s1 + $0xd0] sm:$0xff]  ;;  %s3772_s8 = scalar_lea.vmem %s3805_s4, %s2500_s30 }
  0x14   : > { %3120 = vmatpush.bf16.msra.mxu1 %v3001_v6  ;;  %596 = vmatpush.bf16.msra.mxu0 %v3001_v6  ;;  %277 = vst [vmem:[#allocation2 + $0x18] sm:$0xf] %v3153_v2  ;;  %v326_v24 = vadd.f32 %v3248_v14, %v314_v18  ;;  %v327_v25 = vadd.f32 %v3248_v14, %v315_v19  ;;  %v452_v56 = vld [vmem:[#allocation2 + $0x20] sm:$0xf]  ;;  %v458_v59 = vld [vmem:[#allocation2 + $0x28] sm:$0xf]  ;;  %vm3352_vm7 = vmand %vm434_vm1, %vm435_vm4 }
  0x15   : > { %1062 = vmatpush.bf16.msra.mxu2 %v3017_v7  ;;  %278 = vst [vmem:[#allocation2 + $0x1c] sm:$0x1] %v3153_v2  ;;  %v311_v32 = vmul.f32 %v3242_v11, %v3078_v26  ;;  %v328_v34 = vadd.f32 %v3248_v14, %v316_v22  ;;  %v312_v35 = vmul.f32 %v3242_v11, %v3079_v27  ;;  %v3295_v42 = vld [vmem:[#allocation2] sm:$0xe]  ;;  %v2997_v5 = vld [vmem:[%s3802_s1 + $0x8] sm:$0xff]  ;;  %vm936_vm5 = vcmask 1042432  }
  0x16   : > { %280 = vst [vmem:[#allocation2 + $0x24] sm:$0x1] %v3153_v2  ;;  %1212 = vmatpush.bf16.msra.mxu3 %v3029_v17  ;;  %v334_v29 = vmax.f32 %v326_v24, 0.0  ;;  %v335_v30 = vmax.f32 %v327_v25, 0.0  ;;  %v325_v44 = vadd.f32 %v3248_v14, %v313_v28  ;;  %v2597_v3 = vrot.slane %v3295_v42, 9  ;;  %v3013_v12 = vld [vmem:[%s3802_s1 + $0x88] sm:$0xff] }
  0x17   : > { %282 = vst [vmem:[#allocation2 + $0x2c] sm:$0x1] %v3153_v2  ;;  %v323_v39 = vadd.f32 %v3248_v14, %v311_v32  ;;  %v324_v43 = vadd.f32 %v3248_v14, %v312_v35  ;;  %v336_v52 = vmax.f32 %v328_v34, 0.0  ;;  %vm937_vm6 = vcmask 1046532   ;;  %v431_v13 = vld [vmem:[#allocation2 + $0x8] sm:$0xf] }
  0x18   : > { %3121 = vmatpush.bf16.msra.mxu1 %v3000_v20  ;;  %597 = vmatpush.bf16.msra.mxu0 %v3000_v20  ;;  %283 = vst [vmem:[#allocation2 + $0x30] sm:$0xf] %v3153_v2  ;;  %v342_v37 = vpack.c.bf16 %v334_v29, %v334_v29  ;;  %v343_v38 = vpack.c.bf16 %v335_v30, %v335_v30  ;;  %v333_v62 = vmax.f32 %v325_v44, 0.0  ;;  %v437_v15 = vld [vmem:[#allocation2 + $0xc] sm:$0x1]  ;;  %v2996_v19 = vld [vmem:[%s3802_s1] sm:$0xff]  ;;  %vm3403_vm8 = vmor %vm936_vm5, %vm937_vm6 }
  0x19   : > { %1063 = vmatpush.bf16.msra.mxu2 %v3016_v23  ;;  %284 = vst [vmem:[#allocation2 + $0x34] sm:$0x1] %v3153_v2  ;;  %v331_v50 = vmax.f32 %v323_v39, 0.0  ;;  %v332_v53 = vmax.f32 %v324_v43, 0.0  ;;  %v344_v61 = vpack.c.bf16 %v336_v52, %v336_v52  ;;  %v3011_v24 = vld [vmem:[%s3802_s1 + $0x78] sm:$0xff]  ;;  %v3025_v26 = vld [vmem:[%s3802_s1 + $0xc8] sm:$0xff] }
  0x1a   : > { %285 = vst [vmem:[#allocation2 + $0x38] sm:$0xf] %v3153_v2  ;;  %v372_v46 = vshrl.u32 %v342_v37, 16  ;;  %v375_v47 = vshll.u32 %v342_v37, 16  ;;  %v380_v48 = vshrl.u32 %v343_v38, 16  ;;  %v383_v49 = vshll.u32 %v343_v38, 16  ;;  %1213 = vmatpush.bf16.msra.mxu3 %v3028_v31 }
  0x1b   : > { %286 = vst [vmem:[#allocation2 + $0x3c] sm:$0x1] %v3153_v2  ;;  %v339_v60 = vpack.c.bf16 %v331_v50, %v331_v50  ;;  %v3320_v63 = vpack.c.bf16 %v332_v53, %v332_v53  ;;  %v388_v8 = vshrl.u32 %v344_v61, 16  ;;  %v391_v16 = vshll.u32 %v344_v61, 16  ;;  %v3012_v30 = vld [vmem:[%s3802_s1 + $0x80] sm:$0xff]  ;;  %v3059_v37 = vld [vmem:[%s3802_s1 + $0x1b8] sm:$0xff] }
  0x1c   : > { %3122 = vmatpush.bf16.msra.mxu1 %v2999_v33  ;;  %598 = vmatpush.bf16.msra.mxu0 %v2999_v33  ;;  %287 = vst [vmem:[#allocation2 + $0x40] sm:$0xf] %v3153_v2  ;;  %v3307_v54 = vrot.slane %v372_v46, 7  ;;  %v3309_v55 = vrot.slane %v380_v48, 7  ;;  %v341_v18 = vpack.c.bf16 %v333_v62, %v333_v62  ;;  %v3039_v33 = vld [vmem:[%s3802_s1 + $0x138] sm:$0xff]  ;;  %v3024_v38 = vld [vmem:[%s3802_s1 + $0xc0] sm:$0xff] }
  0x1d   : > { %1064 = vmatpush.bf16.msra.mxu2 %v3015_v36  ;;  %288 = vst [vmem:[#allocation2 + $0x44] sm:$0x1] %v3153_v2  ;;  %v348_v6 = vshrl.u32 %v339_v60, 16  ;;  %v351_v7 = vshll.u32 %v339_v60, 16  ;;  %v3344_v22 = vrot.slane %v388_v8, 7  ;;  %v356_v23 = vshrl.u32 %v3320_v63, 16 }
  0x1e   : > { %289 = vst [vmem:[#allocation2 + $0x48] sm:$0xf] %v3153_v2  ;;  %v377_v0 = vor.u32 %v375_v47, %v3307_v54  ;;  %v385_v1 = vor.u32 %v383_v49, %v3309_v55  ;;  %1214 = vmatpush.bf16.msra.mxu3 %v3027_v41  ;;  %v359_v27 = vshll.u32 %v3320_v63, 16  ;;  %v364_v28 = vshrl.u32 %v341_v18, 16  ;;  %v3366_v34 = vld [vmem:[#allocation2 + $0x4] sm:$0x1] }
  0x1f   : > { %290 = vst [vmem:[#allocation2 + $0x4c] sm:$0x1] %v3153_v2  ;;  %v317_v2 = vmul.f32 %v3242_v11, %v3090_v57  ;;  %v464_v17 = vld [vmem:[#allocation2 + $0x30] sm:$0xf]  ;;  %v350_v20 = vrot.slane %v348_v6, 7  ;;  %v367_v29 = vshll.u32 %v341_v18, 16  ;;  %v393_v36 = vor.u32 %v391_v16, %v3344_v22 }
  0x20   : > { %3123 = vmatpush.bf16.msra.mxu1 %v2998_v40  ;;  %599 = vmatpush.bf16.msra.mxu0 %v2998_v40  ;;  %v453_v9 = vsel %vm3315_vm3, %v377_v0, %v452_v56  ;;  %v459_v10 = vsel %vm3315_vm3, %v385_v1, %v458_v59  ;;  %v358_v39 = vrot.slane %v356_v23, 7  ;;  %v366_v40 = vrot.slane %v364_v28, 7  ;;  %v440_v41 = vld [vmem:[#allocation2 + $0x10] sm:$0xf]  ;;  %v446_v47 = vld [vmem:[#allocation2 + $0x18] sm:$0xf] }
  0x21   : > { %1065 = vmatpush.bf16.msra.mxu2 %v3014_v45  ;;  %454 = vst [vmem:[#allocation2 + $0x20] sm:$0xf] %v453_v9  ;;  %v329_v21 = vadd.f32 %v3248_v14, %v317_v2  ;;  %v353_v31 = vor.u32 %v351_v7, %v350_v20  ;;  %v354_v32 = vrot.slane %v350_v20, 4  ;;  %v465_v46 = vsel %vm3315_vm3, %v393_v36, %v464_v17  ;;  %v443_v48 = vld [vmem:[#allocation2 + $0x14] sm:$0x1]  ;;  %v3067_v62 = vld [vmem:[%s3802_s1 + $0x1f8] sm:$0xff] }
  0x22   : > { %460 = vst [vmem:[#allocation2 + $0x28] sm:$0xf] %v459_v10  ;;  %1215 = vmatpush.bf16.msra.mxu3 %v3026_v4  ;;  %v449_v49 = vld [vmem:[#allocation2 + $0x1c] sm:$0x1]  ;;  %v361_v50 = vor.u32 %v359_v27, %v358_v39  ;;  %v362_v52 = vrot.slane %v358_v39, 4  ;;  %v369_v53 = vor.u32 %v367_v29, %v366_v40  ;;  %v370_v56 = vrot.slane %v366_v40, 4 }
  0x23   : > { %v337_v35 = vmax.f32 %v329_v21, 0.0  ;;  %v432_v43 = vsel %vm3315_vm3, %v353_v31, %v431_v13  ;;  %v438_v44 = vsel %vm3352_vm7, %v354_v32, %v437_v15  ;;  %v639_v57 = vld [vmem:[#allocation2] sm:$0xf]  ;;  %v941_v59 = vrot.slane %v3366_v34, 5  ;;  %v3010_v0 = vld [vmem:[%s3802_s1 + $0x70] sm:$0xff]  ;;  %v3009_v17 = vld [vmem:[%s3802_s1 + $0x68] sm:$0xff] }
  0x24   : > { %3124 = vmatpush.bf16.msra.mxu1 %v2997_v5  ;;  %600 = vmatpush.bf16.msra.mxu0 %v2997_v5  ;;  %433 = vst [vmem:[#allocation2 + $0x8] sm:$0xf] %v432_v43  ;;  %v3038_v1 = vld [vmem:[%s3802_s1 + $0x130] sm:$0xff]  ;;  %v441_v4 = vsel %vm3315_vm3, %v361_v50, %v440_v41  ;;  %v447_v5 = vsel %vm3315_vm3, %v369_v53, %v446_v47  ;;  %v2503_v2 = vld [vmem:[#allocation2] sm:$0xf]  ;;  %v659_v10 = vshrl.u32 %v639_v57, 16 }
  0x25   : > { %1066 = vmatpush.bf16.msra.mxu2 %v3013_v12  ;;  %v345_v45 = vpack.c.bf16 %v337_v35, %v337_v35  ;;  %439 = vst [vmem:[#allocation2 + $0xc] sm:$0x1] %v438_v44  ;;  %v444_v6 = vsel %vm3352_vm7, %v362_v52, %v443_v48  ;;  %v450_v9 = vsel %vm3352_vm7, %v370_v56, %v449_v49  ;;  %v470_v15 = vld [vmem:[#allocation2 + $0x38] sm:$0xf]  ;;  %v3058_v16 = vld [vmem:[%s3802_s1 + $0x1b0] sm:$0xff]  ;;  %v3037_v18 = vld [vmem:[%s3802_s1 + $0x128] sm:$0xff] }
  0x26   : > { %1216 = vmatpush.bf16.msra.mxu3 %v3025_v26  ;;  %466 = vst [vmem:[#allocation2 + $0x30] sm:$0xf] %v465_v46  ;;  %v662_v20 = vshll.u32 %v639_v57, 16  ;;  %v640_v21 = vld [vmem:[#allocation2 + $0x4] sm:$0x1]  ;;  %v3417_v23 = vrot.slane %v659_v10, 4  ;;  %v942_v28 = vsel %vm3403_vm8, %v2597_v3, %v941_v59 }
  0x27   : > { %v396_v60 = vshrl.u32 %v345_v45, 16  ;;  %v399_v61 = vshll.u32 %v345_v45, 16  ;;  %442 = vst [vmem:[#allocation2 + $0x10] sm:$0xf] %v441_v4  ;;  %v378_v35 = vrot.slane %v3307_v54, 4  ;;  %v3008_v42 = vld [vmem:[%s3802_s1 + $0x60] sm:$0xff]  ;;  %v996_v39 = vunpack.c.l.b16 %v942_v28 }
  0x28   : > { %3125 = vmatpush.bf16.msra.mxu1 %v2996_v19  ;;  %601 = vmatpush.bf16.msra.mxu0 %v2996_v19  ;;  %v2511_v63 = vld [vmem:[#allocation2 + $0x20] sm:$0xf]  ;;  %448 = vst [vmem:[#allocation2 + $0x18] sm:$0xf] %v447_v5  ;;  %v664_v34 = vrot.slane %v662_v20, 5  ;;  %v668_v41 = vshll.u32 %v640_v21, 16 }
  0x29   : > { %1067 = vmatpush.bf16.msra.mxu2 %v3012_v30  ;;  %v2994_v7 = vld [vmem:[#allocation2 + $0x24] sm:$0xf0]  ;;  %v3397_v8 = vrot.slane %v396_v60, 7  ;;  %445 = vst [vmem:[#allocation2 + $0x14] sm:$0x1] %v444_v6  ;;  %v3036_v54 = vld [vmem:[%s3802_s1 + $0x120] sm:$0xff] }
  0x2a   : > { %v2512_v12 = vor.u32 %v2994_v7, %v2511_v63  ;;  %1217 = vmatpush.bf16.msra.mxu3 %v3024_v38  ;;  %451 = vst [vmem:[#allocation2 + $0x1c] sm:$0x1] %v450_v9  ;;  %v455_v3 = vld [vmem:[#allocation2 + $0x24] sm:$0x1]  ;;  %v386_v38 = vrot.slane %v3309_v55, 4  ;;  %v665_v50 = vor.u32 %v664_v34, %v3417_v23  ;;  %v3007_v52 = vld [vmem:[%s3802_s1 + $0x58] sm:$0xff] }
  0x2b   : > { %v401_v19 = vor.u32 %v399_v61, %v3397_v8  ;;  %v2992_v26 = vld [vmem:[#allocation2 + $0x4] sm:$0xf0]  ;;  %v461_v43 = vld [vmem:[#allocation2 + $0x2c] sm:$0x1]  ;;  %vm655_vm9 = vsmask.f32 3328  ;;  %v456_v4 = vsel %vm3352_vm7, %v378_v35, %v455_v3 }
  0x2c   : > { %859 = vmatpush.bf16.msrb.mxu1 %v3011_v24  ;;  %1472 = vmatpush.bf16.msrb.mxu0 %v3039_v33  ;;  %v3057_v24 = vld [vmem:[%s3802_s1 + $0x1a8] sm:$0xff]  ;;  %v2504_v31 = vor.u32 %v2992_v26, %v2503_v2  ;;  %vm656_vm10 = vsmask.f32 7440  ;;  %v462_v9 = vsel %vm3352_vm7, %v386_v38, %v461_v43  ;;  %v3034_v21 = vld [vmem:[%s3802_s1 + $0x110] sm:$0xff]  ;;  %457 = vst [vmem:[#allocation2 + $0x24] sm:$0x1] %v456_v4 }
  0x2d   : > { %1821 = vmatpush.bf16.msrb.mxu2 %v3059_v37  ;;  %612 = vmatmul.bf16.vlgmr.msra.gmra.mxu1 %v2512_v12  ;;  %v906_v27 = vld [vmem:[#allocation2 + $0x8] sm:$0xe]  ;;  %v471_v29 = vsel %vm3315_vm3, %v401_v19, %v470_v15  ;;  %v907_v32 = vld [vmem:[#allocation2 + $0xc] sm:$0x1]  ;;  %v2515_v61 = vld [vmem:[#allocation2 + $0x30] sm:$0xf] }
  0x2e   : > { %2083 = vmatpush.bf16.msrb.mxu3 %v3067_v62  ;;  %v2671_v30 = vld [vmem:[#allocation2 + $0x8] sm:$0xf]  ;;  %v2598_v33 = vrot.slane %v906_v27, 9  ;;  %472 = vst [vmem:[#allocation2 + $0x38] sm:$0xf] %v471_v29  ;;  %v945_v36 = vrot.slane %v907_v32, 5  ;;  %602 = vmatmul.bf16.vlgmr.msra.gmra.mxu0 %v2504_v31  ;;  %vm3478_vm11 = vmor %vm655_vm9, %vm656_vm10 }
  0x2f   : > { %v641_v37 = vld [vmem:[#allocation2 + $0x8] sm:$0xf]  ;;  %v3020_v40 = vld [vmem:[#allocation2 + $0xc] sm:$0xf0]  ;;  %v910_v49 = vld [vmem:[#allocation2 + $0x18] sm:$0xe] }
  0x30   : > { %860 = vmatpush.bf16.msrb.mxu1 %v3010_v0  ;;  %1473 = vmatpush.bf16.msrb.mxu0 %v3038_v1  ;;  %v946_v44 = vsel %vm3403_vm8, %v2598_v33, %v945_v36  ;;  %v2672_v45 = vor.u32 %v3020_v40, %v2671_v30  ;;  %v908_v46 = vld [vmem:[#allocation2 + $0x10] sm:$0xe]  ;;  %v673_v47 = vshrl.u32 %v641_v37, 16  ;;  %v909_v55 = vld [vmem:[#allocation2 + $0x14] sm:$0x1]  ;;  %v676_v59 = vshll.u32 %v641_v37, 16 }
  0x31   : > { %1822 = vmatpush.bf16.msrb.mxu2 %v3058_v16  ;;  %v997_v48 = vunpack.c.l.b16 %v946_v44  ;;  %v911_v53 = vld [vmem:[#allocation2 + $0x1c] sm:$0x1]  ;;  %v642_v56 = vld [vmem:[#allocation2 + $0xc] sm:$0x1]  ;;  %v2599_v63 = vrot.slane %v908_v46, 9  ;;  %v3445_v0 = vrot.slane %v668_v41, 5 }
  0x32   : > { %1218 = vmatmul.bf16.vlgmr.msra.gmra.mxu3 %v2672_v45  ;;  %v675_v57 = vrot.slane %v673_v47, 4  ;;  %v3035_v62 = vld [vmem:[%s3802_s1 + $0x118] sm:$0xff]  ;;  %v3066_v1 = vld [vmem:[%s3802_s1 + $0x1f0] sm:$0xff]  ;;  %v949_v6 = vrot.slane %v909_v55, 5  ;;  %v678_v7 = vrot.slane %v676_v59, 5  ;;  %v2600_v10 = vrot.slane %v910_v49, 9 }
  0x33   : > { %v1004_v60 = vpack.c.b16 %v997_v48, %v996_v39  ;;  %v1255_v2 = vld [vmem:[#allocation2 + $0x8] sm:$0xf]  ;;  %v953_v12 = vrot.slane %v911_v53, 5  ;;  %v3454_v15 = vrot.slane %v665_v50, 4  ;;  %v682_v16 = vshll.u32 %v642_v56, 16  ;;  %2084 = vmatpush.bf16.msrb.mxu3 %v3066_v1  ;;  %v3056_v39 = vld [vmem:[%s3802_s1 + $0x1a0] sm:$0xff] }
  0x34   : > { %861 = vmatpush.bf16.msrb.mxu1 %v3009_v17  ;;  %1474 = vmatpush.bf16.msrb.mxu0 %v3037_v18  ;;  %v1257_v17 = vld [vmem:[#allocation2 + $0x10] sm:$0xf]  ;;  %v2993_v20 = vld [vmem:[#allocation2 + $0x14] sm:$0xf0]  ;;  %v679_v23 = vor.u32 %v678_v7, %v675_v57  ;;  %v1272_v26 = vshrl.u32 %v1255_v2, 16  ;;  %v1275_v27 = vshll.u32 %v1255_v2, 16  ;;  %v950_v32 = vsel %vm3403_vm8, %v2599_v63, %v949_v6 }
  0x35   : > { %1823 = vmatpush.bf16.msrb.mxu2 %v3057_v24  ;;  %v2995_v5 = vld [vmem:[#allocation2 + $0x34] sm:$0xf0]  ;;  %v3006_v18 = vld [vmem:[%s3802_s1 + $0x50] sm:$0xff]  ;;  %v1256_v24 = vld [vmem:[#allocation2 + $0xc] sm:$0x1]  ;;  %v1286_v30 = vshrl.u32 %v1257_v17, 16  ;;  %v671_v1 = vsel %vm3478_vm11, %v3454_v15, %v3445_v0 }
  0x36   : > { %1068 = vmatmul.bf16.vlgmr.msra.gmra.mxu2 %v1004_v60  ;;  %v2507_v19 = vld [vmem:[#allocation2 + $0x10] sm:$0xf]  ;;  %v2516_v28 = vor.u32 %v2995_v5, %v2515_v61  ;;  %v1258_v29 = vld [vmem:[#allocation2 + $0x14] sm:$0x1]  ;;  %v1289_v31 = vshll.u32 %v1257_v17, 16  ;;  %v1274_v35 = vrot.slane %v1272_v26, 4 }
  0x37   : > { %463 = vst [vmem:[#allocation2 + $0x2c] sm:$0x1] %v462_v9  ;;  %v3464_v33 = vld [vmem:[#allocation2 + $0x18] sm:$0xf]  ;;  %v3466_v34 = vld [vmem:[#allocation2 + $0x1c] sm:$0xf0]  ;;  %v2508_v47 = vor.u32 %v2993_v20, %v2507_v19 }
  0x38   : > { %862 = vmatpush.bf16.msrb.mxu1 %v3008_v42  ;;  %1475 = vmatpush.bf16.msrb.mxu0 %v3036_v54  ;;  %v1277_v36 = vrot.slane %v1275_v27, 5  ;;  %v954_v42 = vsel %vm3403_vm8, %v2600_v10, %v953_v12  ;;  %v684_v37 = vrot.slane %v682_v16, 5  ;;  %v1288_v3 = vrot.slane %v1286_v30, 4  ;;  %v3065_v40 = vld [vmem:[%s3802_s1 + $0x1e8] sm:$0xff]  ;;  %v643_v46 = vld [vmem:[#allocation2 + $0x10] sm:$0xf] }
  0x39   : > { %v1291_v38 = vrot.slane %v1289_v31, 5  ;;  %v680_v43 = vrot.slane %v679_v23, 4  ;;  %v1281_v54 = vshll.u32 %v1256_v24, 16  ;;  %v1295_v45 = vshll.u32 %v1258_v29, 16  ;;  %v3005_v48 = vld [vmem:[%s3802_s1 + $0x48] sm:$0xff]  ;;  %1824 = vmatpush.bf16.msrb.mxu2 %v3056_v39  ;;  %v3055_v61 = vld [vmem:[%s3802_s1 + $0x198] sm:$0xff]  ;;  %2085 = vmatpush.bf16.msrb.mxu3 %v3065_v40 }
  0x3a   : > { %v1278_v44 = vor.u32 %v1277_v36, %v1274_v35  ;;  %v645_v49 = vld [vmem:[#allocation2 + $0x18] sm:$0xf]  ;;  %v687_v50 = vshrl.u32 %v643_v46, 16  ;;  %v394_v53 = vrot.slane %v3344_v22, 4  ;;  %v402_v56 = vrot.slane %v3397_v8, 4  ;;  %v3033_v57 = vld [vmem:[%s3802_s1 + $0x108] sm:$0xff] }
  0x3b   : > { %v1292_v55 = vor.u32 %v1291_v38, %v1288_v3  ;;  %v701_v59 = vshrl.u32 %v645_v49, 16  ;;  %v704_v60 = vshll.u32 %v645_v49, 16  ;;  %v999_v63 = vunpack.c.l.b16 %v954_v42  ;;  %v3499_v5 = vld [vmem:[#allocation2 + $0x20] sm:$0xe]  ;;  %v3501_v6 = vld [vmem:[#allocation2 + $0x28] sm:$0xe] }
  0x3c   : > { %863 = vmatpush.bf16.msrb.mxu1 %v3007_v52  ;;  %1476 = vmatpush.bf16.msrb.mxu0 %v3035_v62  ;;  %v690_v52 = vshll.u32 %v643_v46, 16  ;;  %v998_v62 = vunpack.c.l.b16 %v950_v32  ;;  %v2676_v4 = vor.u32 %v3466_v34, %v3464_v33  ;;  %v3004_v7 = vld [vmem:[%s3802_s1 + $0x40] sm:$0xff]  ;;  %v685_v2 = vsel %vm3478_vm11, %v680_v43, %v684_v37  ;;  %v644_v15 = vld [vmem:[#allocation2 + $0x14] sm:$0x1]  ;;  %v1259_v26 = vld [vmem:[#allocation2 + $0x18] sm:$0xf] }
  0x3d   : > { %617 = vmatmul.bf16.gmra.mxu1 %v2516_v28  ;;  %v3032_v9 = vld [vmem:[%s3802_s1 + $0x100] sm:$0xff]  ;;  %v1279_v0 = vrot.slane %v1278_v44, 4  ;;  %v1283_v10 = vrot.slane %v1281_v54, 5  ;;  %v1297_v12 = vrot.slane %v1295_v45, 5  ;;  %v1293_v16 = vrot.slane %v1292_v55, 4  ;;  %1825 = vmatpush.bf16.msrb.mxu2 %v3055_v61  ;;  %v3047_v30 = vld [vmem:[%s3802_s1 + $0x178] sm:$0xff] }
  0x3e   : > { %607 = vmatmul.bf16.gmra.mxu0 %v2508_v47  ;;  %v913_v17 = vld [vmem:[#allocation2 + $0x24] sm:$0x1]  ;;  %v692_v19 = vrot.slane %v690_v52, 5  ;;  %v703_v23 = vrot.slane %v701_v59, 4  ;;  %v706_v24 = vrot.slane %v704_v60, 5  ;;  %v1005_v27 = vpack.c.b16 %v999_v63, %v998_v62  ;;  %v3532_v37 = vld [vmem:[%s3802_s1 + $0x238] sm:$0xff] }
  0x3f   : > { %v3064_v20 = vld [vmem:[%s3802_s1 + $0x1e0] sm:$0xff]  ;;  %v3518_v28 = vunpack.c.l.b16 %v671_v1  ;;  %v3520_v29 = vunpack.c.l.b16 %v685_v2  ;;  %v2601_v31 = vrot.slane %v3499_v5, 9  ;;  %v646_v32 = vld [vmem:[#allocation2 + $0x1c] sm:$0x1]  ;;  %v1284_v34 = vsel %vm3478_vm11, %v1279_v0, %v1283_v10  ;;  %v3046_v39 = vld [vmem:[%s3802_s1 + $0x170] sm:$0xff] }
  0x40   : > { %864 = vmatpush.bf16.msrb.mxu1 %v3006_v18  ;;  %1477 = vmatpush.bf16.msrb.mxu0 %v3034_v21  ;;  %v3511_v18 = vrot.slane %v687_v50, 4  ;;  %v3516_v21 = vld [vmem:[#allocation2 + $0x2c] sm:$0x1]  ;;  %v1261_v33 = vld [vmem:[#allocation2 + $0x20] sm:$0xf]  ;;  %v957_v35 = vrot.slane %v913_v17, 5  ;;  %v1298_v3 = vsel %vm3478_vm11, %v1293_v16, %v1297_v12  ;;  %v707_v45 = vor.u32 %v706_v24, %v703_v23 }
  0x41   : > { %2086 = vmatpush.bf16.msrb.mxu3 %v3064_v20  ;;  %v2602_v36 = vrot.slane %v3501_v6, 9  ;;  %v696_v42 = vshll.u32 %v644_v15, 16  ;;  %v961_v38 = vrot.slane %v3516_v21, 5  ;;  %v1300_v40 = vshrl.u32 %v1259_v26, 16  ;;  %v467_v44 = vld [vmem:[#allocation2 + $0x34] sm:$0x1] }
  0x42   : > { %1223 = vmatmul.bf16.gmra.mxu3 %v2676_v4  ;;  %v1303_v43 = vshll.u32 %v1259_v26, 16  ;;  %v693_v54 = vor.u32 %v692_v19, %v3511_v18  ;;  %v710_v46 = vshll.u32 %v646_v32, 16  ;;  %v1260_v47 = vld [vmem:[#allocation2 + $0x1c] sm:$0x1]  ;;  %v803_v49 = vpack.c.b16 %v3520_v29, %v3518_v28  ;;  %v1262_v50 = vld [vmem:[#allocation2 + $0x24] sm:$0x1] }
  0x43   : > { %v473_v55 = vld [vmem:[#allocation2 + $0x3c] sm:$0x1]  ;;  %v1302_v52 = vrot.slane %v1300_v40, 4  ;;  %v1317_v59 = vshll.u32 %v1261_v33, 16  ;;  %v3054_v60 = vld [vmem:[%s3802_s1 + $0x190] sm:$0xff]  ;;  %v1408_v61 = vunpack.c.l.b16 %v1284_v34  ;;  %v3546_v62 = vrot.slane %v696_v42, 5 }
  0x44   : > { %865 = vmatpush.bf16.msrb.mxu1 %v3005_v48  ;;  %1478 = vmatpush.bf16.msrb.mxu0 %v3033_v57  ;;  %v1314_v48 = vshrl.u32 %v1261_v33, 16  ;;  %v1305_v57 = vrot.slane %v1303_v43, 5  ;;  %v3549_v63 = vld [vmem:[#allocation2 + $0x28] sm:$0xf]  ;;  %v3551_v1 = vld [vmem:[#allocation2 + $0x2c] sm:$0xf0]  ;;  %v468_v5 = vsel %vm3352_vm7, %v394_v53, %v467_v44  ;;  %v958_v0 = vsel %vm3403_vm8, %v2601_v31, %v957_v35 }
  0x45   : > { %v3560_v6 = vld [vmem:[%s3802_s1 + $0x230] sm:$0xff]  ;;  %v647_v2 = vld [vmem:[#allocation2 + $0x20] sm:$0xf]  ;;  %v1319_v10 = vrot.slane %v1317_v59, 5  ;;  %469 = vst [vmem:[#allocation2 + $0x34] sm:$0x1] %v468_v5  ;;  %v474_v22 = vsel %vm3352_vm7, %v402_v56, %v473_v55  ;;  %1826 = vmatpush.bf16.msrb.mxu2 %v3054_v60  ;;  %v962_v18 = vsel %vm3403_vm8, %v2602_v36, %v961_v38  ;;  %v1000_v28 = vunpack.c.l.b16 %v958_v0 }
  0x46   : > { %1073 = vmatmul.bf16.gmra.mxu2 %v1005_v27  ;;  %v1316_v4 = vrot.slane %v1314_v48, 4  ;;  %v649_v53 = vld [vmem:[#allocation2 + $0x28] sm:$0xf]  ;;  %v694_v12 = vrot.slane %v693_v54, 4  ;;  %v708_v15 = vrot.slane %v707_v45, 4  ;;  %v712_v16 = vrot.slane %v710_v46, 5 }
  0x47   : > { %v1309_v17 = vshll.u32 %v1260_v47, 16  ;;  %475 = vst [vmem:[#allocation2 + $0x3c] sm:$0x1] %v474_v22  ;;  %v3045_v19 = vld [vmem:[%s3802_s1 + $0x168] sm:$0xff]  ;;  %v1306_v8 = vor.u32 %v1305_v57, %v1302_v52  ;;  %v1323_v20 = vshll.u32 %v1262_v50, 16  ;;  %v715_v21 = vshrl.u32 %v647_v2, 16 }
  0x48   : > { %866 = vmatpush.bf16.msrb.mxu1 %v3004_v7  ;;  %1479 = vmatpush.bf16.msrb.mxu0 %v3032_v9  ;;  %v3063_v7 = vld [vmem:[%s3802_s1 + $0x1d8] sm:$0xff]  ;;  %v1409_v9 = vunpack.c.l.b16 %v1298_v3  ;;  %v1320_v56 = vor.u32 %v1319_v10, %v1316_v4  ;;  %v718_v23 = vshll.u32 %v647_v2, 16  ;;  %v729_v24 = vshrl.u32 %v649_v53, 16  ;;  %v3585_v31 = vld [vmem:[%s3802_s1 + $0x228] sm:$0xff]  ;;  %v3044_v36 = vld [vmem:[%s3802_s1 + $0x160] sm:$0xff] }
  0x49   : > { %2087 = vmatpush.bf16.msrb.mxu3 %v3063_v7  ;;  %v732_v26 = vshll.u32 %v649_v53, 16  ;;  %v2680_v29 = vor.u32 %v3551_v1, %v3549_v63  ;;  %v1001_v32 = vunpack.c.l.b16 %v962_v18  ;;  %v699_v33 = vsel %vm3478_vm11, %v694_v12, %v3546_v62  ;;  %v1263_v42 = vld [vmem:[#allocation2 + $0x28] sm:$0xf]  ;;  %v3052_v43 = vld [vmem:[%s3802_s1 + $0x180] sm:$0xff]  ;;  %v3599_v45 = vld [vmem:[#allocation2 + $0x30] sm:$0xe] }
  0x4a   : > { %v1416_v27 = vpack.c.b16 %v1409_v9, %v1408_v61  ;;  %v713_v34 = vsel %vm3478_vm11, %v708_v15, %v712_v16  ;;  %v1311_v35 = vrot.slane %v1309_v17, 5  ;;  %v1307_v3 = vrot.slane %v1306_v8, 4  ;;  %v650_v55 = vld [vmem:[#allocation2 + $0x2c] sm:$0x1]  ;;  %v3062_v57 = vld [vmem:[%s3802_s1 + $0x1d0] sm:$0xff] }
  0x4b   : > { %v1325_v38 = vrot.slane %v1323_v20, 5  ;;  %v717_v40 = vrot.slane %v715_v21, 4  ;;  %v3091_v44 = vunpack.c.h.bf16 %v3305_v51  ;;  %v1321_v54 = vrot.slane %v1320_v56, 4  ;;  %v918_v60 = vld [vmem:[#allocation2 + $0x38] sm:$0xe] }
  0x4c   : > { %1670 = vmatpush.bf16.msra.mxu1 %v3047_v30  ;;  %2281 = vmatpush.bf16.msra.mxu0 %v3532_v37  ;;  %v3053_v30 = vld [vmem:[%s3802_s1 + $0x188] sm:$0xff]  ;;  %v720_v46 = vrot.slane %v718_v23, 5  ;;  %v731_v47 = vrot.slane %v729_v24, 4  ;;  %v734_v48 = vrot.slane %v732_v26, 5  ;;  %v1328_v50 = vshrl.u32 %v1263_v42, 16  ;;  %v3072_v24 = vld [vmem:[%s3802_s1 + $0x220] sm:$0xff] }
  0x4d   : > { %867 = vmatmul.bf16.vlgmr.msrb.gmra.mxu1 %v803_v49  ;;  %1827 = vmatpush.bf16.msrb.mxu2 %v3053_v30  ;;  %v318_v49 = vmul.f32 %v3242_v11, %v3091_v44  ;;  %v1331_v52 = vshll.u32 %v1263_v42, 16  ;;  %v1006_v59 = vpack.c.b16 %v1001_v32, %v1000_v28  ;;  %v3606_v51 = vunpack.c.l.b16 %v699_v33  ;;  %v3043_v11 = vld [vmem:[%s3802_s1 + $0x158] sm:$0xff]  ;;  %v1265_v5 = vld [vmem:[#allocation2 + $0x30] sm:$0xf]  ;;  %v917_v2 = vld [vmem:[#allocation2 + $0x34] sm:$0x1] }
  0x4e   : > { %1480 = vmatmul.bf16.vlgmr.msrb.gmra.mxu0 %v1416_v27  ;;  %v3608_v62 = vunpack.c.l.b16 %v713_v34  ;;  %v1312_v63 = vsel %vm3478_vm11, %v1307_v3, %v1311_v35  ;;  %v2603_v1 = vrot.slane %v3599_v45, 9  ;;  %v1326_v7 = vsel %vm3478_vm11, %v1321_v54, %v1325_v38  ;;  %v919_v9 = vld [vmem:[#allocation2 + $0x3c] sm:$0x1]  ;;  %v1264_v15 = vld [vmem:[#allocation2 + $0x2c] sm:$0x1]  ;;  %2088 = vmatpush.bf16.msrb.mxu3 %v3062_v57 }
  0x4f   : > { %v330_v4 = vadd.f32 %v3248_v14, %v318_v49  ;;  %v721_v0 = vor.u32 %v720_v46, %v717_v40  ;;  %v735_v10 = vor.u32 %v734_v48, %v731_v47  ;;  %v738_v22 = vshll.u32 %v650_v55, 16  ;;  %v3061_v26 = vld [vmem:[%s3802_s1 + $0x1c8] sm:$0xff]  ;;  %v1266_v44 = vld [vmem:[#allocation2 + $0x34] sm:$0x1]  ;;  %v653_v47 = vld [vmem:[#allocation2 + $0x38] sm:$0xf] }
  0x50   : > { %1671 = vmatpush.bf16.msra.mxu1 %v3046_v39  ;;  %2282 = vmatpush.bf16.msra.mxu0 %v3560_v6  ;;  %v648_v39 = vld [vmem:[#allocation2 + $0x24] sm:$0x1]  ;;  %v2604_v53 = vrot.slane %v918_v60, 9  ;;  %v1330_v16 = vrot.slane %v1328_v50, 4  ;;  %v1333_v17 = vrot.slane %v1331_v52, 5  ;;  %v3620_v18 = vunpack.c.l.b16 %v1312_v63 }
  0x51   : > { %v724_v61 = vshll.u32 %v648_v39, 16  ;;  %1828 = vmatpush.bf16.msrb.mxu2 %v3052_v43  ;;  %v338_v12 = vmax.f32 %v330_v4, 0.0  ;;  %v1345_v8 = vshll.u32 %v1265_v5, 16  ;;  %v3622_v20 = vunpack.c.l.b16 %v1326_v7  ;;  %v476_v43 = vld [vmem:[#allocation2 + $0x40] sm:$0xf] }
  0x52   : > { %1228 = vmatmul.bf16.gmra.mxu3 %v2680_v29  ;;  %v965_v21 = vrot.slane %v917_v2, 5  ;;  %v969_v56 = vrot.slane %v919_v9, 5  ;;  %v722_v27 = vrot.slane %v721_v0, 4  ;;  %v736_v28 = vrot.slane %v735_v10, 4  ;;  %v479_v55 = vld [vmem:[#allocation2 + $0x44] sm:$0x1] }
  0x53   : > { %v726_v14 = vrot.slane %v724_v61, 5  ;;  %v346_v23 = vpack.c.bf16 %v338_v12, %v338_v12  ;;  %v740_v29 = vrot.slane %v738_v22, 5  ;;  %v1337_v30 = vshll.u32 %v1264_v15, 16  ;;  %2089 = vmatpush.bf16.msrb.mxu3 %v3061_v26  ;;  %v3060_v60 = vld [vmem:[%s3802_s1 + $0x1c0] sm:$0xff]  ;;  %v1267_v2 = vld [vmem:[#allocation2 + $0x38] sm:$0xf] }
  0x54   : > { %1672 = vmatpush.bf16.msra.mxu1 %v3045_v19  ;;  %2283 = vmatpush.bf16.msra.mxu0 %v3585_v31  ;;  %v1342_v19 = vshrl.u32 %v1265_v5, 16  ;;  %v804_v32 = vpack.c.b16 %v3608_v62, %v3606_v51  ;;  %v1334_v35 = vor.u32 %v1333_v17, %v1330_v16  ;;  %v1347_v3 = vrot.slane %v1345_v8, 5  ;;  %v3071_v51 = vld [vmem:[%s3802_s1 + $0x218] sm:$0xff]  ;;  %v652_v10 = vld [vmem:[#allocation2 + $0x34] sm:$0x1]  ;;  %v3040_v16 = vld [vmem:[%s3802_s1 + $0x140] sm:$0xff] }
  0x55   : > { %3126 = vmatpush.bf16.msra.mxu2 %v3532_v37  ;;  %v3042_v37 = vld [vmem:[%s3802_s1 + $0x150] sm:$0xff]  ;;  %v404_v33 = vshrl.u32 %v346_v23, 16  ;;  %v407_v34 = vshll.u32 %v346_v23, 16  ;;  %v1417_v38 = vpack.c.b16 %v3622_v20, %v3620_v18  ;;  %v966_v39 = vsel %vm3403_vm8, %v2603_v1, %v965_v21 }
  0x56   : > { %1078 = vmatmul.bf16.gmra.mxu2 %v1006_v59  ;;  %v1344_v42 = vrot.slane %v1342_v19, 4  ;;  %v727_v54 = vsel %vm3478_vm11, %v722_v27, %v726_v14  ;;  %v741_v45 = vsel %vm3478_vm11, %v736_v28, %v740_v29  ;;  %v1339_v46 = vrot.slane %v1337_v30, 5  ;;  %v3041_v59 = vld [vmem:[%s3802_s1 + $0x148] sm:$0xff]  ;;  %v1866_v1 = vld [vmem:[#allocation2 + $0x10] sm:$0xf] }
  0x57   : > { %v406_v40 = vrot.slane %v404_v33, 7  ;;  %v1335_v52 = vrot.slane %v1334_v35, 4  ;;  %v1002_v61 = vunpack.c.l.b16 %v966_v39  ;;  %v1351_v63 = vshll.u32 %v1266_v44, 16  ;;  %2090 = vmatpush.bf16.msrb.mxu3 %v3060_v60  ;;  %v654_v19 = vld [vmem:[#allocation2 + $0x3c] sm:$0x1] }
  0x58   : > { %1673 = vmatpush.bf16.msra.mxu1 %v3044_v36  ;;  %2284 = vmatpush.bf16.msra.mxu0 %v3072_v24  ;;  %v651_v36 = vld [vmem:[#allocation2 + $0x30] sm:$0xf]  ;;  %v757_v4 = vshrl.u32 %v653_v47, 16  ;;  %v760_v5 = vshll.u32 %v653_v47, 16  ;;  %v3660_v9 = vunpack.c.l.b16 %v727_v54  ;;  %v3662_v0 = vunpack.c.l.b16 %v741_v45  ;;  %v1869_v28 = vld [vmem:[#allocation2 + $0x1c] sm:$0x1] }
  0x59   : > { %3127 = vmatpush.bf16.msra.mxu2 %v3560_v6  ;;  %v970_v6 = vsel %vm3403_vm8, %v2604_v53, %v969_v56  ;;  %v743_v48 = vshrl.u32 %v651_v36, 16  ;;  %v409_v49 = vor.u32 %v407_v34, %v406_v40  ;;  %v410_v50 = vrot.slane %v406_v40, 4  ;;  %v1868_v53 = vld [vmem:[#allocation2 + $0x18] sm:$0xf]  ;;  %v1867_v56 = vld [vmem:[#allocation2 + $0x14] sm:$0x1] }
  0x5a   : > { %v746_v57 = vshll.u32 %v651_v36, 16  ;;  %v1003_v62 = vunpack.c.l.b16 %v970_v6  ;;  %v1340_v58 = vsel %vm3478_vm11, %v1335_v52, %v1339_v46  ;;  %v1883_v15 = vshrl.u32 %v1866_v1, 16  ;;  %v2683_v30 = vld [vmem:[#allocation2 + $0x38] sm:$0xf] }
  0x5b   : > { %v480_v7 = vsel %vm3352_vm7, %v410_v50, %v479_v55  ;;  %v745_v22 = vrot.slane %v743_v48, 4  ;;  %v1886_v25 = vshll.u32 %v1866_v1, 16  ;;  %v1353_v14 = vrot.slane %v1351_v63, 5 }
  0x5c   : > { %1674 = vmatpush.bf16.msra.mxu1 %v3043_v11  ;;  %v477_v11 = vsel %vm3315_vm3, %v409_v49, %v476_v43  ;;  %2285 = vmatpush.bf16.msra.mxu0 %v3071_v51  ;;  %v748_v12 = vrot.slane %v746_v57, 5  ;;  %481 = vst [vmem:[#allocation2 + $0x44] sm:$0x1] %v480_v7  ;;  %v1007_v17 = vpack.c.b16 %v1003_v62, %v1002_v61  ;;  %v1356_v8 = vshrl.u32 %v1267_v2, 16  ;;  %v3070_v49 = vld [vmem:[%s3802_s1 + $0x210] sm:$0xff] }
  0x5d   : > { %3128 = vmatpush.bf16.msra.mxu2 %v3585_v31  ;;  %872 = vmatmul.bf16.gmra.mxu1 %v804_v32  ;;  %v1348_v31 = vor.u32 %v1347_v3, %v1344_v42  ;;  %478 = vst [vmem:[#allocation2 + $0x40] sm:$0xf] %v477_v11  ;;  %v759_v20 = vrot.slane %v757_v4, 4  ;;  %v762_v21 = vrot.slane %v760_v5, 5  ;;  %v1885_v23 = vrot.slane %v1883_v15, 4  ;;  %v3068_v15 = vld [vmem:[%s3802_s1 + $0x200] sm:$0xff] }
  0x5e   : > { %1485 = vmatmul.bf16.gmra.mxu0 %v1417_v38  ;;  %v3671_v26 = vunpack.c.l.b16 %v1340_v58  ;;  %v1359_v27 = vshll.u32 %v1267_v2, 16  ;;  %v1897_v29 = vshrl.u32 %v1868_v53, 16  ;;  %v749_v32 = vor.u32 %v748_v12, %v745_v22  ;;  %v1268_v42 = vld [vmem:[#allocation2 + $0x3c] sm:$0x1] }
  0x5f   : > { %v1349_v18 = vrot.slane %v1348_v31, 4  ;;  %v752_v33 = vshll.u32 %v652_v10, 16  ;;  %v766_v34 = vshll.u32 %v654_v19, 16  ;;  %v1900_v35 = vshll.u32 %v1868_v53, 16  ;;  %v3069_v31 = vld [vmem:[%s3802_s1 + $0x208] sm:$0xff] }
  0x60   : > { %1675 = vmatpush.bf16.msra.mxu1 %v3042_v37  ;;  %v1888_v37 = vrot.slane %v1886_v25, 5  ;;  %v1358_v3 = vrot.slane %v1356_v8, 4  ;;  %v1892_v38 = vshll.u32 %v1867_v56, 16  ;;  %v1899_v39 = vrot.slane %v1897_v29, 4  ;;  %2286 = vmatpush.bf16.msra.mxu0 %v3070_v49  ;;  %v1872_v53 = vld [vmem:[#allocation2 + $0x28] sm:$0xf] }
  0x61   : > { %3129 = vmatpush.bf16.msra.mxu2 %v3072_v24  ;;  %v805_v24 = vpack.c.b16 %v3662_v0, %v3660_v9  ;;  %v1354_v36 = vsel %vm3478_vm11, %v1349_v18, %v1353_v14  ;;  %v763_v40 = vor.u32 %v762_v21, %v759_v20  ;;  %v1902_v54 = vrot.slane %v1900_v35, 5  ;;  %v1870_v9 = vld [vmem:[#allocation2 + $0x20] sm:$0xf]  ;;  %v2839_v25 = vld [vmem:[#allocation2 + $0x10] sm:$0xf] }
  0x62   : > { %v1889_v44 = vor.u32 %v1888_v37, %v1885_v23  ;;  %v1906_v45 = vshll.u32 %v1869_v28, 16  ;;  %v1361_v47 = vrot.slane %v1359_v27, 5  ;;  %v1413_v50 = vunpack.c.l.b16 %v1354_v36  ;;  %v3048_v19 = vld [vmem:[#allocation2 + $0x14] sm:$0xf0] }
  0x63   : > { %v750_v52 = vrot.slane %v749_v32, 4  ;;  %v754_v57 = vrot.slane %v752_v33, 5  ;;  %v1365_v60 = vshll.u32 %v1268_v42, 16  ;;  %v1894_v1 = vrot.slane %v1892_v38, 5 }
  0x64   : > { %1676 = vmatpush.bf16.msra.mxu1 %v3041_v59  ;;  %v3023_v6 = vld [vmem:[#allocation2 + $0x3c] sm:$0xf0]  ;;  %v1903_v59 = vor.u32 %v1902_v54, %v1899_v39  ;;  %v1890_v63 = vrot.slane %v1889_v44, 4  ;;  %v1908_v4 = vrot.slane %v1906_v45, 5  ;;  %v764_v5 = vrot.slane %v763_v40, 4  ;;  %2287 = vmatpush.bf16.msra.mxu0 %v3069_v31 }
  0x65   : > { %3130 = vmatpush.bf16.msra.mxu2 %v3071_v51  ;;  %v1269_v43 = vld [vmem:[#allocation2 + $0x40] sm:$0xf]  ;;  %v2684_v46 = vor.u32 %v3023_v6, %v2683_v30  ;;  %v1270_v51 = vld [vmem:[#allocation2 + $0x44] sm:$0x1]  ;;  %v768_v7 = vrot.slane %v766_v34, 5  ;;  %v1362_v2 = vor.u32 %v1361_v47, %v1358_v3  ;;  %v1418_v0 = vpack.c.b16 %v1413_v50, %v3671_v26 }
  0x66   : > { %1083 = vmatmul.bf16.gmra.mxu2 %v1007_v17  ;;  %v1370_v48 = vshrl.u32 %v1269_v43, 16  ;;  %v1373_v55 = vshll.u32 %v1269_v43, 16  ;;  %v1904_v11 = vrot.slane %v1903_v59, 4  ;;  %v1379_v22 = vshll.u32 %v1270_v51, 16  ;;  %v1873_v30 = vld [vmem:[#allocation2 + $0x2c] sm:$0x1] }
  0x67   : > { %1233 = vmatmul.bf16.gmra.mxu3 %v2684_v46  ;;  %v1911_v58 = vshrl.u32 %v1870_v9, 16  ;;  %v755_v12 = vsel %vm3478_vm11, %v750_v52, %v754_v57  ;;  %v1895_v17 = vsel %vm3478_vm11, %v1890_v63, %v1894_v1  ;;  %v1914_v14 = vshll.u32 %v1870_v9, 16  ;;  %v1517_v46 = vld [vmem:[#allocation2 + $0x8] sm:$0xe]  ;;  %v1518_v47 = vld [vmem:[#allocation2 + $0xc] sm:$0x1] }
  0x68   : > { %1677 = vmatpush.bf16.msra.mxu1 %v3040_v16  ;;  %v1372_v61 = vrot.slane %v1370_v48, 4  ;;  %v1375_v62 = vrot.slane %v1373_v55, 5  ;;  %v1367_v16 = vrot.slane %v1365_v60, 5  ;;  %v1909_v18 = vsel %vm3478_vm11, %v1904_v11, %v1908_v4  ;;  %2288 = vmatpush.bf16.msra.mxu0 %v3068_v15  ;;  %v1519_v48 = vld [vmem:[#allocation2 + $0x10] sm:$0xe] }
  0x69   : > { %3131 = vmatpush.bf16.msra.mxu2 %v3070_v49  ;;  %v769_v8 = vsel %vm3478_vm11, %v764_v5, %v768_v7  ;;  %v1363_v20 = vrot.slane %v1362_v2, 4  ;;  %v1925_v21 = vshrl.u32 %v1872_v53, 16  ;;  %v1928_v56 = vshll.u32 %v1872_v53, 16  ;;  %v1520_v55 = vld [vmem:[#allocation2 + $0x14] sm:$0x1] }
  0x6a   : > { %v1376_v10 = vor.u32 %v1375_v62, %v1372_v61  ;;  %v1381_v37 = vrot.slane %v1379_v22, 5  ;;  %v1913_v26 = vrot.slane %v1911_v58, 4  ;;  %v1916_v27 = vrot.slane %v1914_v14, 5  ;;  %v1874_v59 = vld [vmem:[#allocation2 + $0x30] sm:$0xf] }
  0x6b   : > { %v2019_v28 = vunpack.c.l.b16 %v1895_v17  ;;  %v2020_v29 = vunpack.c.l.b16 %v1909_v18  ;;  %v1927_v32 = vrot.slane %v1925_v21, 4  ;;  %v1930_v33 = vrot.slane %v1928_v56, 5  ;;  %v1876_v51 = vld [vmem:[#allocation2 + $0x38] sm:$0xf]  ;;  %v2128_v4 = vld [vmem:[#allocation2 + $0x10] sm:$0xe] }
  0x6c   : > { %v1377_v23 = vrot.slane %v1376_v10, 4  ;;  %v2840_v34 = vor.u32 %v3048_v19, %v2839_v25  ;;  %v801_v35 = vunpack.c.l.b16 %v755_v12  ;;  %v802_v36 = vunpack.c.l.b16 %v769_v8  ;;  %v2129_v5 = vld [vmem:[#allocation2 + $0x14] sm:$0x1]  ;;  %v2130_v7 = vld [vmem:[#allocation2 + $0x18] sm:$0xe] }
  0x6d   : > { %877 = vmatmul.bf16.gmra.mxu1 %v805_v24  ;;  %3132 = vmatpush.bf16.msra.mxu2 %v3069_v31  ;;  %v1871_v24 = vld [vmem:[#allocation2 + $0x24] sm:$0x1]  ;;  %v1368_v42 = vsel %vm3478_vm11, %v1363_v20, %v1367_v16  ;;  %v1917_v39 = vor.u32 %v1916_v27, %v1913_v26  ;;  %v1931_v6 = vor.u32 %v1930_v33, %v1927_v32  ;;  %v1934_v40 = vshll.u32 %v1873_v30, 16  ;;  %v2131_v2 = vld [vmem:[#allocation2 + $0x1c] sm:$0x1] }
  0x6e   : > { %1490 = vmatmul.bf16.gmra.mxu0 %v1418_v0  ;;  %v1920_v3 = vshll.u32 %v1871_v24, 16  ;;  %v1382_v38 = vsel %vm3478_vm11, %v1377_v23, %v1381_v37  ;;  %v2027_v43 = vpack.c.b16 %v2020_v29, %v2019_v28  ;;  %v806_v44 = vpack.c.b16 %v802_v36, %v801_v35  ;;  %v2843_v53 = vld [vmem:[#allocation2 + $0x20] sm:$0xf]  ;;  %v3049_v58 = vld [vmem:[#allocation2 + $0x24] sm:$0xf0] }
  0x6f   : > { %v1414_v54 = vunpack.c.l.b16 %v1368_v42  ;;  %v1415_v45 = vunpack.c.l.b16 %v1382_v38  ;;  %v1918_v49 = vrot.slane %v1917_v39, 4  ;;  %v1932_v52 = vrot.slane %v1931_v6, 4  ;;  %v1875_v37 = vld [vmem:[#allocation2 + $0x34] sm:$0x1]  ;;  %v1877_v24 = vld [vmem:[#allocation2 + $0x3c] sm:$0x1] }
  0x70   : > { %v1922_v50 = vrot.slane %v1920_v3, 5  ;;  %v1936_v57 = vrot.slane %v1934_v40, 5  ;;  %v2765_v60 = vrot.slane %v1517_v46, 9  ;;  %v1551_v61 = vrot.slane %v1518_v47, 5  ;;  %v1521_v38 = vld [vmem:[#allocation2 + $0x18] sm:$0xe] }
  0x71   : > { %3133 = vmatpush.bf16.msra.mxu2 %v3068_v15  ;;  %v2766_v62 = vrot.slane %v1519_v48, 9  ;;  %v1555_v31 = vrot.slane %v1520_v55, 5  ;;  %v1419_v63 = vpack.c.b16 %v1415_v45, %v1414_v54  ;;  %v1939_v9 = vshrl.u32 %v1874_v59, 16  ;;  %v1522_v39 = vld [vmem:[#allocation2 + $0x1c] sm:$0x1] }
  0x72   : > { %v1923_v1 = vsel %vm3478_vm11, %v1918_v49, %v1922_v50  ;;  %v1937_v11 = vsel %vm3478_vm11, %v1932_v52, %v1936_v57  ;;  %v1942_v0 = vshll.u32 %v1874_v59, 16  ;;  %v1953_v10 = vshrl.u32 %v1876_v51, 16  ;;  %v1523_v6 = vld [vmem:[#allocation2 + $0x20] sm:$0xe]  ;;  %v1524_v40 = vld [vmem:[#allocation2 + $0x24] sm:$0x1] }
  0x73   : > { %v1956_v22 = vshll.u32 %v1876_v51, 16  ;;  %v1552_v12 = vsel %vm3403_vm8, %v2765_v60, %v1551_v61  ;;  %v1556_v15 = vsel %vm3403_vm8, %v2766_v62, %v1555_v31  ;;  %v2933_v25 = vrot.slane %v2128_v4, 9  ;;  %v2847_v46 = vld [vmem:[#allocation2 + $0x30] sm:$0xf]  ;;  %v3050_v47 = vld [vmem:[#allocation2 + $0x34] sm:$0xf0] }
  0x74   : > { %v2162_v16 = vrot.slane %v2129_v5, 5  ;;  %v2021_v17 = vunpack.c.l.b16 %v1923_v1  ;;  %v2022_v18 = vunpack.c.l.b16 %v1937_v11  ;;  %v2934_v14 = vrot.slane %v2130_v7, 9  ;;  %v1878_v55 = vld [vmem:[#allocation2 + $0x40] sm:$0xf]  ;;  %v1880_v49 = vld [vmem:[#allocation2 + $0x48] sm:$0xf] }
  0x75   : > { %v2166_v19 = vrot.slane %v2131_v2, 5  ;;  %v1941_v8 = vrot.slane %v1939_v9, 4  ;;  %v1944_v20 = vrot.slane %v1942_v0, 5  ;;  %v1955_v21 = vrot.slane %v1953_v10, 4  ;;  %v2132_v51 = vld [vmem:[#allocation2 + $0x20] sm:$0xe] }
  0x76   : > { %1829 = vmatmul.bf16.vlgmr.msrb.gmra.mxu2 %v2840_v34  ;;  %v1958_v56 = vrot.slane %v1956_v22, 5  ;;  %v2844_v23 = vor.u32 %v3049_v58, %v2843_v53  ;;  %v1606_v26 = vunpack.c.l.b16 %v1552_v12  ;;  %v1607_v27 = vunpack.c.l.b16 %v1556_v15  ;;  %v2133_v62 = vld [vmem:[#allocation2 + $0x24] sm:$0x1]  ;;  %v2134_v31 = vld [vmem:[#allocation2 + $0x28] sm:$0xe] }
  0x77   : > { %2091 = vmatmul.bf16.vlgmr.msrb.gmra.mxu3 %v2027_v43  ;;  %v2028_v28 = vpack.c.b16 %v2022_v18, %v2021_v17  ;;  %v2163_v29 = vsel %vm3403_vm8, %v2933_v25, %v2162_v16  ;;  %v2167_v30 = vsel %vm3403_vm8, %v2934_v14, %v2166_v19  ;;  %v1945_v32 = vor.u32 %v1944_v20, %v1941_v8  ;;  %v1879_v18 = vld [vmem:[#allocation2 + $0x44] sm:$0x1]  ;;  %v1881_v14 = vld [vmem:[#allocation2 + $0x4c] sm:$0x1]  ;;  %v2140_v41 = vld [vmem:[#allocation2 + $0x40] sm:$0xe] }
  0x78   : > { %v1948_v33 = vshll.u32 %v1875_v37, 16  ;;  %v1959_v34 = vor.u32 %v1958_v56, %v1955_v21  ;;  %v1962_v35 = vshll.u32 %v1877_v24, 16  ;;  %v1614_v36 = vpack.c.b16 %v1607_v27, %v1606_v26 }
  0x79   : > { %v2217_v42 = vunpack.c.l.b16 %v2163_v29  ;;  %v2218_v3 = vunpack.c.l.b16 %v2167_v30  ;;  %v1946_v43 = vrot.slane %v1945_v32, 4  ;;  %v2767_v48 = vrot.slane %v1521_v38, 9  ;;  %v1525_v30 = vld [vmem:[#allocation2 + $0x28] sm:$0xe]  ;;  %v1526_v32 = vld [vmem:[#allocation2 + $0x2c] sm:$0x1] }
  0x7a   : > { %v1960_v54 = vrot.slane %v1959_v34, 4  ;;  %v1964_v45 = vrot.slane %v1962_v35, 5  ;;  %v1559_v52 = vrot.slane %v1522_v39, 5  ;;  %v2768_v57 = vrot.slane %v1523_v6, 9  ;;  %v1528_v34 = vld [vmem:[#allocation2 + $0x34] sm:$0x1] }
  0x7b   : > { %v2225_v50 = vpack.c.b16 %v2218_v3, %v2217_v42  ;;  %v1563_v59 = vrot.slane %v1524_v40, 5  ;;  %v1967_v1 = vshrl.u32 %v1878_v55, 16  ;;  %v1970_v11 = vshll.u32 %v1878_v55, 16  ;;  %v2851_v55 = vld [vmem:[#allocation2 + $0x40] sm:$0xf] }
  0x7c   : > { %v1965_v61 = vsel %vm3478_vm11, %v1960_v54, %v1964_v45  ;;  %v1981_v4 = vshrl.u32 %v1880_v49, 16  ;;  %v1984_v5 = vshll.u32 %v1880_v49, 16  ;;  %v2848_v7 = vor.u32 %v3050_v47, %v2847_v46  ;;  %v2137_v54 = vld [vmem:[#allocation2 + $0x34] sm:$0x1]  ;;  %v2138_v47 = vld [vmem:[#allocation2 + $0x38] sm:$0xe] }
  0x7d   : > { %882 = vmatmul.bf16.gmra.mxu1 %v806_v44  ;;  %v1950_v44 = vrot.slane %v1948_v33, 5  ;;  %v2935_v2 = vrot.slane %v2132_v51, 9  ;;  %v2170_v9 = vrot.slane %v2133_v62, 5  ;;  %v2936_v0 = vrot.slane %v2134_v31, 9  ;;  %v1527_v33 = vld [vmem:[#allocation2 + $0x30] sm:$0xe] }
  0x7e   : > { %1495 = vmatmul.bf16.gmra.mxu0 %v1419_v63  ;;  %v2135_v63 = vld [vmem:[#allocation2 + $0x2c] sm:$0x1]  ;;  %v1560_v22 = vsel %vm3403_vm8, %v2767_v48, %v1559_v52  ;;  %v1564_v53 = vsel %vm3403_vm8, %v2768_v57, %v1563_v59  ;;  %v2024_v12 = vunpack.c.l.b16 %v1965_v61  ;;  %v1969_v15 = vrot.slane %v1967_v1, 4  ;;  %v2139_v48 = vld [vmem:[#allocation2 + $0x3c] sm:$0x1] }
  0x7f   : > { %v1951_v60 = vsel %vm3478_vm11, %v1946_v43, %v1950_v44  ;;  %v2174_v10 = vrot.slane %v2135_v63, 5  ;;  %v1972_v25 = vrot.slane %v1970_v11, 5  ;;  %v1983_v16 = vrot.slane %v1981_v4, 4  ;;  %v2136_v44 = vld [vmem:[#allocation2 + $0x30] sm:$0xe] }
  0x80   : > { %v2023_v58 = vunpack.c.l.b16 %v1951_v60  ;;  %v1986_v17 = vrot.slane %v1984_v5, 5  ;;  %v1608_v19 = vunpack.c.l.b16 %v1560_v22  ;;  %v1609_v8 = vunpack.c.l.b16 %v1564_v53  ;;  %v3051_v49 = vld [vmem:[#allocation2 + $0x44] sm:$0xf0]  ;;  %v2141_v11 = vld [vmem:[#allocation2 + $0x44] sm:$0x1] }
  0x81   : > { %v2171_v20 = vsel %vm3403_vm8, %v2935_v2, %v2170_v9  ;;  %v2175_v21 = vsel %vm3403_vm8, %v2936_v0, %v2174_v10  ;;  %v1976_v37 = vshll.u32 %v1879_v18, 16  ;;  %v1990_v26 = vshll.u32 %v1881_v14, 16  ;;  %v2142_v4 = vld [vmem:[#allocation2 + $0x48] sm:$0xe]  ;;  %v2143_v5 = vld [vmem:[#allocation2 + $0x4c] sm:$0x1] }
  0x82   : > { %v2029_v56 = vpack.c.b16 %v2024_v12, %v2023_v58  ;;  %v1987_v24 = vor.u32 %v1986_v17, %v1983_v16  ;;  %v2219_v27 = vunpack.c.l.b16 %v2171_v20  ;;  %v1615_v29 = vpack.c.b16 %v1609_v8, %v1608_v19  ;;  %v1529_v16 = vld [vmem:[#allocation2 + $0x38] sm:$0xe]  ;;  %v1530_v17 = vld [vmem:[#allocation2 + $0x3c] sm:$0x1]  ;;  %v1531_v18 = vld [vmem:[#allocation2 + $0x40] sm:$0xe] }
  0x83   : > { %v1992_v3 = vrot.slane %v1990_v26, 5  ;;  %v2769_v39 = vrot.slane %v1525_v30, 9  ;;  %v1567_v6 = vrot.slane %v1526_v32, 5  ;;  %v2770_v40 = vrot.slane %v1527_v33, 9  ;;  %v1532_v14 = vld [vmem:[#allocation2 + $0x44] sm:$0x1] }
  0x84   : > { %v1988_v42 = vrot.slane %v1987_v24, 4  ;;  %v1571_v43 = vrot.slane %v1528_v34, 5  ;;  %v2937_v57 = vrot.slane %v2136_v44, 9  ;;  %v2178_v59 = vrot.slane %v2137_v54, 5 }
  0x85   : > { %v2938_v61 = vrot.slane %v2138_v47, 9  ;;  %v2182_v62 = vrot.slane %v2139_v48, 5  ;;  %v2852_v31 = vor.u32 %v3051_v49, %v2851_v55  ;;  %v2939_v0 = vrot.slane %v2140_v41, 9 }
  0x86   : > { %1834 = vmatmul.bf16.gmra.mxu2 %v2844_v23  ;;  %v1973_v23 = vor.u32 %v1972_v25, %v1969_v15  ;;  %v1993_v46 = vsel %vm3478_vm11, %v1988_v42, %v1992_v3  ;;  %v1572_v52 = vsel %vm3403_vm8, %v2770_v40, %v1571_v43  ;;  %v2179_v2 = vsel %vm3403_vm8, %v2937_v57, %v2178_v59 }
  0x87   : > { %2096 = vmatmul.bf16.gmra.mxu3 %v2028_v28  ;;  %v2220_v28 = vunpack.c.l.b16 %v2175_v21  ;;  %v2026_v60 = vunpack.c.l.b16 %v1993_v46  ;;  %v1611_v1 = vunpack.c.l.b16 %v1572_v52  ;;  %v2183_v9 = vsel %vm3403_vm8, %v2938_v61, %v2182_v62 }
  0x88   : > { %v1974_v35 = vrot.slane %v1973_v23, 4  ;;  %v2186_v10 = vrot.slane %v2141_v11, 5  ;;  %v2940_v22 = vrot.slane %v2142_v4, 9  ;;  %v2190_v53 = vrot.slane %v2143_v5, 5 }
  0x89   : > { %v2226_v38 = vpack.c.b16 %v2220_v28, %v2219_v27  ;;  %v2221_v12 = vunpack.c.l.b16 %v2179_v2  ;;  %v2222_v15 = vunpack.c.l.b16 %v2183_v9  ;;  %v1575_v23 = vrot.slane %v1530_v17, 5 }
  0x8a   : > { %v2187_v19 = vsel %vm3403_vm8, %v2939_v0, %v2186_v10  ;;  %v2191_v8 = vsel %vm3403_vm8, %v2940_v22, %v2190_v53  ;;  %v1579_v24 = vrot.slane %v1532_v14, 5 }
  0x8b   : > { %v2227_v20 = vpack.c.b16 %v2222_v15, %v2221_v12  ;;  %v2223_v26 = vunpack.c.l.b16 %v2187_v19  ;;  %v2224_v27 = vunpack.c.l.b16 %v2191_v8 }
  0x8d   : > { %1678 = vmatmul.bf16.vlgmr.msra.gmra.mxu1 %v1614_v36  ;;  %v1978_v36 = vrot.slane %v1976_v37, 5  ;;  %v2772_v37 = vrot.slane %v1531_v18, 9  ;;  %v2228_v32 = vpack.c.b16 %v2224_v27, %v2223_v26 }
  0x8e   : > { %2289 = vmatmul.bf16.vlgmr.msra.gmra.mxu0 %v2225_v50  ;;  %v1568_v50 = vsel %vm3403_vm8, %v2769_v39, %v1567_v6 }
  0x8f   : > { %v1979_v45 = vsel %vm3478_vm11, %v1974_v35, %v1978_v36  ;;  %v1610_v63 = vunpack.c.l.b16 %v1568_v50  ;;  %v1580_v30 = vsel %vm3403_vm8, %v2772_v37, %v1579_v24 }
  0x90   : > { %v2025_v51 = vunpack.c.l.b16 %v1979_v45  ;;  %v1613_v34 = vunpack.c.l.b16 %v1580_v30 }
  0x91   : > { %v1616_v58 = vpack.c.b16 %v1611_v1, %v1610_v63 }
  0x96   : > { %1839 = vmatmul.bf16.gmra.mxu2 %v2848_v7  ;;  %v2030_v7 = vpack.c.b16 %v2026_v60, %v2025_v51 }
  0x97   : > { %2101 = vmatmul.bf16.gmra.mxu3 %v2029_v56  ;;  %v2771_v56 = vrot.slane %v1529_v16, 9 }
  0x9d   : > { %1683 = vmatmul.bf16.gmra.mxu1 %v1615_v29  ;;  %v1576_v29 = vsel %vm3403_vm8, %v2771_v56, %v1575_v23 }
  0x9e   : > { %2294 = vmatmul.bf16.gmra.mxu0 %v2226_v38  ;;  %v1612_v33 = vunpack.c.l.b16 %v1576_v29 }
  0xa0   : > { %v1617_v42 = vpack.c.b16 %v1613_v34, %v1612_v33 }
  0xa6   : > { %1844 = vmatmul.bf16.gmra.mxu2 %v2852_v31 }
  0xa7   : > { %2106 = vmatmul.bf16.gmra.mxu3 %v2030_v7 }
  0xaa   : > { %v3733_v25 = vpop.f32.mrf.mxu1 }
  0xab   : > { %v603_v21 = vpop.f32.mrf.mxu0 }
  0xad   : > { %1688 = vmatmul.bf16.gmra.mxu1 %v1616_v58 }
  0xae   : > { %2299 = vmatmul.bf16.gmra.mxu0 %v2227_v20 }
  0xb2   : > { %v615_v28 = vpop.f32.mrf.mxu1 }
  0xb3   : > { %v605_v35 = vpop.f32.mrf.mxu0 }
  0xb5   : > { %v1219_v36 = vpop.f32.mrf.mxu3 }
  0xb6   : > { %2304 = vmatmul.bf16.vlgmr.msra.gmra.mxu2 %v2228_v32 }
  0xb9   : > { %v1069_v3 = vpop.f32.mrf.mxu2 }
  0xba   : > { %v618_v38 = vpop.f32.mrf.mxu1 }
  0xbb   : > { %v608_v39 = vpop.f32.mrf.mxu0 }
  0xbd   : > { %1693 = vmatmul.bf16.gmra.mxu1 %v1617_v42  ;;  %v1221_v6 = vpop.f32.mrf.mxu3 }
  0xc1   : > { %v1071_v40 = vpop.f32.mrf.mxu2 }
  0xc2   : > { %v620_v43 = vpop.f32.mrf.mxu1 }
  0xc3   : > { %v610_v44 = vpop.f32.mrf.mxu0 }
  0xc5   : > { %v1224_v54 = vpop.f32.mrf.mxu3 }
  0xc9   : > { %v1074_v45 = vpop.f32.mrf.mxu2 }
  0xca   : > { %v868_v46 = vpop.f32.mrf.mxu1 }
  0xcb   : > { %v888_v13 = vadd.f32 %v868_v46, %v603_v21  ;;  %v1481_v48 = vpop.f32.mrf.mxu0 }
  0xcd   : > { %v1089_v47 = vadd.f32 %v1069_v3, %v888_v13  ;;  %v3743_v49 = vpop.f32.mrf.mxu3 }
  0xcf   : > { %v1239_v55 = vadd.f32 %v1219_v36, %v1089_v47 }
  0xd1   : > { %v1501_v50 = vadd.f32 %v1481_v48, %v1239_v55  ;;  %v1076_v52 = vpop.f32.mrf.mxu2 }
  0xd2   : > { %v870_v57 = vpop.f32.mrf.mxu1 }
  0xd3   : > { %v889_v59 = vadd.f32 %v870_v57, %v605_v35  ;;  %v1483_v60 = vpop.f32.mrf.mxu0 }
  0xd5   : > { %v1090_v51 = vadd.f32 %v1071_v40, %v889_v59  ;;  %v1229_v61 = vpop.f32.mrf.mxu3 }
  0xd7   : > { %v1240_v3 = vadd.f32 %v1221_v6, %v1090_v51 }
  0xd9   : > { %v1079_v62 = vpop.f32.mrf.mxu2  ;;  %v1502_v40 = vadd.f32 %v1483_v60, %v1240_v3 }
  0xda   : > { %v873_v31 = vpop.f32.mrf.mxu1 }
  0xdb   : > { %v890_v41 = vadd.f32 %v873_v31, %v608_v39  ;;  %v1486_v1 = vpop.f32.mrf.mxu0 }
  0xdd   : > { %v1091_v63 = vadd.f32 %v1074_v45, %v890_v41  ;;  %v3745_v9 = vpop.f32.mrf.mxu3 }
  0xdf   : > { %v1241_v11 = vadd.f32 %v1224_v54, %v1091_v63 }
  0xe1   : > { %v1503_v4 = vadd.f32 %v1486_v1, %v1241_v11  ;;  %v1081_v5 = vpop.f32.mrf.mxu2 }
  0xe2   : > { %v875_v7 = vpop.f32.mrf.mxu1 }
  0xe3   : > { %v891_v2 = vadd.f32 %v875_v7, %v610_v44  ;;  %v3747_v10 = vpop.f32.mrf.mxu0 }
  0xe5   : > { %v1092_v0 = vadd.f32 %v1076_v52, %v891_v2 }
  0xe9   : > { %v1084_v22 = vpop.f32.mrf.mxu2 }
  0xea   : > { %v878_v53 = vpop.f32.mrf.mxu1  ;;  %v3750_v15 = vpop.f32.mrf.mxu3 }
  0xeb   : > { %v892_v58 = vadd.f32 %v878_v53, %v3733_v25  ;;  %v1491_v16 = vpop.f32.mrf.mxu0 }
  0xed   : > { %v1093_v12 = vadd.f32 %v1079_v62, %v892_v58  ;;  %v1242_v62 = vadd.f32 %v3743_v49, %v1092_v0 }
  0xef   : > { %v1243_v17 = vadd.f32 %v1229_v61, %v1093_v12 }
  0xf1   : > { %v3752_v18 = vadd.f32 %v1491_v16, %v1243_v17  ;;  %v1086_v14 = vpop.f32.mrf.mxu2 }
  0xf2   : > { %v880_v19 = vpop.f32.mrf.mxu1  ;;  %v3756_v21 = vpop.f32.mrf.mxu3 }
  0xf3   : > { %v893_v8 = vadd.f32 %v880_v19, %v615_v28  ;;  %v3758_v56 = vpop.f32.mrf.mxu0 }
  0xf5   : > { %v3754_v20 = vadd.f32 %v1081_v5, %v893_v8  ;;  %v1504_v5 = vadd.f32 %v3747_v10, %v1242_v62 }
  0xf9   : > { %v1830_v23 = vpop.f32.mrf.mxu2 }
  0xfa   : > { %v883_v37 = vpop.f32.mrf.mxu1  ;;  %v2092_v27 = vpop.f32.mrf.mxu3 }
  0xfb   : > { %v894_v25 = vadd.f32 %v883_v37, %v618_v38  ;;  %v3762_v26 = vpop.f32.mrf.mxu0 }
  0xfd   : > { %v3760_v24 = vadd.f32 %v1084_v22, %v894_v25 }
 0x101   : > { %v1832_v29 = vpop.f32.mrf.mxu2 }
 0x102   : > { %v885_v30 = vpop.f32.mrf.mxu1  ;;  %v2094_v34 = vpop.f32.mrf.mxu3 }
 0x103   : > { %v895_v32 = vadd.f32 %v885_v30, %v620_v43  ;;  %v3766_v28 = vpop.f32.mrf.mxu0 }
 0x105   : > { %v3764_v33 = vadd.f32 %v1086_v14, %v895_v32 }
 0x109   : > { %v1835_v35 = vpop.f32.mrf.mxu2 }
 0x10a   : > { %v1679_v36 = vpop.f32.mrf.mxu1  ;;  %v2097_v43 = vpop.f32.mrf.mxu3 }
 0x10b   : > { %v1699_v42 = vadd.f32 %v1679_v36, %v1501_v50  ;;  %v2290_v38 = vpop.f32.mrf.mxu0 }
 0x10d   : > { %v1850_v39 = vadd.f32 %v1830_v23, %v1699_v42 }
 0x10f   : > { %v2112_v54 = vadd.f32 %v2092_v27, %v1850_v39  ;;  %v1244_v27 = vadd.f32 %v3745_v9, %v3754_v20 }
 0x111   : > { %v1837_v44 = vpop.f32.mrf.mxu2  ;;  %v2310_v47 = vadd.f32 %v2290_v38, %v2112_v54 }
 0x112   : > { %v1681_v45 = vpop.f32.mrf.mxu1  ;;  %v2099_v63 = vpop.f32.mrf.mxu3 }
 0x113   : > { %v1700_v46 = vadd.f32 %v1681_v45, %v1502_v40  ;;  %v2292_v48 = vpop.f32.mrf.mxu0  ;;  %v2364_v57 = vmul.f32 %v2310_v47, %v2310_v47 }
 0x115   : > { %v1851_v13 = vadd.f32 %v1832_v29, %v1700_v46 }
 0x117   : > { %v2113_v55 = vadd.f32 %v2094_v34, %v1851_v13 }
 0x119   : > { %v2311_v52 = vadd.f32 %v2292_v48, %v2113_v55  ;;  %v1840_v50 = vpop.f32.mrf.mxu2 }
 0x11a   : > { %v1684_v6 = vpop.f32.mrf.mxu1  ;;  %v2102_v49 = vpop.f32.mrf.mxu3 }
 0x11b   : > { %v3095_v59 = vpack.c.bf16 %v2311_v52, %v2310_v47  ;;  %v2350_v51 = vadd.f32 %v2311_v52, %v2310_v47  ;;  %v2365_v60 = vmul.f32 %v2311_v52, %v2311_v52  ;;  %v1701_v61 = vadd.f32 %v1684_v6, %v1503_v4  ;;  %v2295_v1 = vpop.f32.mrf.mxu0 }
 0x11d   : > { %3096 = vst [vmem:[%s3772_s8] sm:$0xff] %v3095_v59   ;;  %v2372_v31 = vadd.f32 %v2365_v60, %v2364_v57  ;;  %v1852_v41 = vadd.f32 %v1835_v35, %v1701_v61  ;;  %v1506_v35 = vadd.f32 %v3758_v56, %v1244_v27  ;;  %v1246_v57 = vadd.f32 %v3756_v21, %v3764_v33 }
 0x11f   : > { %v2114_v11 = vadd.f32 %v2097_v43, %v1852_v41  ;;  %v1508_v59 = vadd.f32 %v3766_v28, %v1246_v57 }
 0x121   : > { %v2312_v7 = vadd.f32 %v2295_v1, %v2114_v11  ;;  %v1842_v2 = vpop.f32.mrf.mxu2 }
 0x122   : > { %v1686_v22 = vpop.f32.mrf.mxu1  ;;  %v2104_v42 = vpop.f32.mrf.mxu3 }
 0x123   : > { %v2351_v53 = vadd.f32 %v2350_v51, %v2312_v7  ;;  %v2366_v58 = vmul.f32 %v2312_v7, %v2312_v7  ;;  %v1702_v12 = vadd.f32 %v1686_v22, %v1504_v5  ;;  %v2297_v4 = vpop.f32.mrf.mxu0 }
 0x125   : > { %v2373_v16 = vadd.f32 %v2372_v31, %v2366_v58  ;;  %v1853_v17 = vadd.f32 %v1837_v44, %v1702_v12 }
 0x127   : > { %v2115_v14 = vadd.f32 %v2099_v63, %v1853_v17 }
 0x129   : > { %v2313_v0 = vadd.f32 %v2297_v4, %v2115_v14  ;;  %v1845_v19 = vpop.f32.mrf.mxu2 }
 0x12a   : > { %v1689_v8 = vpop.f32.mrf.mxu1  ;;  %v2107_v52 = vpop.f32.mrf.mxu3 }
 0x12b   : > { %v3100_v23 = vpack.c.bf16 %v2313_v0, %v2312_v7  ;;  %v2352_v37 = vadd.f32 %v2351_v53, %v2313_v0  ;;  %v2367_v25 = vmul.f32 %v2313_v0, %v2313_v0  ;;  %v1703_v10 = vadd.f32 %v1689_v8, %v3752_v18  ;;  %v2300_v32 = vpop.f32.mrf.mxu0 }
 0x12c   : > { %v1245_v18 = vadd.f32 %v3750_v15, %v3760_v24 }
 0x12d   : > { %3115 = vst [vmem:[%s3772_s8 + $0x8] sm:$0xff] %v3100_v23   ;;  %v2374_v29 = vadd.f32 %v2373_v16, %v2367_v25  ;;  %v1854_v30 = vadd.f32 %v1840_v50, %v1703_v10 }
 0x12e   : > { %v1507_v46 = vadd.f32 %v3762_v26, %v1245_v18 }
 0x12f   : > { %v2116_v34 = vadd.f32 %v2102_v49, %v1854_v30 }
 0x131   : > { %v2314_v36 = vadd.f32 %v2300_v32, %v2116_v34  ;;  %v1847_v44 = vpop.f32.mrf.mxu2 }
 0x132   : > { %v1691_v3 = vpop.f32.mrf.mxu1  ;;  %v2109_v63 = vpop.f32.mrf.mxu3 }
 0x133   : > { %v2353_v39 = vadd.f32 %v2352_v37, %v2314_v36  ;;  %v2368_v38 = vmul.f32 %v2314_v36, %v2314_v36  ;;  %v1704_v40 = vadd.f32 %v1691_v3, %v1506_v35  ;;  %v2302_v20 = vpop.f32.mrf.mxu0 }
 0x135   : > { %v2375_v54 = vadd.f32 %v2374_v29, %v2368_v38  ;;  %v1855_v9 = vadd.f32 %v1842_v2, %v1704_v40 }
 0x137   : > { %v2117_v45 = vadd.f32 %v2104_v42, %v1855_v9 }
 0x139   : > { %v2315_v43 = vadd.f32 %v2302_v20, %v2117_v45  ;;  %v2305_v15 = vpop.f32.mrf.mxu2 }
 0x13a   : > { %v1694_v13 = vpop.f32.mrf.mxu1 }
 0x13b   : > { %v3105_v56 = vpack.c.bf16 %v2315_v43, %v2314_v36  ;;  %v2354_v47 = vadd.f32 %v2353_v39, %v2315_v43  ;;  %v2369_v48 = vmul.f32 %v2315_v43, %v2315_v43  ;;  %v1705_v55 = vadd.f32 %v1694_v13, %v1507_v46 }
 0x13d   : > { %3116 = vst [vmem:[%s3772_s8 + $0x10] sm:$0xff] %v3105_v56   ;;  %v2376_v50 = vadd.f32 %v2375_v54, %v2369_v48  ;;  %v1856_v6 = vadd.f32 %v1845_v19, %v1705_v55 }
 0x13f   : > { %v2118_v24 = vadd.f32 %v2107_v52, %v1856_v6 }
 0x141   : > { %v2316_v51 = vadd.f32 %v2305_v15, %v2118_v24  ;;  %v2307_v11 = vpop.f32.mrf.mxu2 }
 0x142   : > { %v1696_v26 = vpop.f32.mrf.mxu1 }
 0x143   : > { %v2355_v60 = vadd.f32 %v2354_v47, %v2316_v51  ;;  %v2370_v61 = vmul.f32 %v2316_v51, %v2316_v51  ;;  %v1706_v62 = vadd.f32 %v1696_v26, %v1508_v59 }
 0x145   : > { %v2377_v31 = vadd.f32 %v2376_v50, %v2370_v61  ;;  %v1857_v41 = vadd.f32 %v1847_v44, %v1706_v62 }
 0x147   : > { %v2119_v1 = vadd.f32 %v2109_v63, %v1857_v41 }
 0x149   : > { %v2317_v21 = vadd.f32 %v2307_v11, %v2119_v1 }
 0x14b   : > { %v3110_v33 = vpack.c.bf16 %v2317_v21, %v2316_v51  ;;  %v2356_v5 = vadd.f32 %v2355_v60, %v2317_v21  ;;  %v2371_v7 = vmul.f32 %v2317_v21, %v2317_v21 }
 0x14d   : > { %3117 = vst [vmem:[%s3772_s8 + $0x18] sm:$0xff] %v3110_v33   ;;  %v2357_v2 = vrot.slane %v2356_v5, 4  ;;  %v2378_v22 = vadd.f32 %v2377_v31, %v2371_v7 }
 0x14f   : > { %v2358_v28 = vadd.f32 %v2357_v2, %v2356_v5  ;;  %v2379_v53 = vrot.slane %v2378_v22, 4 }
 0x151   : > { %v2359_v58 = vrot.slane %v2358_v28, 2  ;;  %v2380_v12 = vadd.f32 %v2379_v53, %v2378_v22 }
 0x153   : > { %v2360_v16 = vadd.f32 %v2359_v58, %v2358_v28  ;;  %v2381_v17 = vrot.slane %v2380_v12, 2 }
 0x155   : > { %v2361_v4 = vrot.slane %v2360_v16, 1  ;;  %v2382_v14 = vadd.f32 %v2381_v17, %v2380_v12 }
 0x157   : > { %v2362_v49 = vadd.f32 %v2361_v4, %v2360_v16  ;;  %v2383_v0 = vrot.slane %v2382_v14, 1 }
 0x159   : > { %2363 = vst [vmem:[%s266_s11] sm:$0x1] %v2362_v49  ;;  %v2384_v19 = vadd.f32 %v2383_v0, %v2382_v14 }
 0x15b   : > { %2385 = vst [vmem:[%s269_s14] sm:$0x1] %v2384_v19 }
 0x15c PF: > { %s17_s21 = sadd.s32 1, %s3151_s21  }
 0x15d   : > { %p14_p5 = scmp.ge.s32.totalorder %s17_s21, 4  }
 0x15f   :  { %16 = sbr.rel (!%p14_p5) target bundleno = 1 (0x1), region = 100 }

</bundles_post_ra>
